<compile_context>
chip_gen: v7x
topology: tpu7x:2x2x1
jax: 0.10.0
libtpu: 0.0.40
codegen_flags: <defaults>
</compile_context>

<pallas_src>
import functools

import jax
import jax.numpy as jnp
from jax import lax
from jax.experimental import pallas as pl
from jax.experimental.pallas import tpu as pltpu

# ---- model dims (from GCNNet.__init__), padded to lane-aligned sizes --------
NUM_FEATURES_XD = 78           # raw node-feature dim
F1_PAD = 128                   # 78  -> 128
F2_PAD = 256                   # 156 -> 256
F3_PAD = 384                   # 312 -> 384
OUTPUT_DIM = 128               # fc_g2 output (already lane aligned)
HEAD_OUT_PAD = 128             # final out layer padded from n_output -> 128
NEG_FILL = -1e30               # finite fill for masked max-pool (no NaNs)


# -----------------------------------------------------------------------------
# Kernel 1: fused 3-layer GCN + global max pool; G graphs packed per grid step.
# -----------------------------------------------------------------------------
def fused_gcn_pool(counts, adj_steps, x_steps,
                   wc1, bc1, wc2, bc2, wc3, bc3, *, g_pack, n_pad):
    num_steps = adj_steps.shape[0]
    rows = g_pack * n_pad

    def kernel(counts_ref, adj_ref, x_ref,
               w1_ref, b1_ref, w2_ref, b2_ref, w3_ref, b3_ref, out_ref):
        adj = adj_ref[0]                               # (G, n_pad, n_pad) bf16
        step = pl.program_id(0)

        def gcn_layer(h_bf, w_ref, b_ref):
            fin = h_bf.shape[-1]
            # per-graph A @ H (block-diagonal A -> batched small matmuls)
            ax = jnp.einsum('gij,gjf->gif', adj,
                            h_bf.reshape(g_pack, n_pad, fin),
                            preferred_element_type=jnp.float32)
            # (A@H) @ W over the full [G*n_pad, Fin] slab -> MXU-dense matmul
            h = jnp.dot(ax.reshape(rows, fin).astype(jnp.bfloat16), w_ref[...],
                        preferred_element_type=jnp.float32) + b_ref[...]
            return jnp.maximum(h, 0.0)

        h = gcn_layer(x_ref[0], w1_ref, b1_ref)                      # (rows, 128)
        h = gcn_layer(h.astype(jnp.bfloat16), w2_ref, b2_ref)        # (rows, 256)
        h = gcn_layer(h.astype(jnp.bfloat16), w3_ref, b3_ref)        # (rows, 384)

        # global max pool per graph; validity mask from scalar-prefetched counts
        h3 = h.reshape(g_pack, n_pad, F3_PAD)
        gid = lax.broadcasted_iota(jnp.int32, (g_pack, n_pad, 1), 0)
        nid = lax.broadcasted_iota(jnp.int32, (g_pack, n_pad, 1), 1)
        cnt = jnp.zeros((g_pack, n_pad, 1), jnp.int32)
        base = step * g_pack
        for g in range(g_pack):                      # small unrolled SMEM reads
            cnt = jnp.where(gid == g, counts_ref[base + g], cnt)
        masked = jnp.where(nid < cnt, h3, NEG_FILL)
        out_ref[0] = jnp.max(masked, axis=1)         # (G, 384) dense block store

    def resident(shape):
        # TODO(synk): pipeline_mode=pl.Buffered(1) would halve the ~290 KB of
        # weight double-buffering; omitted to keep lowering maximally portable.
        nd = len(shape)
        return pl.BlockSpec(shape, lambda i, c, nd=nd: (0,) * nd)

    return pl.pallas_call(
        kernel,
        grid_spec=pltpu.PrefetchScalarGridSpec(
            num_scalar_prefetch=1,
            grid=(num_steps,),
            in_specs=[
                pl.BlockSpec((1, g_pack, n_pad, n_pad), lambda i, c: (i, 0, 0, 0)),
                pl.BlockSpec((1, rows, F1_PAD), lambda i, c: (i, 0, 0)),
                resident(wc1.shape), resident(bc1.shape),
                resident(wc2.shape), resident(bc2.shape),
                resident(wc3.shape), resident(bc3.shape),
            ],
            out_specs=pl.BlockSpec((1, g_pack, F3_PAD), lambda i, c: (i, 0, 0)),
        ),
        out_shape=jax.ShapeDtypeStruct((num_steps, g_pack, F3_PAD), jnp.float32),
        compiler_params=pltpu.CompilerParams(
            dimension_semantics=("parallel",),
            vmem_limit_bytes=32 * 1024 * 1024),
    )(counts, adj_steps, x_steps, wc1, bc1, wc2, bc2, wc3, bc3)


# -----------------------------------------------------------------------------
# Kernel 2: fused MLP head
#   h = relu(x @ Wg1 + bg1); h = h @ Wg2 + bg2          (dropout = identity)
#   concat(h, t, p) @ W1  ==  h @ W1h + t*w1t + p*w1p   (VPU broadcast FMA)
#   z = relu(. + b1); z = relu(z @ W2 + b2); out = z @ Wo_pad + bo_pad
# -----------------------------------------------------------------------------
def head_kernel(x_ref, t_ref, p_ref,
                wg1_ref, bg1_ref, wg2_ref, bg2_ref,
                w1h_ref, w1t_ref, w1p_ref, b1_ref,
                w2_ref, b2_ref, wo_ref, bo_ref,
                out_ref):
    h = jnp.dot(x_ref[...], wg1_ref[...],
                preferred_element_type=jnp.float32) + bg1_ref[...]
    h = jnp.maximum(h, 0.0)
    # TODO(synk): dropout = identity (inference); training-mode RNG dropout not implemented.
    h = jnp.dot(h.astype(jnp.bfloat16), wg2_ref[...],
                preferred_element_type=jnp.float32) + bg2_ref[...]

    z = jnp.dot(h.astype(jnp.bfloat16), w1h_ref[...],
                preferred_element_type=jnp.float32)
    z = z + t_ref[...] * w1t_ref[...] + p_ref[...] * w1p_ref[...] + b1_ref[...]
    z = jnp.maximum(z, 0.0)

    z = jnp.dot(z.astype(jnp.bfloat16), w2_ref[...],
                preferred_element_type=jnp.float32) + b2_ref[...]
    z = jnp.maximum(z, 0.0)

    out_ref[...] = jnp.dot(z.astype(jnp.bfloat16), wo_ref[...],
                           preferred_element_type=jnp.float32) + bo_ref[...]


def mlp_head(x, t, p, pp):
    args = (x, t, p,
            pp["wg1"], pp["bg1"], pp["wg2"], pp["bg2"],
            pp["w1h"], pp["w1t"], pp["w1p"], pp["b1"],
            pp["w2"], pp["b2"], pp["wo"], pp["bo"])
    bp = x.shape[0]

    def full(shape):
        nd = len(shape)
        return pl.BlockSpec(shape, lambda i, nd=nd: (0,) * nd)

    return pl.pallas_call(
        head_kernel,
        grid=(1,),
        in_specs=[full(a.shape) for a in args],
        out_specs=full((bp, HEAD_OUT_PAD)),
        out_shape=jax.ShapeDtypeStruct((bp, HEAD_OUT_PAD), jnp.float32),
        compiler_params=pltpu.CompilerParams(
            dimension_semantics=("arbitrary",)),
    )(*args)


# -----------------------------------------------------------------------------
# Params, padding, per-graph block construction, forward
# -----------------------------------------------------------------------------
def init_params(key, n_output=1, num_features_xd=NUM_FEATURES_XD,
                output_dim=OUTPUT_DIM):
    ks = jax.random.split(key, 16)
    scale = 0.05

    def w(k, shape):
        return (scale * jax.random.normal(k, shape)).astype(jnp.float32)

    def b(k, n):
        return (scale * jax.random.normal(k, (1, n))).astype(jnp.float32)

    return {
        "wc1": w(ks[0], (num_features_xd, num_features_xd)),
        "bc1": b(ks[1], num_features_xd),
        "wc2": w(ks[2], (num_features_xd, num_features_xd * 2)),
        "bc2": b(ks[3], num_features_xd * 2),
        "wc3": w(ks[4], (num_features_xd * 2, num_features_xd * 4)),
        "bc3": b(ks[5], num_features_xd * 4),
        "wg1": w(ks[6], (num_features_xd * 4, 1024)),
        "bg1": b(ks[7], 1024),
        "wg2": w(ks[8], (1024, output_dim)),
        "bg2": b(ks[9], output_dim),
        "w1": w(ks[10], (output_dim + 2, 1024)),
        "b1": b(ks[11], 1024),
        "w2": w(ks[12], (1024, 512)),
        "b2": b(ks[13], 512),
        "wo": w(ks[14], (512, n_output)),
        "bo": b(ks[15], n_output),
    }


def _pad2(w, rows, cols):
    out = jnp.zeros((rows, cols), w.dtype)
    return out.at[:w.shape[0], :w.shape[1]].set(w)


def prepare_padded_params(params):
    bf = jnp.bfloat16
    return {
        "wc1": _pad2(params["wc1"], F1_PAD, F1_PAD).astype(bf),
        "bc1": _pad2(params["bc1"], 1, F1_PAD),
        "wc2": _pad2(params["wc2"], F1_PAD, F2_PAD).astype(bf),
        "bc2": _pad2(params["bc2"], 1, F2_PAD),
        "wc3": _pad2(params["wc3"], F2_PAD, F3_PAD).astype(bf),
        "bc3": _pad2(params["bc3"], 1, F3_PAD),
        "wg1": _pad2(params["wg1"], F3_PAD, 1024).astype(bf),
        "bg1": params["bg1"],
        "wg2": params["wg2"].astype(bf),
        "bg2": params["bg2"],
        "w1h": params["w1"][:OUTPUT_DIM, :].astype(bf),
        "w1t": params["w1"][OUTPUT_DIM:OUTPUT_DIM + 1, :],
        "w1p": params["w1"][OUTPUT_DIM + 1:OUTPUT_DIM + 2, :],
        "b1": params["b1"],
        "w2": params["w2"].astype(bf),
        "b2": params["b2"],
        "wo": _pad2(params["wo"], 512, HEAD_OUT_PAD).astype(bf),   # N=1 -> 128 lanes
        "bo": _pad2(params["bo"], 1, HEAD_OUT_PAD),
    }


@functools.partial(jax.jit, static_argnames=("num_graphs", "max_nodes"))
def gcn_net_forward(params, x, edge_index, batch, T, P, *, num_graphs,
                    max_nodes):
    # NOTE: assumes standard PyG batching (nodes of a graph are contiguous).
    n = x.shape[0]
    n_out = params["wo"].shape[1]
    pp = prepare_padded_params(params)

    # --- per-graph block geometry (bf16 sublane = 16; pack ~256 rows/step) ---
    n_pad = max(16, -(-max_nodes // 16) * 16)
    target_rows = 256
    g_pack = max(1, min(num_graphs, target_rows // max(1, n_pad)))
    num_steps = -(-num_graphs // g_pack)
    if num_steps == 1 and num_graphs > 1:      # keep >= 2 grid steps for v7x 2 TCs
        g_pack = -(-num_graphs // 2)
        num_steps = -(-num_graphs // g_pack)
    g_total = num_steps * g_pack
    rows = g_pack * n_pad

    batch = batch.astype(jnp.int32)
    gids = jnp.arange(num_graphs, dtype=jnp.int32)
    counts = jnp.sum(batch[None, :] == gids[:, None], axis=1).astype(jnp.int32)
    starts = (jnp.cumsum(counts) - counts).astype(jnp.int32)
    local = jnp.arange(n, dtype=jnp.int32) - starts[batch]
    counts_p = jnp.zeros((g_total,), jnp.int32).at[:num_graphs].set(counts)

    # --- normalized adjacency built directly as per-graph blocks (no dense A) -
    src = edge_index[0].astype(jnp.int32)
    dst = edge_index[1].astype(jnp.int32)
    eg = batch[src]
    adj = jnp.zeros((g_total, n_pad, n_pad), jnp.float32)
    adj = adj.at[eg, local[dst], local[src]].max(1.0)          # dedup multi-edges
    node_valid = (jnp.arange(n_pad, dtype=jnp.int32)[None, :]
                  < counts_p[:, None]).astype(jnp.float32)
    eye = jnp.eye(n_pad, dtype=jnp.float32)
    adj = jnp.maximum(adj, eye[None] * node_valid[:, :, None])  # remaining self-loops
    deg = jnp.sum(adj, axis=2)
    dinv = jnp.where(deg > 0.0, lax.rsqrt(jnp.maximum(deg, 1e-12)), 0.0)
    a_hat = (dinv[:, :, None] * adj * dinv[:, None, :]).astype(jnp.bfloat16)

    # --- node features, 78 -> 128 cols, scattered into per-graph blocks ------
    x_feat = (jnp.zeros((n, F1_PAD), jnp.bfloat16)
              .at[:, :NUM_FEATURES_XD].set(x.astype(jnp.bfloat16)))
    x_blocks = jnp.zeros((g_total, n_pad, F1_PAD), jnp.bfloat16)
    x_blocks = x_blocks.at[batch, local, :].set(x_feat)

    adj_steps = a_hat.reshape(num_steps, g_pack, n_pad, n_pad)
    x_steps = x_blocks.reshape(num_steps, rows, F1_PAD)

    # --- fused 3-layer GCN + global max pool (one pallas_call) ---------------
    pooled = fused_gcn_pool(counts_p, adj_steps, x_steps,
                            pp["wc1"], pp["bc1"], pp["wc2"], pp["bc2"],
                            pp["wc3"], pp["bc3"],
                            g_pack=g_pack, n_pad=n_pad)
    pooled = pooled.reshape(g_total, F3_PAD)[:num_graphs]

    # --- MLP head (batch padded to >= 8 rows, output lanes padded to 128) ----
    b_pad = max(8, -(-num_graphs // 8) * 8)
    pooled_p = jnp.zeros((b_pad, F3_PAD), jnp.float32).at[:num_graphs].set(pooled)
    t_p = jnp.zeros((b_pad, 1), jnp.float32).at[:num_graphs, 0].set(
        T.astype(jnp.float32))
    p_p = jnp.zeros((b_pad, 1), jnp.float32).at[:num_graphs, 0].set(
        P.astype(jnp.float32))

    out = mlp_head(pooled_p.astype(jnp.bfloat16), t_p, p_p, pp)
    return out[:num_graphs, :n_out]


if __name__ == "__main__":
    key = jax.random.PRNGKey(0)
    k_par, k_x, k_t, k_p = jax.random.split(key, 4)

    # small synthetic batch: 2 graphs, 8 nodes each (ring topology, undirected)
    num_graphs = 2
    nodes_per_graph = 8
    n = num_graphs * nodes_per_graph

    srcs, dsts = [], []
    for g in range(num_graphs):
        base = g * nodes_per_graph
        for i in range(nodes_per_graph):
            a = base + i
            b_ = base + (i + 1) % nodes_per_graph
            srcs += [a, b_]
            dsts += [b_, a]
    edge_index = jnp.array([srcs, dsts], dtype=jnp.int32)        # [2, 32]
    batch = jnp.repeat(jnp.arange(num_graphs, dtype=jnp.int32),
                       nodes_per_graph)                          # [16]

    x = jax.random.normal(k_x, (n, NUM_FEATURES_XD), dtype=jnp.float32)
    T = jax.random.normal(k_t, (num_graphs,), dtype=jnp.float32)
    P = jax.random.normal(k_p, (num_graphs,), dtype=jnp.float32)

    params = init_params(k_par)

    out = gcn_net_forward(params, x, edge_index, batch, T, P,
                          num_graphs=num_graphs, max_nodes=nodes_per_graph)
    jax.block_until_ready(out)
    assert out.shape == (num_graphs, 1)
    print("KERNEL_OK")
</pallas_src>

<mosaic_0001>
module attributes {stable_mosaic.version = 11 : i64} {
  func.func private @main(%arg0: i32) attributes {dimension_semantics = [#tpu.dimension_semantics<core_parallel>], iteration_bounds = array<i64: 2>, tpu.core_type = #tpu.core_type<sc_scalar_subcore>, window_params = []} {
    return
  }
}

module attributes {stable_mosaic.version = 11 : i64} {
  func.func private @main(%arg0: i32) attributes {dimension_semantics = [#tpu.dimension_semantics<core_parallel>], iteration_bounds = array<i64: 2>, tpu.core_type = #tpu.core_type<sc_scalar_subcore>, window_params = []} {
    return
  }
}

module attributes {stable_mosaic.version = 11 : i64} {
  func.func @head_kernel(%arg0: i32, %arg1: memref<8x384xbf16, #tpu.memory_space<vmem>>, %arg2: memref<8x1xf32, #tpu.memory_space<vmem>>, %arg3: memref<8x1xf32, #tpu.memory_space<vmem>>, %arg4: memref<384x1024xbf16, #tpu.memory_space<vmem>>, %arg5: memref<1x1024xf32, #tpu.memory_space<vmem>>, %arg6: memref<1024x128xbf16, #tpu.memory_space<vmem>>, %arg7: memref<1x128xf32, #tpu.memory_space<vmem>>, %arg8: memref<128x1024xbf16, #tpu.memory_space<vmem>>, %arg9: memref<1x1024xf32, #tpu.memory_space<vmem>>, %arg10: memref<1x1024xf32, #tpu.memory_space<vmem>>, %arg11: memref<1x1024xf32, #tpu.memory_space<vmem>>, %arg12: memref<1024x512xbf16, #tpu.memory_space<vmem>>, %arg13: memref<1x512xf32, #tpu.memory_space<vmem>>, %arg14: memref<512x128xbf16, #tpu.memory_space<vmem>>, %arg15: memref<1x128xf32, #tpu.memory_space<vmem>>, %arg16: memref<8x128xf32, #tpu.memory_space<vmem>>) attributes {dimension_semantics = [#tpu.dimension_semantics<arbitrary>], iteration_bounds = array<i64: 1>, scalar_prefetch = 0 : i64, scratch_operands = 0 : i64, tpu.core_type = #tpu.core_type<tc>, window_params = [{pipeline_mode = #tpu.pipeline_mode<synchronous>, transform_indices = @transform_0, window_bounds = array<i64: 8, 384>}, {pipeline_mode = #tpu.pipeline_mode<synchronous>, transform_indices = @transform_1, window_bounds = array<i64: 8, 1>}, {pipeline_mode = #tpu.pipeline_mode<synchronous>, transform_indices = @transform_2, window_bounds = array<i64: 8, 1>}, {pipeline_mode = #tpu.pipeline_mode<synchronous>, transform_indices = @transform_3, window_bounds = array<i64: 384, 1024>}, {pipeline_mode = #tpu.pipeline_mode<synchronous>, transform_indices = @transform_4, window_bounds = array<i64: 1, 1024>}, {pipeline_mode = #tpu.pipeline_mode<synchronous>, transform_indices = @transform_5, window_bounds = array<i64: 1024, 128>}, {pipeline_mode = #tpu.pipeline_mode<synchronous>, transform_indices = @transform_6, window_bounds = array<i64: 1, 128>}, {pipeline_mode = #tpu.pipeline_mode<synchronous>, transform_indices = @transform_7, window_bounds = array<i64: 128, 1024>}, {pipeline_mode = #tpu.pipeline_mode<synchronous>, transform_indices = @transform_8, window_bounds = array<i64: 1, 1024>}, {pipeline_mode = #tpu.pipeline_mode<synchronous>, transform_indices = @transform_9, window_bounds = array<i64: 1, 1024>}, {pipeline_mode = #tpu.pipeline_mode<synchronous>, transform_indices = @transform_10, window_bounds = array<i64: 1, 1024>}, {pipeline_mode = #tpu.pipeline_mode<synchronous>, transform_indices = @transform_11, window_bounds = array<i64: 1024, 512>}, {pipeline_mode = #tpu.pipeline_mode<synchronous>, transform_indices = @transform_12, window_bounds = array<i64: 1, 512>}, {pipeline_mode = #tpu.pipeline_mode<synchronous>, transform_indices = @transform_13, window_bounds = array<i64: 512, 128>}, {pipeline_mode = #tpu.pipeline_mode<synchronous>, transform_indices = @transform_14, window_bounds = array<i64: 1, 128>}, {pipeline_mode = #tpu.pipeline_mode<synchronous>, transform_indices = @transform_15, window_bounds = array<i64: 8, 128>}]} {
    %c0 = arith.constant 0 : index
    %c0_0 = arith.constant 0 : index
    %0 = vector.load %arg1[%c0, %c0_0] : memref<8x384xbf16, #tpu.memory_space<vmem>>, vector<8x384xbf16>
    %c0_1 = arith.constant 0 : index
    %c0_2 = arith.constant 0 : index
    %1 = vector.load %arg4[%c0_1, %c0_2] : memref<384x1024xbf16, #tpu.memory_space<vmem>>, vector<384x1024xbf16>
    %cst = arith.constant dense<0.000000e+00> : vector<8x1024xf32>
    %2 = tpu.matmul %0, %1, %cst {dimension_numbers = #tpu.dot_dimension_numbers<[1], [0], [0], [1], [0, 0, 1, 1], [], []>} : vector<8x384xbf16>, vector<384x1024xbf16>, vector<8x1024xf32> -> vector<8x1024xf32>
    %c0_3 = arith.constant 0 : index
    %c0_4 = arith.constant 0 : index
    %3 = vector.load %arg5[%c0_3, %c0_4] : memref<1x1024xf32, #tpu.memory_space<vmem>>, vector<1x1024xf32>
    %4 = vector.broadcast %3 : vector<1x1024xf32> to vector<8x1024xf32>
    %5 = arith.addf %2, %4 : vector<8x1024xf32>
    %cst_5 = arith.constant 0.000000e+00 : f32
    %6 = vector.broadcast %cst_5 : f32 to vector<8x1024xf32>
    %7 = arith.maximumf %5, %6 : vector<8x1024xf32>
    %8 = arith.truncf %7 : vector<8x1024xf32> to vector<8x1024xbf16>
    %c0_6 = arith.constant 0 : index
    %c0_7 = arith.constant 0 : index
    %9 = vector.load %arg6[%c0_6, %c0_7] : memref<1024x128xbf16, #tpu.memory_space<vmem>>, vector<1024x128xbf16>
    %cst_8 = arith.constant dense<0.000000e+00> : vector<8x128xf32>
    %10 = tpu.matmul %8, %9, %cst_8 {dimension_numbers = #tpu.dot_dimension_numbers<[1], [0], [0], [1], [0, 0, 1, 1], [], []>} : vector<8x1024xbf16>, vector<1024x128xbf16>, vector<8x128xf32> -> vector<8x128xf32>
    %c0_9 = arith.constant 0 : index
    %c0_10 = arith.constant 0 : index
    %11 = vector.load %arg7[%c0_9, %c0_10] : memref<1x128xf32, #tpu.memory_space<vmem>>, vector<1x128xf32>
    %12 = vector.broadcast %11 : vector<1x128xf32> to vector<8x128xf32>
    %13 = arith.addf %10, %12 : vector<8x128xf32>
    %14 = arith.truncf %13 : vector<8x128xf32> to vector<8x128xbf16>
    %c0_11 = arith.constant 0 : index
    %c0_12 = arith.constant 0 : index
    %15 = vector.load %arg8[%c0_11, %c0_12] : memref<128x1024xbf16, #tpu.memory_space<vmem>>, vector<128x1024xbf16>
    %cst_13 = arith.constant dense<0.000000e+00> : vector<8x1024xf32>
    %16 = tpu.matmul %14, %15, %cst_13 {dimension_numbers = #tpu.dot_dimension_numbers<[1], [0], [0], [1], [0, 0, 1, 1], [], []>} : vector<8x128xbf16>, vector<128x1024xbf16>, vector<8x1024xf32> -> vector<8x1024xf32>
    %c0_14 = arith.constant 0 : index
    %c0_15 = arith.constant 0 : index
    %17 = vector.load %arg2[%c0_14, %c0_15] : memref<8x1xf32, #tpu.memory_space<vmem>>, vector<8x1xf32>
    %c0_16 = arith.constant 0 : index
    %c0_17 = arith.constant 0 : index
    %18 = vector.load %arg9[%c0_16, %c0_17] : memref<1x1024xf32, #tpu.memory_space<vmem>>, vector<1x1024xf32>
    %19 = vector.broadcast %17 : vector<8x1xf32> to vector<8x1024xf32>
    %20 = vector.broadcast %18 : vector<1x1024xf32> to vector<8x1024xf32>
    %21 = arith.mulf %19, %20 : vector<8x1024xf32>
    %22 = arith.addf %16, %21 : vector<8x1024xf32>
    %c0_18 = arith.constant 0 : index
    %c0_19 = arith.constant 0 : index
    %23 = vector.load %arg3[%c0_18, %c0_19] : memref<8x1xf32, #tpu.memory_space<vmem>>, vector<8x1xf32>
    %c0_20 = arith.constant 0 : index
    %c0_21 = arith.constant 0 : index
    %24 = vector.load %arg10[%c0_20, %c0_21] : memref<1x1024xf32, #tpu.memory_space<vmem>>, vector<1x1024xf32>
    %25 = vector.broadcast %23 : vector<8x1xf32> to vector<8x1024xf32>
    %26 = vector.broadcast %24 : vector<1x1024xf32> to vector<8x1024xf32>
    %27 = arith.mulf %25, %26 : vector<8x1024xf32>
    %28 = arith.addf %22, %27 : vector<8x1024xf32>
    %c0_22 = arith.constant 0 : index
    %c0_23 = arith.constant 0 : index
    %29 = vector.load %arg11[%c0_22, %c0_23] : memref<1x1024xf32, #tpu.memory_space<vmem>>, vector<1x1024xf32>
    %30 = vector.broadcast %29 : vector<1x1024xf32> to vector<8x1024xf32>
    %31 = arith.addf %28, %30 : vector<8x1024xf32>
    %cst_24 = arith.constant 0.000000e+00 : f32
    %32 = vector.broadcast %cst_24 : f32 to vector<8x1024xf32>
    %33 = arith.maximumf %31, %32 : vector<8x1024xf32>
    %34 = arith.truncf %33 : vector<8x1024xf32> to vector<8x1024xbf16>
    %c0_25 = arith.constant 0 : index
    %c0_26 = arith.constant 0 : index
    %35 = vector.load %arg12[%c0_25, %c0_26] : memref<1024x512xbf16, #tpu.memory_space<vmem>>, vector<1024x512xbf16>
    %cst_27 = arith.constant dense<0.000000e+00> : vector<8x512xf32>
    %36 = tpu.matmul %34, %35, %cst_27 {dimension_numbers = #tpu.dot_dimension_numbers<[1], [0], [0], [1], [0, 0, 1, 1], [], []>} : vector<8x1024xbf16>, vector<1024x512xbf16>, vector<8x512xf32> -> vector<8x512xf32>
    %c0_28 = arith.constant 0 : index
    %c0_29 = arith.constant 0 : index
    %37 = vector.load %arg13[%c0_28, %c0_29] : memref<1x512xf32, #tpu.memory_space<vmem>>, vector<1x512xf32>
    %38 = vector.broadcast %37 : vector<1x512xf32> to vector<8x512xf32>
    %39 = arith.addf %36, %38 : vector<8x512xf32>
    %cst_30 = arith.constant 0.000000e+00 : f32
    %40 = vector.broadcast %cst_30 : f32 to vector<8x512xf32>
    %41 = arith.maximumf %39, %40 : vector<8x512xf32>
    %42 = arith.truncf %41 : vector<8x512xf32> to vector<8x512xbf16>
    %c0_31 = arith.constant 0 : index
    %c0_32 = arith.constant 0 : index
    %43 = vector.load %arg14[%c0_31, %c0_32] : memref<512x128xbf16, #tpu.memory_space<vmem>>, vector<512x128xbf16>
    %cst_33 = arith.constant dense<0.000000e+00> : vector<8x128xf32>
    %44 = tpu.matmul %42, %43, %cst_33 {dimension_numbers = #tpu.dot_dimension_numbers<[1], [0], [0], [1], [0, 0, 1, 1], [], []>} : vector<8x512xbf16>, vector<512x128xbf16>, vector<8x128xf32> -> vector<8x128xf32>
    %c0_34 = arith.constant 0 : index
    %c0_35 = arith.constant 0 : index
    %45 = vector.load %arg15[%c0_34, %c0_35] : memref<1x128xf32, #tpu.memory_space<vmem>>, vector<1x128xf32>
    %46 = vector.broadcast %45 : vector<1x128xf32> to vector<8x128xf32>
    %47 = arith.addf %44, %46 : vector<8x128xf32>
    %c0_36 = arith.constant 0 : index
    %c0_37 = arith.constant 0 : index
    %48 = vector.load %arg16[%c0_36, %c0_37] : memref<8x128xf32, #tpu.memory_space<vmem>>, vector<8x128xf32>
    tpu.vector_store %arg16[%c0_36, %c0_37], %47 {strides = array<i32>} : memref<8x128xf32, #tpu.memory_space<vmem>>, vector<8x128xf32>,
    return
  }
  func.func @transform_0(%arg0: i32) -> (i32, i32) {
    %c0_i32 = arith.constant 0 : i32
    %c0_i32_0 = arith.constant 0 : i32
    %c0_i32_1 = arith.constant 0 : i32
    return %c0_i32, %c0_i32_0 : i32, i32
  }
  func.func @transform_1(%arg0: i32) -> (i32, i32) {
    %c0_i32 = arith.constant 0 : i32
    %c0_i32_0 = arith.constant 0 : i32
    %c0_i32_1 = arith.constant 0 : i32
    return %c0_i32, %c0_i32_0 : i32, i32
  }
  func.func @transform_2(%arg0: i32) -> (i32, i32) {
    %c0_i32 = arith.constant 0 : i32
    %c0_i32_0 = arith.constant 0 : i32
    %c0_i32_1 = arith.constant 0 : i32
    return %c0_i32, %c0_i32_0 : i32, i32
  }
  func.func @transform_3(%arg0: i32) -> (i32, i32) {
    %c0_i32 = arith.constant 0 : i32
    %c0_i32_0 = arith.constant 0 : i32
    %c0_i32_1 = arith.constant 0 : i32
    return %c0_i32, %c0_i32_0 : i32, i32
  }
  func.func @transform_4(%arg0: i32) -> (i32, i32) {
    %c0_i32 = arith.constant 0 : i32
    %c0_i32_0 = arith.constant 0 : i32
    %c0_i32_1 = arith.constant 0 : i32
    return %c0_i32, %c0_i32_0 : i32, i32
  }
  func.func @transform_5(%arg0: i32) -> (i32, i32) {
    %c0_i32 = arith.constant 0 : i32
    %c0_i32_0 = arith.constant 0 : i32
    %c0_i32_1 = arith.constant 0 : i32
    return %c0_i32, %c0_i32_0 : i32, i32
  }
  func.func @transform_6(%arg0: i32) -> (i32, i32) {
    %c0_i32 = arith.constant 0 : i32
    %c0_i32_0 = arith.constant 0 : i32
    %c0_i32_1 = arith.constant 0 : i32
    return %c0_i32, %c0_i32_0 : i32, i32
  }
  func.func @transform_7(%arg0: i32) -> (i32, i32) {
    %c0_i32 = arith.constant 0 : i32
    %c0_i32_0 = arith.constant 0 : i32
    %c0_i32_1 = arith.constant 0 : i32
    return %c0_i32, %c0_i32_0 : i32, i32
  }
  func.func @transform_8(%arg0: i32) -> (i32, i32) {
    %c0_i32 = arith.constant 0 : i32
    %c0_i32_0 = arith.constant 0 : i32
    %c0_i32_1 = arith.constant 0 : i32
    return %c0_i32, %c0_i32_0 : i32, i32
  }
  func.func @transform_9(%arg0: i32) -> (i32, i32) {
    %c0_i32 = arith.constant 0 : i32
    %c0_i32_0 = arith.constant 0 : i32
    %c0_i32_1 = arith.constant 0 : i32
    return %c0_i32, %c0_i32_0 : i32, i32
  }
  func.func @transform_10(%arg0: i32) -> (i32, i32) {
    %c0_i32 = arith.constant 0 : i32
    %c0_i32_0 = arith.constant 0 : i32
    %c0_i32_1 = arith.constant 0 : i32
    return %c0_i32, %c0_i32_0 : i32, i32
  }
  func.func @transform_11(%arg0: i32) -> (i32, i32) {
    %c0_i32 = arith.constant 0 : i32
    %c0_i32_0 = arith.constant 0 : i32
    %c0_i32_1 = arith.constant 0 : i32
    return %c0_i32, %c0_i32_0 : i32, i32
  }
  func.func @transform_12(%arg0: i32) -> (i32, i32) {
    %c0_i32 = arith.constant 0 : i32
    %c0_i32_0 = arith.constant 0 : i32
    %c0_i32_1 = arith.constant 0 : i32
    return %c0_i32, %c0_i32_0 : i32, i32
  }
  func.func @transform_13(%arg0: i32) -> (i32, i32) {
    %c0_i32 = arith.constant 0 : i32
    %c0_i32_0 = arith.constant 0 : i32
    %c0_i32_1 = arith.constant 0 : i32
    return %c0_i32, %c0_i32_0 : i32, i32
  }
  func.func @transform_14(%arg0: i32) -> (i32, i32) {
    %c0_i32 = arith.constant 0 : i32
    %c0_i32_0 = arith.constant 0 : i32
    %c0_i32_1 = arith.constant 0 : i32
    return %c0_i32, %c0_i32_0 : i32, i32
  }
  func.func @transform_15(%arg0: i32) -> (i32, i32) {
    %c0_i32 = arith.constant 0 : i32
    %c0_i32_0 = arith.constant 0 : i32
    %c0_i32_1 = arith.constant 0 : i32
    return %c0_i32, %c0_i32_0 : i32, i32
  }
}

module attributes {stable_mosaic.version = 11 : i64} {
  func.func @kernel(%arg0: i32, %arg1: memref<2xi32, #tpu.memory_space<smem>>, %arg2: memref<1x1x16x16xbf16, #tpu.memory_space<vmem>>, %arg3: memref<1x16x128xbf16, #tpu.memory_space<vmem>>, %arg4: memref<128x128xbf16, #tpu.memory_space<vmem>>, %arg5: memref<1x128xf32, #tpu.memory_space<vmem>>, %arg6: memref<128x256xbf16, #tpu.memory_space<vmem>>, %arg7: memref<1x256xf32, #tpu.memory_space<vmem>>, %arg8: memref<256x384xbf16, #tpu.memory_space<vmem>>, %arg9: memref<1x384xf32, #tpu.memory_space<vmem>>, %arg10: memref<1x1x384xf32, #tpu.memory_space<vmem>>) attributes {dimension_semantics = [#tpu.dimension_semantics<parallel>], iteration_bounds = array<i64: 2>, scalar_prefetch = 1 : i64, scratch_operands = 0 : i64, tpu.core_type = #tpu.core_type<tc>, window_params = [{transform_indices = @transform_0, window_bounds = array<i64: 1, 1, 16, 16>}, {transform_indices = @transform_1, window_bounds = array<i64: 1, 16, 128>}, {pipeline_mode = #tpu.pipeline_mode<synchronous>, transform_indices = @transform_2, window_bounds = array<i64: 128, 128>}, {pipeline_mode = #tpu.pipeline_mode<synchronous>, transform_indices = @transform_3, window_bounds = array<i64: 1, 128>}, {pipeline_mode = #tpu.pipeline_mode<synchronous>, transform_indices = @transform_4, window_bounds = array<i64: 128, 256>}, {pipeline_mode = #tpu.pipeline_mode<synchronous>, transform_indices = @transform_5, window_bounds = array<i64: 1, 256>}, {pipeline_mode = #tpu.pipeline_mode<synchronous>, transform_indices = @transform_6, window_bounds = array<i64: 256, 384>}, {pipeline_mode = #tpu.pipeline_mode<synchronous>, transform_indices = @transform_7, window_bounds = array<i64: 1, 384>}, {transform_indices = @transform_8, window_bounds = array<i64: 1, 1, 384>}]} {
    %c0 = arith.constant 0 : index
    %c0_0 = arith.constant 0 : index
    %c0_1 = arith.constant 0 : index
    %c0_2 = arith.constant 0 : index
    %0 = vector.load %arg2[%c0, %c0_0, %c0_1, %c0_2] : memref<1x1x16x16xbf16, #tpu.memory_space<vmem>>, vector<1x1x16x16xbf16>
    %1 = vector.shape_cast %0 : vector<1x1x16x16xbf16> to vector<1x16x16xbf16>
    %c0_3 = arith.constant 0 : index
    %c0_4 = arith.constant 0 : index
    %c0_5 = arith.constant 0 : index
    %2 = vector.load %arg3[%c0_3, %c0_4, %c0_5] : memref<1x16x128xbf16, #tpu.memory_space<vmem>>, vector<1x16x128xbf16>
    %3 = vector.shape_cast %2 : vector<1x16x128xbf16> to vector<16x128xbf16>
    %4 = vector.shape_cast %3 : vector<16x128xbf16> to vector<1x16x128xbf16>
    "tpu.trace_start"() <{level = 10 : i32, message = "gij,gjf->gif"}> : () -> ()
    %cst = arith.constant dense<0.000000e+00> : vector<1x16x128xf32>
    %5 = tpu.matmul %1, %4, %cst {dimension_numbers = #tpu.dot_dimension_numbers<[2], [1], [1], [2], [0, 0, 0, 1, 1, 2], [0], [0]>} : vector<1x16x16xbf16>, vector<1x16x128xbf16>, vector<1x16x128xf32> -> vector<1x16x128xf32>
    "tpu.trace_stop"() : () -> ()
    %6 = vector.shape_cast %5 : vector<1x16x128xf32> to vector<16x128xf32>
    %7 = arith.truncf %6 : vector<16x128xf32> to vector<16x128xbf16>
    %c0_6 = arith.constant 0 : index
    %c0_7 = arith.constant 0 : index
    %8 = vector.load %arg4[%c0_6, %c0_7] : memref<128x128xbf16, #tpu.memory_space<vmem>>, vector<128x128xbf16>
    %cst_8 = arith.constant dense<0.000000e+00> : vector<16x128xf32>
    %9 = tpu.matmul %7, %8, %cst_8 {dimension_numbers = #tpu.dot_dimension_numbers<[1], [0], [0], [1], [0, 0, 1, 1], [], []>} : vector<16x128xbf16>, vector<128x128xbf16>, vector<16x128xf32> -> vector<16x128xf32>
    %c0_9 = arith.constant 0 : index
    %c0_10 = arith.constant 0 : index
    %10 = vector.load %arg5[%c0_9, %c0_10] : memref<1x128xf32, #tpu.memory_space<vmem>>, vector<1x128xf32>
    %11 = vector.broadcast %10 : vector<1x128xf32> to vector<16x128xf32>
    %12 = arith.addf %9, %11 : vector<16x128xf32>
    %cst_11 = arith.constant 0.000000e+00 : f32
    %13 = vector.broadcast %cst_11 : f32 to vector<16x128xf32>
    %14 = arith.maximumf %12, %13 : vector<16x128xf32>
    %15 = arith.truncf %14 : vector<16x128xf32> to vector<16x128xbf16>
    %16 = vector.shape_cast %15 : vector<16x128xbf16> to vector<1x16x128xbf16>
    "tpu.trace_start"() <{level = 10 : i32, message = "gij,gjf->gif"}> : () -> ()
    %cst_12 = arith.constant dense<0.000000e+00> : vector<1x16x128xf32>
    %17 = tpu.matmul %1, %16, %cst_12 {dimension_numbers = #tpu.dot_dimension_numbers<[2], [1], [1], [2], [0, 0, 0, 1, 1, 2], [0], [0]>} : vector<1x16x16xbf16>, vector<1x16x128xbf16>, vector<1x16x128xf32> -> vector<1x16x128xf32>
    "tpu.trace_stop"() : () -> ()
    %18 = vector.shape_cast %17 : vector<1x16x128xf32> to vector<16x128xf32>
    %19 = arith.truncf %18 : vector<16x128xf32> to vector<16x128xbf16>
    %c0_13 = arith.constant 0 : index
    %c0_14 = arith.constant 0 : index
    %20 = vector.load %arg6[%c0_13, %c0_14] : memref<128x256xbf16, #tpu.memory_space<vmem>>, vector<128x256xbf16>
    %cst_15 = arith.constant dense<0.000000e+00> : vector<16x256xf32>
    %21 = tpu.matmul %19, %20, %cst_15 {dimension_numbers = #tpu.dot_dimension_numbers<[1], [0], [0], [1], [0, 0, 1, 1], [], []>} : vector<16x128xbf16>, vector<128x256xbf16>, vector<16x256xf32> -> vector<16x256xf32>
    %c0_16 = arith.constant 0 : index
    %c0_17 = arith.constant 0 : index
    %22 = vector.load %arg7[%c0_16, %c0_17] : memref<1x256xf32, #tpu.memory_space<vmem>>, vector<1x256xf32>
    %23 = vector.broadcast %22 : vector<1x256xf32> to vector<16x256xf32>
    %24 = arith.addf %21, %23 : vector<16x256xf32>
    %cst_18 = arith.constant 0.000000e+00 : f32
    %25 = vector.broadcast %cst_18 : f32 to vector<16x256xf32>
    %26 = arith.maximumf %24, %25 : vector<16x256xf32>
    %27 = arith.truncf %26 : vector<16x256xf32> to vector<16x256xbf16>
    %28 = vector.shape_cast %27 : vector<16x256xbf16> to vector<1x16x256xbf16>
    "tpu.trace_start"() <{level = 10 : i32, message = "gij,gjf->gif"}> : () -> ()
    %cst_19 = arith.constant dense<0.000000e+00> : vector<1x16x256xf32>
    %29 = tpu.matmul %1, %28, %cst_19 {dimension_numbers = #tpu.dot_dimension_numbers<[2], [1], [1], [2], [0, 0, 0, 1, 1, 2], [0], [0]>} : vector<1x16x16xbf16>, vector<1x16x256xbf16>, vector<1x16x256xf32> -> vector<1x16x256xf32>
    "tpu.trace_stop"() : () -> ()
    %30 = vector.shape_cast %29 : vector<1x16x256xf32> to vector<16x256xf32>
    %31 = arith.truncf %30 : vector<16x256xf32> to vector<16x256xbf16>
    %c0_20 = arith.constant 0 : index
    %c0_21 = arith.constant 0 : index
    %32 = vector.load %arg8[%c0_20, %c0_21] : memref<256x384xbf16, #tpu.memory_space<vmem>>, vector<256x384xbf16>
    %cst_22 = arith.constant dense<0.000000e+00> : vector<16x384xf32>
    %33 = tpu.matmul %31, %32, %cst_22 {dimension_numbers = #tpu.dot_dimension_numbers<[1], [0], [0], [1], [0, 0, 1, 1], [], []>} : vector<16x256xbf16>, vector<256x384xbf16>, vector<16x384xf32> -> vector<16x384xf32>
    %c0_23 = arith.constant 0 : index
    %c0_24 = arith.constant 0 : index
    %34 = vector.load %arg9[%c0_23, %c0_24] : memref<1x384xf32, #tpu.memory_space<vmem>>, vector<1x384xf32>
    %35 = vector.broadcast %34 : vector<1x384xf32> to vector<16x384xf32>
    %36 = arith.addf %33, %35 : vector<16x384xf32>
    %cst_25 = arith.constant 0.000000e+00 : f32
    %37 = vector.broadcast %cst_25 : f32 to vector<16x384xf32>
    %38 = arith.maximumf %36, %37 : vector<16x384xf32>
    %39 = vector.shape_cast %38 : vector<16x384xf32> to vector<1x16x384xf32>
    %40 = tpu.iota {dimensions = array<i32: 0>} : vector<1x16x1xi32>
    %41 = tpu.iota {dimensions = array<i32: 1>} : vector<1x16x1xi32>
    %c0_i32 = arith.constant 0 : i32
    %42 = vector.broadcast %c0_i32 : i32 to vector<1x16x1xi32>
    %c1_i32 = arith.constant 1 : i32
    %43 = arith.muli %arg0, %c1_i32 : i32
    %c0_i32_26 = arith.constant 0 : i32
    %44 = vector.broadcast %c0_i32_26 : i32 to vector<1x16x1xi32>
    %45 = arith.cmpi eq, %40, %44 : vector<1x16x1xi32>
    %c0_i32_27 = arith.constant 0 : i32
    %46 = arith.addi %43, %c0_i32_27 : i32
    %47 = arith.index_cast %46 : i32 to index
    %48 = memref.load %arg1[%47] : memref<2xi32, #tpu.memory_space<smem>>
    %49 = vector.broadcast %48 : i32 to vector<1x16x1xi32>
    %50 = arith.select %45, %49, %42 : vector<1x16x1xi1>, vector<1x16x1xi32>
    %51 = arith.cmpi slt, %41, %50 : vector<1x16x1xi32>
    %cst_28 = arith.constant -1.000000e+30 : f32
    %52 = vector.shape_cast %51 : vector<1x16x1xi1> to vector<1x16x1xi1>
    %53 = vector.broadcast %52 : vector<1x16x1xi1> to vector<1x16x384xi1>
    %54 = vector.broadcast %cst_28 : f32 to vector<1x16x384xf32>
    %55 = arith.select %53, %39, %54 : vector<1x16x384xi1>, vector<1x16x384xf32>
    %cst_29 = arith.constant dense<0xFF800000> : vector<1x384xf32>
    %56 = vector.multi_reduction <maximumf>, %55, %cst_29 [1] : vector<1x16x384xf32> to vector<1x384xf32>
    %c0_30 = arith.constant 0 : index
    %c0_31 = arith.constant 0 : index
    %c0_32 = arith.constant 0 : index
    %57 = vector.load %arg10[%c0_30, %c0_31, %c0_32] : memref<1x1x384xf32, #tpu.memory_space<vmem>>, vector<1x1x384xf32>
    %58 = vector.shape_cast %57 : vector<1x1x384xf32> to vector<1x384xf32>
    %59 = vector.shape_cast %56 : vector<1x384xf32> to vector<1x1x384xf32>
    tpu.vector_store %arg10[%c0_30, %c0_31, %c0_32], %59 {strides = array<i32>} : memref<1x1x384xf32, #tpu.memory_space<vmem>>, vector<1x1x384xf32>,
    return
  }
  func.func @transform_0(%arg0: i32, %arg1: memref<2xi32, #tpu.memory_space<smem>>) -> (i32, i32, i32, i32) {
    %c0_i32 = arith.constant 0 : i32
    %c0_i32_0 = arith.constant 0 : i32
    %c0_i32_1 = arith.constant 0 : i32
    %c0_i32_2 = arith.constant 0 : i32
    return %arg0, %c0_i32, %c0_i32_0, %c0_i32_1 : i32, i32, i32, i32
  }
  func.func @transform_1(%arg0: i32, %arg1: memref<2xi32, #tpu.memory_space<smem>>) -> (i32, i32, i32) {
    %c0_i32 = arith.constant 0 : i32
    %c0_i32_0 = arith.constant 0 : i32
    %c0_i32_1 = arith.constant 0 : i32
    return %arg0, %c0_i32, %c0_i32_0 : i32, i32, i32
  }
  func.func @transform_2(%arg0: i32, %arg1: memref<2xi32, #tpu.memory_space<smem>>) -> (i32, i32) {
    %c0_i32 = arith.constant 0 : i32
    %c0_i32_0 = arith.constant 0 : i32
    %c0_i32_1 = arith.constant 0 : i32
    return %c0_i32, %c0_i32_0 : i32, i32
  }
  func.func @transform_3(%arg0: i32, %arg1: memref<2xi32, #tpu.memory_space<smem>>) -> (i32, i32) {
    %c0_i32 = arith.constant 0 : i32
    %c0_i32_0 = arith.constant 0 : i32
    %c0_i32_1 = arith.constant 0 : i32
    return %c0_i32, %c0_i32_0 : i32, i32
  }
  func.func @transform_4(%arg0: i32, %arg1: memref<2xi32, #tpu.memory_space<smem>>) -> (i32, i32) {
    %c0_i32 = arith.constant 0 : i32
    %c0_i32_0 = arith.constant 0 : i32
    %c0_i32_1 = arith.constant 0 : i32
    return %c0_i32, %c0_i32_0 : i32, i32
  }
  func.func @transform_5(%arg0: i32, %arg1: memref<2xi32, #tpu.memory_space<smem>>) -> (i32, i32) {
    %c0_i32 = arith.constant 0 : i32
    %c0_i32_0 = arith.constant 0 : i32
    %c0_i32_1 = arith.constant 0 : i32
    return %c0_i32, %c0_i32_0 : i32, i32
  }
  func.func @transform_6(%arg0: i32, %arg1: memref<2xi32, #tpu.memory_space<smem>>) -> (i32, i32) {
    %c0_i32 = arith.constant 0 : i32
    %c0_i32_0 = arith.constant 0 : i32
    %c0_i32_1 = arith.constant 0 : i32
    return %c0_i32, %c0_i32_0 : i32, i32
  }
  func.func @transform_7(%arg0: i32, %arg1: memref<2xi32, #tpu.memory_space<smem>>) -> (i32, i32) {
    %c0_i32 = arith.constant 0 : i32
    %c0_i32_0 = arith.constant 0 : i32
    %c0_i32_1 = arith.constant 0 : i32
    return %c0_i32, %c0_i32_0 : i32, i32
  }
  func.func @transform_8(%arg0: i32, %arg1: memref<2xi32, #tpu.memory_space<smem>>) -> (i32, i32, i32) {
    %c0_i32 = arith.constant 0 : i32
    %c0_i32_0 = arith.constant 0 : i32
    %c0_i32_1 = arith.constant 0 : i32
    return %arg0, %c0_i32, %c0_i32_0 : i32, i32, i32
  }
}

</mosaic_0001>

<bundles_post_ra>
// kernel: gcn_net_forward.2
= control target key start
LH: loop header
LB: loop body
LE: loop exit
PB: predicated region body
PF: predicated region fallthrough
CT: control target
= control target key end

     0   :  { %s1967_s0 = inlined_call_operand.vmem [shape: s32[2], index: 0, kind: input, shape index: {}]   ;;  %s1968_s1 = inlined_call_operand.vmem [shape: bf16[2,1,16,16], index: 1, kind: input, shape index: {}]   ;;  %s1969_s2 = inlined_call_operand.vmem [shape: bf16[2,16,128], index: 2, kind: input, shape index: {}]   ;;  %s1970_s3 = inlined_call_operand.vmem [shape: bf16[128,128], index: 3, kind: input, shape index: {}]   ;;  %s1971_s4 = inlined_call_operand.vmem [shape: f32[1,128], index: 4, kind: input, shape index: {}]   ;;  %s1972_s5 = inlined_call_operand.vmem [shape: bf16[128,256], index: 5, kind: input, shape index: {}]   ;;  %s1973_s6 = inlined_call_operand.vmem [shape: f32[1,256], index: 6, kind: input, shape index: {}]   ;;  %s1974_s7 = inlined_call_operand.vmem [shape: bf16[256,384], index: 7, kind: input, shape index: {}]   ;;  %s1975_s8 = inlined_call_operand.vmem [shape: f32[1,384], index: 8, kind: input, shape index: {}]   ;;  %s1976_s9 = inlined_call_operand.vmem [shape: f32[2,1,384], index: 9, kind: output, shape index: {}]  }
   0x1   :  { %s14_s11 = sshll.u32 %s1967_s0, 4  ;;  %s15_s11 = int_to_ptr.vmem [resolvable:$true] %s14_s11 }
   0x2   :  { %s1584_s12 = scalar_lea.vmem %s15_s11, 16  ;;  %p1589_p1 = scmp.lt.s32.totalorder %s15_s11, %s15_s11 }
   0x3   :  { %p1585_p0 = scmp.ne.s32.totalorder %s15_s11, %s1584_s12  ;;  %p1590_p2 = scmp.lt.s32.totalorder %s1584_s12, %s1584_s12 }
   0x5   :  { %p1591_p3 = por %p1590_p2, %p1589_p1 }
   0x7   :  { %p1592_p4 = pnand %p1591_p3, %p1585_p0 }
   0x9   :  { %1595 = shalt.err (!%p1592_p4)  }
   0xa   :  { %s1606_s13 = smov [#allocation3]  }
   0xb   :  { %17 = dma.vmem_to_smem %s15_s11, 16, %s1606_s13, [#allocation2] }
   0xc   :  { %1600 = dma.done.wait [#allocation2], 16 }
   0xd   :  { %1601 = vsyncadd [#allocation2], 4294967280 }
   0xe   :  { %19 = sfence }
   0xf   :  { %s1664_s14 = smov 0  }
  0x10 LB: > { %s1670_s0 = sadd.s32 4294967295, %s1604_s14   ;;  %p1318_p5 = scmp.ge.s32.totalorder %s1604_s14, 1  ;;  %s1604_s14 = sphi %s1664_s14, %s25_s14  }
  0x11   : > { %p279_p6 = scmp.lt.s32.totalorder %s1604_s14, 3 }
  0x13   : > { %p280_p7 = pnand %p1318_p5, %p279_p6 }
  0x14   : > { %p317_p8 = scmp.lt.s32.totalorder (!%p280_p7), %s1670_s0, 1  ;;  %v1607_v0 = vmov (!%p280_p7), 0.0   ;;  %vm1608_vm0 = vmmov (!%p280_p7), 0   ;;  %v1488_v1 = vld [vmem:[%s1970_s3] sm:$0xff] (!%p280_p7)   ;;  %v1489_v2 = vld [vmem:[%s1970_s3 + $0x8] sm:$0xff] (!%p280_p7)   ;;  %v1490_v4 = vld [vmem:[%s1970_s3 + $0x10] sm:$0xff] (!%p280_p7)  }
  0x15   : > { %283 = sbr.rel (%p280_p7) target bundleno = 1377 (0x561), region = 52  ;;  %1440 = vmatprep.subr.bf16.mxu0 (!%p280_p7), %v1607_v0  ;;  %1442 = vmatprep.mubr.msk.bf16.mxu0 (!%p280_p7), %vm1608_vm0, %v1607_v0  ;;  %vm347_vm1 = vcmask (!%p280_p7), 130048   ;;  %v1491_v6 = vld [vmem:[%s1970_s3 + $0x18] sm:$0xff] (!%p280_p7)   ;;  %v1492_v7 = vld [vmem:[%s1970_s3 + $0x20] sm:$0xff] (!%p280_p7)   ;;  %v1493_v8 = vld [vmem:[%s1970_s3 + $0x28] sm:$0xff] (!%p280_p7)   ;;  %v1609_v42 = vmov (!%p280_p7), 0  }
  0x16   : > { %1446 = vmatprep.subr.bf16.mxu1 (!%p280_p7), %v1607_v0  ;;  %1462 = vmatprep.mubr.msk.bf16.mxu1 (!%p280_p7), %vm1608_vm0, %v1607_v0  ;;  %v1494_v9 = vld [vmem:[%s1970_s3 + $0x30] sm:$0xff] (!%p280_p7)   ;;  %v1495_v10 = vld [vmem:[%s1970_s3 + $0x38] sm:$0xff] (!%p280_p7)   ;;  %v1326_v16 = vld [vmem:[%s1971_s4] ss:$0 sm:$0xff] (!%p280_p7)  ;;  %s1182_s19 = sld [smem:[#allocation3 + %s1670_s0]] (!%p280_p7) }
  0x17   : > { %1447 = vmatpush3.bf16.msra.mxu1 (!%p280_p7), %v1488_v1  ;;  %v1498_v25 = vld [vmem:[%s1972_s5 + $0x4] ss:$8 sps:$4 sm:$0xff] (!%p280_p7)   ;;  %v1496_v27 = vld [vmem:[%s1972_s5] ss:$8 sps:$4 sm:$0xff] (!%p280_p7)   ;;  %v1501_v28 = vld [vmem:[%s1972_s5 + $0x14] ss:$8 sps:$4 sm:$0xff] (!%p280_p7)  }
  0x18   : > { %1448 = vmatprep.subr.bf16.mxu1 (!%p280_p7), %v1607_v0  ;;  %v1499_v29 = vld [vmem:[%s1972_s5 + $0x10] ss:$8 sps:$4 sm:$0xff] (!%p280_p7)   ;;  %v1504_v30 = vld [vmem:[%s1972_s5 + $0x24] ss:$8 sps:$4 sm:$0xff] (!%p280_p7)   ;;  %v1502_v31 = vld [vmem:[%s1972_s5 + $0x20] ss:$8 sps:$4 sm:$0xff] (!%p280_p7)  }
  0x19   : > { %v1507_v32 = vld [vmem:[%s1972_s5 + $0x34] ss:$8 sps:$4 sm:$0xff] (!%p280_p7)   ;;  %v1505_v33 = vld [vmem:[%s1972_s5 + $0x30] ss:$8 sps:$4 sm:$0xff] (!%p280_p7)   ;;  %v1510_v34 = vld [vmem:[%s1972_s5 + $0x44] ss:$8 sps:$4 sm:$0xff] (!%p280_p7)  }
  0x1a   : > { %v1508_v35 = vld [vmem:[%s1972_s5 + $0x40] ss:$8 sps:$4 sm:$0xff] (!%p280_p7)   ;;  %v1513_v36 = vld [vmem:[%s1972_s5 + $0x54] ss:$8 sps:$4 sm:$0xff] (!%p280_p7)   ;;  %v1511_v37 = vld [vmem:[%s1972_s5 + $0x50] ss:$8 sps:$4 sm:$0xff] (!%p280_p7)  }
  0x1b   : > { %1449 = vmatpush3.bf16.msra.mxu1 (!%p280_p7), %v1489_v2  ;;  %v1516_v38 = vld [vmem:[%s1972_s5 + $0x64] ss:$8 sps:$4 sm:$0xff] (!%p280_p7)   ;;  %v1514_v39 = vld [vmem:[%s1972_s5 + $0x60] ss:$8 sps:$4 sm:$0xff] (!%p280_p7)   ;;  %v1519_v40 = vld [vmem:[%s1972_s5 + $0x74] ss:$8 sps:$4 sm:$0xff] (!%p280_p7)  }
  0x1c   : > { %s1680_s17 = scalar_select %p317_p8, %s1670_s0, 1  ;;  %1450 = vmatprep.subr.bf16.mxu1 %v1607_v0  ;;  %v1517_v41 = vld [vmem:[%s1972_s5 + $0x70] ss:$8 sps:$4 sm:$0xff]   ;;  %v1520_v48 = vld [vmem:[%s1974_s7] ss:$12 sps:$4 sm:$0xff]  }
  0x1d   : > { %v1522_v49 = vld [vmem:[%s1974_s7 + $0x4] ss:$12 sps:$4 sm:$0xff]   ;;  %v1525_v50 = vld [vmem:[%s1974_s7 + $0x1c] ss:$12 sps:$4 sm:$0xff]   ;;  %v1528_v52 = vld [vmem:[%s1974_s7 + $0x34] ss:$12 sps:$4 sm:$0xff]  }
  0x1e   : > { %s1403_s20 = sshll.u32 %s1680_s17, 3  ;;  %v1523_v51 = vld [vmem:[%s1974_s7 + $0x18] ss:$12 sps:$4 sm:$0xff]   ;;  %v1526_v53 = vld [vmem:[%s1974_s7 + $0x30] ss:$12 sps:$4 sm:$0xff]   ;;  %s1472_s0 = smul.u32 3, %s1680_s17 }
  0x1f   : > { %s321_s23 = scalar_lea.vmem %s1968_s1, %s1403_s20  ;;  %s326_s26 = scalar_lea.vmem %s1969_s2, %s1403_s20  ;;  %1451 = vmatpush3.bf16.msra.mxu1 %v1490_v4  ;;  %v1531_v54 = vld [vmem:[%s1974_s7 + $0x4c] ss:$12 sps:$4 sm:$0xff]   ;;  %v1529_v55 = vld [vmem:[%s1974_s7 + $0x48] ss:$12 sps:$4 sm:$0xff]   ;;  %v1534_v56 = vld [vmem:[%s1974_s7 + $0x64] ss:$12 sps:$4 sm:$0xff]  }
  0x20   : > { %v1486_v3 = vld [vmem:[%s326_s26] sm:$0xff]   ;;  %1452 = vmatprep.subr.bf16.mxu1 %v1607_v0  ;;  %v1537_v58 = vld [vmem:[%s1974_s7 + $0x7c] ss:$12 sps:$4 sm:$0xff]   ;;  %v1543_v62 = vld [vmem:[%s1974_s7 + $0xac] ss:$12 sps:$4 sm:$0xff]   ;;  %s330_s24 = scalar_lea.vmem %s1976_s9, %s1472_s0 }
  0x21   : > { %v1696_v5 = vld [vmem:[%s321_s23] sm:$0xff]   ;;  %1441 = vmatpush3.bf16.msra.mxu0 %v1486_v3  ;;  %v1538_v61 = vld [vmem:[%s1974_s7 + $0x90] ss:$12 sps:$4 sm:$0xff]   ;;  %v1541_v63 = vld [vmem:[%s1974_s7 + $0xa8] ss:$12 sps:$4 sm:$0xff]  }
  0x22   : > { %1466 = vmatprep.subr.bf16.mxu0 %v1607_v0  ;;  %v1532_v57 = vld [vmem:[%s1974_s7 + $0x60] ss:$12 sps:$4 sm:$0xff]   ;;  %v1535_v59 = vld [vmem:[%s1974_s7 + $0x78] ss:$12 sps:$4 sm:$0xff]   ;;  %v1551_v2 = vld [vmem:[%s1974_s7 + $0xdc] ss:$12 sps:$4 sm:$0xff]  }
  0x23   : > { %1453 = vmatpush3.bf16.msra.mxu1 %v1491_v6  ;;  %v1540_v60 = vld [vmem:[%s1974_s7 + $0x94] ss:$12 sps:$4 sm:$0xff]   ;;  %v1549_v3 = vld [vmem:[%s1974_s7 + $0xd8] ss:$12 sps:$4 sm:$0xff]   ;;  %v1554_v6 = vld [vmem:[%s1974_s7 + $0xf0] ss:$12 sps:$4 sm:$0xff]  }
  0x24   : > { %1443 = vmatmul.mubr.msk.bf16.vlgmr.msra.gmra.mrb[0].mxu0 %vm347_vm1, %v1696_v5  ;;  %1454 = vmatprep.subr.bf16.mxu1 %v1607_v0  ;;  %v1544_v1 = vld [vmem:[%s1974_s7 + $0xc0] ss:$12 sps:$4 sm:$0xff]  }
  0x25   : > { %1468 = vmatprep.mubr.msk.bf16.mxu0 %vm1608_vm0, %v1607_v0  ;;  %v1556_v4 = vld [vmem:[%s1974_s7 + $0xf4] ss:$12 sps:$4 sm:$0xff]  }
  0x27   : > { %1455 = vmatpush3.bf16.msra.mxu1 %v1492_v7  ;;  %v1561_v7 = vld [vmem:[%s1974_s7 + $0x10c] ss:$12 sps:$4 sm:$0xff]  }
  0x28   : > { %1456 = vmatprep.subr.bf16.mxu1 %v1607_v0 }
  0x2b   : > { %1457 = vmatpush3.bf16.msra.mxu1 %v1493_v8  ;;  %v1559_v8 = vld [vmem:[%s1974_s7 + $0x108] ss:$12 sps:$4 sm:$0xff]  }
  0x2c   : > { %1458 = vmatprep.subr.bf16.mxu1 %v1607_v0 }
  0x2f   : > { %1459 = vmatpush3.bf16.msra.mxu1 %v1494_v9  ;;  %v1566_v9 = vld [vmem:[%s1974_s7 + $0x124] ss:$12 sps:$4 sm:$0xff]  }
  0x30   : > { %1460 = vmatprep.subr.bf16.mxu1 %v1607_v0  ;;  %v1546_v0 = vld [vmem:[%s1974_s7 + $0xc4] ss:$12 sps:$4 sm:$0xff]  }
  0x33   : > { %1461 = vmatpush3.bf16.msra.mxu1 %v1495_v10  ;;  %v1564_v10 = vld [vmem:[%s1974_s7 + $0x120] ss:$12 sps:$4 sm:$0xff]  }
  0x34   : > { %1089 = vmatprep.subr.bf16.mxu1 %v1522_v49  ;;  %v1581_v49 = vld [vmem:[%s1974_s7 + $0x16c] ss:$12 sps:$4 sm:$0xff]  }
  0xf7   : > { %v385_v11 = vpop.f32.mrb[0].mxu0 }
  0xf8   : > { %v1444_v12 = vpop.f32.mrb[1].mxu0 }
  0xf9   : > { %v388_v13 = vpop.f32.mrb[2].mxu0  ;;  %v1569_v12 = vld [vmem:[%s1974_s7 + $0x138] ss:$12 sps:$4 sm:$0xff]  }
  0xfa   : > { %v392_v14 = vpack.c.bf16 %v388_v13, %v385_v11  ;;  %v1445_v15 = vpop.f32.mrb[3].mxu0  ;;  %v1571_v11 = vld [vmem:[%s1974_s7 + $0x13c] ss:$12 sps:$4 sm:$0xff]   ;;  %v1576_v13 = vld [vmem:[%s1974_s7 + $0x154] ss:$12 sps:$4 sm:$0xff]  }
  0xfb   : > { %v568_v15 = vlaneseq }
  0xfc   : > { %1463 = vmatmul.mubr.bf16.vlgmr.msra.gmra.mrb[0].mxu1 %v392_v14  ;;  %v1574_v14 = vld [vmem:[%s1974_s7 + $0x150] ss:$12 sps:$4 sm:$0xff]  }
  0xfd   : > { %1090 = vmatpush1.bf16.msra.mxu1 %v1520_v48  ;;  %v1578_v48 = vld [vmem:[%s1974_s7 + $0x98] ss:$12 sps:$4 sm:$0xff]   ;;  %vm1246_vm4 = vcmp.lt.s32.totalorder %v568_v15, 384 }
  0xfe   : > { %1091 = vmatprep.subr.bf16.mxu1 %v1525_v50  ;;  %v1582_v50 = vld [vmem:[%s1974_s7 + $0x170] ss:$12 sps:$4 sm:$0xff]  }
 0x101   : > { %1092 = vmatpush1.bf16.msra.mxu1 %v1523_v51  ;;  %v1579_v51 = vld [vmem:[%s1974_s7 + $0x168] ss:$12 sps:$4 sm:$0xff]  }
 0x102   : > { %1093 = vmatprep.subr.bf16.mxu1 %v1528_v52  ;;  %v1583_v52 = vld [vmem:[%s1974_s7 + $0xb0] ss:$12 sps:$4 sm:$0xff]  }
 0x105   : > { %1094 = vmatpush1.bf16.msra.mxu1 %v1526_v53 }
 0x106   : > { %1095 = vmatprep.subr.bf16.mxu1 %v1531_v54 }
 0x109   : > { %1096 = vmatpush1.bf16.msra.mxu1 %v1529_v55 }
 0x10a   : > { %1097 = vmatprep.subr.bf16.mxu1 %v1534_v56 }
 0x10d   : > { %1098 = vmatpush1.bf16.msra.mxu1 %v1532_v57 }
 0x10e   : > { %1099 = vmatprep.subr.bf16.mxu1 %v1537_v58 }
 0x111   : > { %1100 = vmatpush1.bf16.msra.mxu1 %v1535_v59  ;;  %v816_v59 = vld [vmem:[%s1975_s8] sm:$0x7] }
 0x112   : > { %1101 = vmatprep.subr.bf16.mxu1 %v1540_v60 }
 0x115   : > { %1102 = vmatpush1.bf16.msra.mxu1 %v1538_v61 }
 0x116   : > { %1103 = vmatprep.subr.bf16.mxu1 %v1543_v62 }
 0x119   : > { %1104 = vmatpush1.bf16.msra.mxu1 %v1541_v63 }
 0x11a   : > { %1105 = vmatprep.subr.bf16.mxu1 %v1546_v0 }
 0x11d   : > { %1106 = vmatpush1.bf16.msra.mxu1 %v1544_v1  ;;  %v1183_v1 = vstv %s1182_s19 }
 0x11e   : > { %1107 = vmatprep.subr.bf16.mxu1 %v1551_v2 }
 0x121   : > { %1108 = vmatpush1.bf16.msra.mxu1 %v1549_v3 }
 0x122   : > { %1109 = vmatprep.subr.bf16.mxu1 %v1556_v4 }
 0x125   : > { %1110 = vmatpush1.bf16.msra.mxu1 %v1554_v6 }
 0x126   : > { %1111 = vmatprep.subr.bf16.mxu1 %v1561_v7 }
 0x129   : > { %1112 = vmatpush1.bf16.msra.mxu1 %v1559_v8 }
 0x12a   : > { %1113 = vmatprep.subr.bf16.mxu1 %v1566_v9 }
 0x12d   : > { %1114 = vmatpush1.bf16.msra.mxu1 %v1564_v10 }
 0x12e   : > { %1115 = vmatprep.subr.bf16.mxu1 %v1571_v11 }
 0x131   : > { %1116 = vmatpush1.bf16.msra.mxu1 %v1569_v12 }
 0x132   : > { %1117 = vmatprep.subr.bf16.mxu1 %v1576_v13 }
 0x135   : > { %1118 = vmatpush1.bf16.msra.mxu1 %v1574_v14 }
 0x136   : > { %1119 = vmatprep.subr.bf16.mxu1 %v1581_v49 }
 0x139   : > { %1120 = vmatpush1.bf16.msra.mxu1 %v1579_v51 }
 0x1cf   : > { %v498_v17 = vpop.f32.mrb[0].mxu1 }
 0x1d0   : > { %v499_v18 = vadd.f32 %v1326_v16, %v498_v17  ;;  %v1464_v19 = vpop.f32.mrb[1].mxu1 }
 0x1d1   : > { %v501_v20 = vpop.f32.mrb[2].mxu1 }
 0x1d2   : > { %v502_v21 = vadd.f32 %v1326_v16, %v501_v20  ;;  %v1465_v22 = vpop.f32.mrb[3].mxu1  ;;  %v505_v23 = vmax.f32 %v499_v18, 0.0  ;;  %v1860_v16 = vshrl.u32 %v568_v15, 7  ;;  %v566_v18 = vld [vmem:[%s1973_s6] sm:$0x3] }
 0x1d4   : > { %v506_v24 = vmax.f32 %v502_v21, 0.0  ;;  %v570_v17 = vsub.s32 0, %v1860_v16  ;;  %v574_v19 = vsub.s32 1, %v1860_v16  ;;  %v828_v60 = vsub.s32 2, %v1860_v16 }
 0x1d5   : > { %v1181_v63 = vadd.s32 8, %v1860_v16  ;;  %vm1938_vm2 = vcmp.lt.s32.totalorder %v1860_v16, %v1183_v1 }
 0x1d6   : > { %v507_v26 = vpack.c.bf16 %v506_v24, %v505_v23  ;;  %v571_v20 = vrot.slane %v566_v18, %v570_v17  ;;  %v575_v21 = vrot.slane %v566_v18, %v574_v19  ;;  %v821_v61 = vrot.slane %v816_v59, %v570_v17 }
 0x1d7   : > { %v825_v62 = vrot.slane %v816_v59, %v574_v19  ;;  %v829_v3 = vrot.slane %v816_v59, %v828_v60  ;;  %vm1942_vm3 = vcmp.lt.s32.totalorder %v1181_v63, %v1183_v1 }
 0x1d8   : > { %1467 = vmatpush3.bf16.msra.mxu0 %v507_v26 }
 0x1d9   : > { %658 = vmatprep.subr.bf16.mxu0 %v1498_v25 }
 0x1db   : > { %1469 = vmatmul.mubr.msk.bf16.vlgmr.msra.gmra.mrb[4].mxu0 %vm347_vm1, %v1696_v5 }
 0x1dc   : > { %659 = vmatpush1.bf16.msra.mxu0 %v1496_v27  ;;  %690 = vmatprep.mubr.bf16.mxu0 %v1609_v42 }
 0x1dd   : > { %660 = vmatprep.subr.bf16.mxu0 %v1501_v28 }
 0x1e0   : > { %661 = vmatpush1.bf16.msra.mxu0 %v1499_v29 }
 0x1e1   : > { %662 = vmatprep.subr.bf16.mxu0 %v1504_v30 }
 0x1e4   : > { %663 = vmatpush1.bf16.msra.mxu0 %v1502_v31 }
 0x1e5   : > { %664 = vmatprep.subr.bf16.mxu0 %v1507_v32 }
 0x1e8   : > { %665 = vmatpush1.bf16.msra.mxu0 %v1505_v33 }
 0x1e9   : > { %666 = vmatprep.subr.bf16.mxu0 %v1510_v34 }
 0x1ec   : > { %667 = vmatpush1.bf16.msra.mxu0 %v1508_v35 }
 0x1ed   : > { %668 = vmatprep.subr.bf16.mxu0 %v1513_v36  ;;  %v1547_v36 = vld [vmem:[%s1974_s7 + $0xc8] ss:$12 sps:$4 sm:$0xff]  }
 0x1f0   : > { %669 = vmatpush1.bf16.msra.mxu0 %v1511_v37  ;;  %v1548_v37 = vld [vmem:[%s1974_s7 + $0x8] ss:$12 sps:$4 sm:$0xff]  }
 0x1f1   : > { %670 = vmatprep.subr.bf16.mxu0 %v1516_v38  ;;  %v1552_v38 = vld [vmem:[%s1974_s7 + $0xe0] ss:$12 sps:$4 sm:$0xff]  }
 0x1f4   : > { %671 = vmatpush1.bf16.msra.mxu0 %v1514_v39  ;;  %v1553_v39 = vld [vmem:[%s1974_s7 + $0x20] ss:$12 sps:$4 sm:$0xff]  }
 0x1f5   : > { %672 = vmatprep.subr.bf16.mxu0 %v1519_v40  ;;  %v1557_v40 = vld [vmem:[%s1974_s7 + $0xf8] ss:$12 sps:$4 sm:$0xff]  }
 0x1f8   : > { %673 = vmatpush1.bf16.msra.mxu0 %v1517_v41  ;;  %v1558_v41 = vld [vmem:[%s1974_s7 + $0x38] ss:$12 sps:$4 sm:$0xff]  }
 0x2ae   : > { %v542_v43 = vpop.f32.mrb[4].mxu0 }
 0x2af   : > { %v1470_v44 = vpop.f32.mrb[5].mxu0 }
 0x2b0   : > { %v545_v45 = vpop.f32.mrb[6].mxu0  ;;  %v1568_v44 = vld [vmem:[%s1974_s7 + $0x68] ss:$12 sps:$4 sm:$0xff]  }
 0x2b1   : > { %v549_v46 = vpack.c.bf16 %v545_v45, %v542_v43  ;;  %v1471_v47 = vpop.f32.mrb[7].mxu0  ;;  %v1567_v43 = vld [vmem:[%s1974_s7 + $0x128] ss:$12 sps:$4 sm:$0xff]   ;;  %v1572_v45 = vld [vmem:[%s1974_s7 + $0x140] ss:$12 sps:$4 sm:$0xff]  }
 0x2b2   : > { %v1577_v47 = vld [vmem:[%s1974_s7 + $0x158] ss:$12 sps:$4 sm:$0xff]  }
 0x2b3   : > { %691 = vmatmul.mubr.bf16.vlgmr.msra.gmra.mrb[8].mxu0 %v549_v46  ;;  %v1573_v46 = vld [vmem:[%s1974_s7 + $0x80] ss:$12 sps:$4 sm:$0xff]  }
 0x2b4   : > { %739 = vmatprep.mubr.bf16.mxu0 %v1609_v42  ;;  %v1563_v42 = vld [vmem:[%s1974_s7 + $0x50] ss:$12 sps:$4 sm:$0xff]  }
 0x386   : > { %v692_v22 = vpop.f32.mrb[8].mxu0 }
 0x387   : > { %v693_v23 = vadd.f32 %v692_v22, %v571_v20  ;;  %v694_v24 = vpop.f32.mrb[9].mxu0 }
 0x388   : > { %v695_v25 = vadd.f32 %v694_v24, %v575_v21  ;;  %v696_v26 = vpop.f32.mrb[10].mxu0 }
 0x389   : > { %v697_v27 = vadd.f32 %v696_v26, %v571_v20  ;;  %v698_v28 = vpop.f32.mrb[11].mxu0  ;;  %v701_v30 = vmax.f32 %v693_v23, 0.0 }
 0x38a   : > { %v699_v29 = vadd.f32 %v698_v28, %v575_v21  ;;  %v702_v32 = vmax.f32 %v695_v25, 0.0 }
 0x38b   : > { %v703_v31 = vmax.f32 %v697_v27, 0.0 }
 0x38c   : > { %v704_v33 = vmax.f32 %v699_v29, 0.0 }
 0x38d   : > { %v705_v34 = vpack.c.bf16 %v703_v31, %v701_v30 }
 0x38e   : > { %v706_v35 = vpack.c.bf16 %v704_v33, %v702_v32 }
 0x390   : > { %707 = vmatprep.subr.bf16.mxu0 %v706_v35 }
 0x391   : > { %708 = vmatpush1.bf16.msra.mxu0 %v705_v34 }
 0x392   : > { %1418 = vmatprep.subr.bf16.mxu0 %v1547_v36 }
 0x394   : > { %1352 = vmatmul.mubr.msk.bf16.vlgmr.msra.gmra.mrb[12].mxu0 %vm347_vm1, %v1696_v5  ;;  %v1562_v5 = vld [vmem:[%s1974_s7 + $0x110] ss:$12 sps:$4 sm:$0xff]  }
 0x395   : > { %1419 = vmatpush3.bf16.msra.mxu0 %v1548_v37 }
 0x396   : > { %1420 = vmatprep.subr.bf16.mxu0 %v1552_v38 }
 0x399   : > { %1421 = vmatpush3.bf16.msra.mxu0 %v1553_v39 }
 0x39a   : > { %1422 = vmatprep.subr.bf16.mxu0 %v1557_v40 }
 0x39d   : > { %1423 = vmatpush3.bf16.msra.mxu0 %v1558_v41 }
 0x39e   : > { %1424 = vmatprep.subr.bf16.mxu0 %v1562_v5  ;;  %v1610_v5 = vmov 1966171168  }
 0x3a1   : > { %1425 = vmatpush3.bf16.msra.mxu0 %v1563_v42  ;;  %v1222_v42 = vunpack.c.l.s4 %v1610_v5 }
 0x3a2   : > { %1426 = vmatprep.subr.bf16.mxu0 %v1567_v43 }
 0x3a3   : > { %v1223_v49 = vunpack.c.0.s8 %v1222_v42 }
 0x3a5   : > { %1427 = vmatpush3.bf16.msra.mxu0 %v1568_v44 }
 0x3a6   : > { %1428 = vmatprep.subr.bf16.mxu0 %v1572_v45 }
 0x3a9   : > { %1429 = vmatpush3.bf16.msra.mxu0 %v1573_v46 }
 0x3aa   : > { %1430 = vmatprep.subr.bf16.mxu0 %v1577_v47 }
 0x3ad   : > { %1431 = vmatpush3.bf16.msra.mxu0 %v1578_v48 }
 0x3ae   : > { %1432 = vmatprep.subr.bf16.mxu0 %v1582_v50 }
 0x3b1   : > { %1433 = vmatpush3.bf16.msra.mxu0 %v1583_v52 }
 0x467   : > { %v741_v53 = vpop.f32.mrb[12].mxu0 }
 0x468   : > { %v743_v54 = vpop.f32.mrb[13].mxu0 }
 0x469   : > { %v745_v55 = vpop.f32.mrb[14].mxu0 }
 0x46a   : > { %v750_v56 = vpack.c.bf16 %v745_v55, %v741_v53  ;;  %v747_v57 = vpop.f32.mrb[15].mxu0 }
 0x46b   : > { %v751_v58 = vpack.c.bf16 %v747_v57, %v743_v54 }
 0x46d   : > { %1121 = vmatprep.mubr.bf16.mxu1 %v751_v58  ;;  %1164 = vmatprep.mubr.bf16.mxu0 %v751_v58 }
 0x46e   : > { %1122 = vmatmul.mubr.bf16.vlgmr.msra.gmra.mrb[4].mxu1 %v750_v56  ;;  %1165 = vmatmul.mubr.bf16.vlgmr.msra.gmra.mrb[16].mxu0 %v750_v56  ;;  %v1226_v56 = vsub.s32 %v1223_v49, %v1860_v16 }
 0x541   : > { %v1123_v0 = vpop.f32.mrb[4].mxu1  ;;  %v1434_v2 = vpop.f32.mrb[16].mxu0 }
 0x542   : > { %v1124_v4 = vadd.f32 %v1123_v0, %v821_v61  ;;  %v1125_v6 = vpop.f32.mrb[5].mxu1  ;;  %v1435_v7 = vpop.f32.mrb[17].mxu0 }
 0x543   : > { %v1126_v8 = vadd.f32 %v1125_v6, %v825_v62  ;;  %v1436_v9 = vadd.f32 %v1435_v7, %v1434_v2  ;;  %v1127_v10 = vpop.f32.mrb[6].mxu1  ;;  %v1437_v11 = vpop.f32.mrb[18].mxu0 }
 0x544   : > { %v1173_v12 = vmax.f32 %v1124_v4, 0.0  ;;  %v1128_v14 = vadd.f32 %v1127_v10, %v821_v61  ;;  %v1129_v18 = vpop.f32.mrb[7].mxu1  ;;  %v1438_v19 = vpop.f32.mrb[19].mxu0 }
 0x545   : > { %v1174_v20 = vmax.f32 %v1126_v8, 0.0  ;;  %v1167_v21 = vadd.f32 %v1436_v9, %v829_v3  ;;  %v1130_v22 = vadd.f32 %v1129_v18, %v825_v62  ;;  %v1439_v23 = vadd.f32 %v1438_v19, %v1437_v11 }
 0x546   : > { %v1176_v24 = vmax.f32 %v1128_v14, 0.0  ;;  %v1190_v28 = vsel %vm1938_vm2, %v1173_v12, -1e+30 }
 0x547   : > { %v1175_v25 = vmax.f32 %v1167_v21, 0.0  ;;  %v1177_v26 = vmax.f32 %v1130_v22, 0.0  ;;  %v1170_v27 = vadd.f32 %v1439_v23, %v829_v3  ;;  %v1191_v30 = vsel %vm1938_vm2, %v1174_v20, -1e+30 }
 0x548   : > { %v1193_v29 = vsel %vm1942_vm3, %v1176_v24, -1e+30 }
 0x549   : > { %v1196_v31 = vmax.f32 %v1190_v28, %v1193_v29  ;;  %v1194_v32 = vsel %vm1942_vm3, %v1177_v26, -1e+30  ;;  %v1178_v33 = vmax.f32 %v1170_v27, 0.0  ;;  %v1192_v35 = vsel %vm1938_vm2, %v1175_v25, -1e+30 }
 0x54a   : > { %v1203_v34 = vmax.f32 %v1191_v30, %v1194_v32 }
 0x54b   : > { %v1197_v36 = vrot.slane %v1196_v31, 4  ;;  %v1195_v37 = vsel %vm1942_vm3, %v1178_v33, -1e+30 }
 0x54c   : > { %v1204_v38 = vrot.slane %v1203_v34, 4  ;;  %v1210_v39 = vmax.f32 %v1192_v35, %v1195_v37 }
 0x54d   : > { %v1198_v40 = vmax.f32 %v1196_v31, %v1197_v36 }
 0x54e   : > { %v1205_v41 = vmax.f32 %v1203_v34, %v1204_v38  ;;  %v1211_v43 = vrot.slane %v1210_v39, 4 }
 0x54f   : > { %v1199_v44 = vrot.slane %v1198_v40, 2 }
 0x550   : > { %v1206_v45 = vrot.slane %v1205_v41, 2  ;;  %v1212_v46 = vmax.f32 %v1210_v39, %v1211_v43 }
 0x551   : > { %v1200_v47 = vmax.f32 %v1198_v40, %v1199_v44 }
 0x552   : > { %v1207_v48 = vmax.f32 %v1205_v41, %v1206_v45  ;;  %v1213_v50 = vrot.slane %v1212_v46, 2 }
 0x553   : > { %v1201_v51 = vrot.slane %v1200_v47, 1 }
 0x554   : > { %v1208_v52 = vrot.slane %v1207_v48, 1  ;;  %v1214_v53 = vmax.f32 %v1212_v46, %v1213_v50 }
 0x555   : > { %v1202_v54 = vmax.f32 %v1200_v47, %v1201_v51 }
 0x556   : > { %v1209_v55 = vmax.f32 %v1207_v48, %v1208_v52  ;;  %v1215_v57 = vrot.slane %v1214_v53, 1 }
 0x558   : > { %v1220_v58 = vcombine.low %v1202_v54, %v1209_v55  ;;  %v1216_v59 = vmax.f32 %v1214_v53, %v1215_v57 }
 0x55a   : > { %v1227_v60 = vrot.slane %v1220_v58, %v1226_v56  ;;  %v1234_v61 = vrot.slane %v1216_v59, %v1226_v56 }
 0x55c   : > { %v1235_v62 = vcombine.low %v1227_v60, %v1234_v61 }
 0x55e   : > { %v1242_v63 = vrot.slane %v1235_v62, %v1226_v56 }
 0x560   : > { %1248 = vst.msk [vmem:[%s330_s24] sm:$0x7] %vm1246_vm4, %v1242_v63 }
 0x561 PF: > { %s25_s14 = sadd.s32 1, %s1604_s14  }
 0x562   : > { %p22_p9 = scmp.ge.s32.totalorder %s25_s14, 4  }
 0x564   :  { %24 = sbr.rel (!%p22_p9) target bundleno = 16 (0x10), region = 85 }

// kernel: gcn_net_forward.3
= control target key start
LH: loop header
LB: loop body
LE: loop exit
PB: predicated region body
PF: predicated region fallthrough
CT: control target
= control target key end

     0   :  { %v6540_v3 = vmov 0   ;;  %s8652_s3 = inlined_call_operand.vmem [shape: bf16[384,1024], index: 3, kind: input, shape index: {}]   ;;  %s8653_s0 = inlined_call_operand.vmem [shape: bf16[8,384], index: 0, kind: input, shape index: {}]   ;;  %s8654_s5 = inlined_call_operand.vmem [shape: bf16[1024,128], index: 5, kind: input, shape index: {}]   ;;  %s8655_s4 = inlined_call_operand.vmem [shape: f32[1,1024], index: 4, kind: input, shape index: {}]   ;;  %s8656_s7 = inlined_call_operand.vmem [shape: bf16[128,1024], index: 7, kind: input, shape index: {}]   ;;  %s8657_s6 = inlined_call_operand.vmem [shape: f32[1,128], index: 6, kind: input, shape index: {}]   ;;  %s8658_s1 = inlined_call_operand.vmem [shape: f32[8,1], index: 1, kind: input, shape index: {}]   ;;  %s8659_s2 = inlined_call_operand.vmem [shape: f32[8,1], index: 2, kind: input, shape index: {}]   ;;  %s8660_s11 = inlined_call_operand.vmem [shape: bf16[1024,512], index: 11, kind: input, shape index: {}]   ;;  %s8661_s9 = inlined_call_operand.vmem [shape: f32[1,1024], index: 9, kind: input, shape index: {}]   ;;  %s8662_s8 = inlined_call_operand.vmem [shape: f32[1,1024], index: 8, kind: input, shape index: {}]   ;;  %s8663_s10 = inlined_call_operand.vmem [shape: f32[1,1024], index: 10, kind: input, shape index: {}]   ;;  %s8664_s13 = inlined_call_operand.vmem [shape: bf16[512,128], index: 13, kind: input, shape index: {}]   ;;  %s8665_s12 = inlined_call_operand.vmem [shape: f32[1,512], index: 12, kind: input, shape index: {}]   ;;  %s8666_s14 = inlined_call_operand.vmem [shape: f32[1,128], index: 14, kind: input, shape index: {}]   ;;  %s8667_s15 = inlined_call_operand.vmem [shape: f32[8,128], index: 15, kind: output, shape index: {}]  }
   0x1   :  { %v53_v0 = vld [vmem:[%s8652_s3] sm:$0xff]  ;;  %v54_v2 = vld [vmem:[%s8652_s3 + $0x8] sm:$0xff]  ;;  %6056 = vset.pattern.permute.xlu0 %v6540_v3 }
   0x2   :  { %v57_v1 = vld [vmem:[%s8652_s3 + $0x20] sm:$0xff]  ;;  %v58_v5 = vld [vmem:[%s8652_s3 + $0x28] sm:$0xff] }
   0x3   :  { %v5262_v4 = vcombine.high %v53_v0, %v57_v1  ;;  %v5261_v6 = vcombine.low %v53_v0, %v57_v1  ;;  %v61_v7 = vld [vmem:[%s8652_s3 + $0x40] sm:$0xff]  ;;  %v5264_v9 = vcombine.high %v54_v2, %v58_v5  ;;  %v5263_v10 = vcombine.low %v54_v2, %v58_v5  ;;  %v62_v12 = vld [vmem:[%s8652_s3 + $0x48] sm:$0xff] }
   0x4   :  { %v65_v8 = vld [vmem:[%s8652_s3 + $0x60] sm:$0xff]  ;;  %v66_v13 = vld [vmem:[%s8652_s3 + $0x68] sm:$0xff] }
   0x5   :  { %v5270_v11 = vcombine.high %v61_v7, %v65_v8  ;;  %v69_v14 = vld [vmem:[%s8652_s3 + $0x80] sm:$0xff]  ;;  %1258 = vmatprep.subr.bf16.mxu0 %v5262_v4  ;;  %v5272_v15 = vcombine.high %v62_v12, %v66_v13  ;;  %v70_v17 = vld [vmem:[%s8652_s3 + $0x88] sm:$0xff]  ;;  %1340 = vmatprep.subr.bf16.mxu1 %v5264_v9  ;;  %v5269_v19 = vcombine.low %v61_v7, %v65_v8 }
   0x6   :  { %v73_v16 = vld [vmem:[%s8652_s3 + $0xa0] sm:$0xff]  ;;  %v74_v18 = vld [vmem:[%s8652_s3 + $0xa8] sm:$0xff]  ;;  %1259 = vmatpush1.bf16.msra.mxu0 %v5261_v6  ;;  %1341 = vmatpush1.bf16.msra.mxu1 %v5263_v10  ;;  %v5271_v20 = vcombine.low %v62_v12, %v66_v13 }
   0x7   :  { %1260 = vmatprep.subr.bf16.mxu0 %v5270_v11  ;;  %v5278_v21 = vcombine.high %v69_v14, %v73_v16  ;;  %1342 = vmatprep.subr.bf16.mxu1 %v5272_v15  ;;  %v5280_v22 = vcombine.high %v70_v17, %v74_v18  ;;  %v77_v23 = vld [vmem:[%s8652_s3 + $0xc0] sm:$0xff]  ;;  %v78_v25 = vld [vmem:[%s8652_s3 + $0xc8] sm:$0xff]  ;;  %v5277_v27 = vcombine.low %v69_v14, %v73_v16 }
   0x8   :  { %v81_v24 = vld [vmem:[%s8652_s3 + $0xe0] sm:$0xff]  ;;  %v82_v26 = vld [vmem:[%s8652_s3 + $0xe8] sm:$0xff]  ;;  %v5279_v28 = vcombine.low %v70_v17, %v74_v18 }
   0x9   :  { %v5286_v29 = vcombine.high %v77_v23, %v81_v24  ;;  %v5288_v30 = vcombine.high %v78_v25, %v82_v26  ;;  %v85_v31 = vld [vmem:[%s8652_s3 + $0x100] sm:$0xff]  ;;  %v86_v33 = vld [vmem:[%s8652_s3 + $0x108] sm:$0xff]  ;;  %v5285_v35 = vcombine.low %v77_v23, %v81_v24  ;;  %v5287_v36 = vcombine.low %v78_v25, %v82_v26 }
   0xa   :  { %1261 = vmatpush1.bf16.msra.mxu0 %v5269_v19  ;;  %1343 = vmatpush1.bf16.msra.mxu1 %v5271_v20  ;;  %v89_v32 = vld [vmem:[%s8652_s3 + $0x120] sm:$0xff]  ;;  %v90_v34 = vld [vmem:[%s8652_s3 + $0x128] sm:$0xff] }
   0xb   :  { %1262 = vmatprep.subr.bf16.mxu0 %v5278_v21  ;;  %1344 = vmatprep.subr.bf16.mxu1 %v5280_v22  ;;  %v5294_v37 = vcombine.high %v85_v31, %v89_v32  ;;  %v5296_v38 = vcombine.high %v86_v33, %v90_v34  ;;  %v93_v39 = vld [vmem:[%s8652_s3 + $0x140] sm:$0xff]  ;;  %v94_v41 = vld [vmem:[%s8652_s3 + $0x148] sm:$0xff]  ;;  %v5293_v43 = vcombine.low %v85_v31, %v89_v32 }
   0xc   :  { %v97_v40 = vld [vmem:[%s8652_s3 + $0x160] sm:$0xff]  ;;  %v98_v42 = vld [vmem:[%s8652_s3 + $0x168] sm:$0xff]  ;;  %v5295_v44 = vcombine.low %v86_v33, %v90_v34 }
   0xd   :  { %v5302_v45 = vcombine.high %v93_v39, %v97_v40  ;;  %v5304_v46 = vcombine.high %v94_v41, %v98_v42  ;;  %v101_v47 = vld [vmem:[%s8652_s3 + $0x180] sm:$0xff]  ;;  %v102_v49 = vld [vmem:[%s8652_s3 + $0x188] sm:$0xff]  ;;  %v5301_v51 = vcombine.low %v93_v39, %v97_v40  ;;  %v5303_v52 = vcombine.low %v94_v41, %v98_v42 }
   0xe   :  { %1263 = vmatpush1.bf16.msra.mxu0 %v5277_v27  ;;  %1345 = vmatpush1.bf16.msra.mxu1 %v5279_v28  ;;  %v105_v48 = vld [vmem:[%s8652_s3 + $0x1a0] sm:$0xff]  ;;  %v106_v50 = vld [vmem:[%s8652_s3 + $0x1a8] sm:$0xff] }
   0xf   :  { %1264 = vmatprep.subr.bf16.mxu0 %v5286_v29  ;;  %1346 = vmatprep.subr.bf16.mxu1 %v5288_v30  ;;  %v5310_v53 = vcombine.high %v101_v47, %v105_v48  ;;  %v6709_v54 = vld [vmem:[%s8653_s0] sm:$0xff]  ;;  %v5312_v55 = vcombine.high %v102_v49, %v106_v50  ;;  %v110_v59 = vld [vmem:[%s8652_s3 + $0x1c8] sm:$0xff]  ;;  %v5309_v61 = vcombine.low %v101_v47, %v105_v48 }
  0x10   :  { %v109_v56 = vld [vmem:[%s8652_s3 + $0x1c0] sm:$0xff]  ;;  %v6719_v58 = vcombine.high %v6709_v54, %v6709_v54  ;;  %v114_v60 = vld [vmem:[%s8652_s3 + $0x1e8] sm:$0xff]  ;;  %v5311_v62 = vcombine.low %v102_v49, %v106_v50 }
  0x11   :  { %v113_v57 = vld [vmem:[%s8652_s3 + $0x1e0] sm:$0xff]  ;;  %v5320_v0 = vcombine.high %v110_v59, %v114_v60  ;;  %v118_v4 = vld [vmem:[%s8652_s3 + $0x208] sm:$0xff]  ;;  %v5319_v7 = vcombine.low %v110_v59, %v114_v60 }
  0x12   :  { %1265 = vmatpush1.bf16.msra.mxu0 %v5285_v35  ;;  %1347 = vmatpush1.bf16.msra.mxu1 %v5287_v36  ;;  %v5318_v63 = vcombine.high %v109_v56, %v113_v57  ;;  %v117_v1 = vld [vmem:[%s8652_s3 + $0x200] sm:$0xff]  ;;  %v122_v5 = vld [vmem:[%s8652_s3 + $0x228] sm:$0xff]  ;;  %v5317_v6 = vcombine.low %v109_v56, %v113_v57 }
  0x13   :  { %1266 = vmatprep.subr.bf16.mxu0 %v5294_v37  ;;  %1348 = vmatprep.subr.bf16.mxu1 %v5296_v38  ;;  %v121_v2 = vld [vmem:[%s8652_s3 + $0x220] sm:$0xff]  ;;  %v5328_v9 = vcombine.high %v118_v4, %v122_v5  ;;  %v126_v12 = vld [vmem:[%s8652_s3 + $0x248] sm:$0xff]  ;;  %v5327_v15 = vcombine.low %v118_v4, %v122_v5 }
  0x14   :  { %1290 = vmatprep.mubr.bf16.mxu0 %v6719_v58  ;;  %1372 = vmatprep.mubr.bf16.mxu1 %v6719_v58  ;;  %v5326_v8 = vcombine.high %v117_v1, %v121_v2  ;;  %v125_v10 = vld [vmem:[%s8652_s3 + $0x240] sm:$0xff]  ;;  %v130_v13 = vld [vmem:[%s8652_s3 + $0x268] sm:$0xff]  ;;  %v5325_v14 = vcombine.low %v117_v1, %v121_v2 }
  0x15   :  { %v129_v11 = vld [vmem:[%s8652_s3 + $0x260] sm:$0xff]  ;;  %v5336_v17 = vcombine.high %v126_v12, %v130_v13  ;;  %v134_v20 = vld [vmem:[%s8652_s3 + $0x288] sm:$0xff]  ;;  %v5335_v23 = vcombine.low %v126_v12, %v130_v13 }
  0x16   :  { %1267 = vmatpush1.bf16.msra.mxu0 %v5293_v43  ;;  %1349 = vmatpush1.bf16.msra.mxu1 %v5295_v44  ;;  %v5334_v16 = vcombine.high %v125_v10, %v129_v11  ;;  %v133_v18 = vld [vmem:[%s8652_s3 + $0x280] sm:$0xff]  ;;  %v138_v21 = vld [vmem:[%s8652_s3 + $0x2a8] sm:$0xff]  ;;  %v5333_v22 = vcombine.low %v125_v10, %v129_v11 }
  0x17   :  { %1268 = vmatprep.subr.bf16.mxu0 %v5302_v45  ;;  %1350 = vmatprep.subr.bf16.mxu1 %v5304_v46  ;;  %v137_v19 = vld [vmem:[%s8652_s3 + $0x2a0] sm:$0xff]  ;;  %v5344_v25 = vcombine.high %v134_v20, %v138_v21  ;;  %v142_v28 = vld [vmem:[%s8652_s3 + $0x2c8] sm:$0xff]  ;;  %v5343_v31 = vcombine.low %v134_v20, %v138_v21 }
  0x18   :  { %v5342_v24 = vcombine.high %v133_v18, %v137_v19  ;;  %v141_v26 = vld [vmem:[%s8652_s3 + $0x2c0] sm:$0xff]  ;;  %v146_v29 = vld [vmem:[%s8652_s3 + $0x2e8] sm:$0xff]  ;;  %v5341_v30 = vcombine.low %v133_v18, %v137_v19 }
  0x19   :  { %v145_v27 = vld [vmem:[%s8652_s3 + $0x2e0] sm:$0xff]  ;;  %v5352_v33 = vcombine.high %v142_v28, %v146_v29  ;;  %v150_v36 = vld [vmem:[%s8652_s3 + $0x308] sm:$0xff]  ;;  %v5351_v39 = vcombine.low %v142_v28, %v146_v29 }
  0x1a   :  { %1269 = vmatpush1.bf16.msra.mxu0 %v5301_v51  ;;  %1351 = vmatpush1.bf16.msra.mxu1 %v5303_v52  ;;  %v5350_v32 = vcombine.high %v141_v26, %v145_v27  ;;  %v149_v34 = vld [vmem:[%s8652_s3 + $0x300] sm:$0xff]  ;;  %v154_v37 = vld [vmem:[%s8652_s3 + $0x328] sm:$0xff]  ;;  %v5349_v38 = vcombine.low %v141_v26, %v145_v27 }
  0x1b   :  { %1270 = vmatprep.subr.bf16.mxu0 %v5310_v53  ;;  %1352 = vmatprep.subr.bf16.mxu1 %v5312_v55  ;;  %v153_v35 = vld [vmem:[%s8652_s3 + $0x320] sm:$0xff]  ;;  %v5360_v41 = vcombine.high %v150_v36, %v154_v37  ;;  %v158_v44 = vld [vmem:[%s8652_s3 + $0x348] sm:$0xff]  ;;  %v5359_v47 = vcombine.low %v150_v36, %v154_v37 }
  0x1c   :  { %v5358_v40 = vcombine.high %v149_v34, %v153_v35  ;;  %v157_v42 = vld [vmem:[%s8652_s3 + $0x340] sm:$0xff]  ;;  %v162_v45 = vld [vmem:[%s8652_s3 + $0x368] sm:$0xff]  ;;  %v5357_v46 = vcombine.low %v149_v34, %v153_v35 }
  0x1d   :  { %v161_v43 = vld [vmem:[%s8652_s3 + $0x360] sm:$0xff]  ;;  %v5368_v49 = vcombine.high %v158_v44, %v162_v45  ;;  %v166_v52 = vld [vmem:[%s8652_s3 + $0x388] sm:$0xff]  ;;  %v5367_v56 = vcombine.low %v158_v44, %v162_v45 }
  0x1e   :  { %1271 = vmatpush1.bf16.msra.mxu0 %v5309_v61  ;;  %1353 = vmatpush1.bf16.msra.mxu1 %v5311_v62  ;;  %v5366_v48 = vcombine.high %v157_v42, %v161_v43  ;;  %v165_v50 = vld [vmem:[%s8652_s3 + $0x380] sm:$0xff]  ;;  %v170_v53 = vld [vmem:[%s8652_s3 + $0x3a8] sm:$0xff]  ;;  %v5365_v55 = vcombine.low %v157_v42, %v161_v43 }
  0x1f   :  { %1272 = vmatprep.subr.bf16.mxu0 %v5318_v63  ;;  %1354 = vmatprep.subr.bf16.mxu1 %v5320_v0  ;;  %v169_v51 = vld [vmem:[%s8652_s3 + $0x3a0] sm:$0xff]  ;;  %v5376_v59 = vcombine.high %v166_v52, %v170_v53  ;;  %v174_v62 = vld [vmem:[%s8652_s3 + $0x3c8] sm:$0xff]  ;;  %v5375_v1 = vcombine.low %v166_v52, %v170_v53 }
  0x20   :  { %v5374_v57 = vcombine.high %v165_v50, %v169_v51  ;;  %v173_v60 = vld [vmem:[%s8652_s3 + $0x3c0] sm:$0xff]  ;;  %v178_v63 = vld [vmem:[%s8652_s3 + $0x3e8] sm:$0xff]  ;;  %v5373_v0 = vcombine.low %v165_v50, %v169_v51 }
  0x21   :  { %v177_v61 = vld [vmem:[%s8652_s3 + $0x3e0] sm:$0xff]  ;;  %v5384_v4 = vcombine.high %v174_v62, %v178_v63  ;;  %v5383_v10 = vcombine.low %v174_v62, %v178_v63 }
  0x22   :  { %1273 = vmatpush1.bf16.msra.mxu0 %v5317_v6  ;;  %1355 = vmatpush1.bf16.msra.mxu1 %v5319_v7  ;;  %v5382_v2 = vcombine.high %v173_v60, %v177_v61  ;;  %v181_v5 = vld [vmem:[%s8652_s3 + $0x400] sm:$0xff]  ;;  %v182_v7 = vld [vmem:[%s8652_s3 + $0x408] sm:$0xff] }
  0x23   :  { %1274 = vmatprep.subr.bf16.mxu0 %v5326_v8  ;;  %1356 = vmatprep.subr.bf16.mxu1 %v5328_v9  ;;  %v185_v6 = vld [vmem:[%s8652_s3 + $0x420] sm:$0xff]  ;;  %v186_v8 = vld [vmem:[%s8652_s3 + $0x428] sm:$0xff]  ;;  %v5381_v9 = vcombine.low %v173_v60, %v177_v61 }
  0x24   :  { %v5390_v11 = vcombine.high %v181_v5, %v185_v6  ;;  %v5392_v12 = vcombine.high %v182_v7, %v186_v8  ;;  %v189_v13 = vld [vmem:[%s8652_s3 + $0x440] sm:$0xff]  ;;  %v5389_v18 = vcombine.low %v181_v5, %v185_v6  ;;  %v5391_v19 = vcombine.low %v182_v7, %v186_v8  ;;  %v55_v5 = vld [vmem:[%s8652_s3 + $0x10] sm:$0xff] }
  0x25   :  { %v205_v26 = vld [vmem:[%s8652_s3 + $0x4c0] sm:$0xff]  ;;  %v59_v8 = vld [vmem:[%s8652_s3 + $0x30] sm:$0xff] }
  0x26   :  { %1275 = vmatpush1.bf16.msra.mxu0 %v5325_v14  ;;  %1357 = vmatpush1.bf16.msra.mxu1 %v5327_v15  ;;  %v193_v14 = vld [vmem:[%s8652_s3 + $0x460] sm:$0xff]  ;;  %v6845_v15 = vcombine.low %v6709_v54, %v6709_v54 }
  0x27   :  { %1276 = vmatprep.subr.bf16.mxu0 %v5334_v16  ;;  %1358 = vmatprep.subr.bf16.mxu1 %v5336_v17  ;;  %v190_v16 = vld [vmem:[%s8652_s3 + $0x448] sm:$0xff]  ;;  %v5398_v20 = vcombine.high %v189_v13, %v193_v14  ;;  %v197_v54 = vld [vmem:[%s8652_s3 + $0x480] sm:$0xff] }
  0x28   :  { %v194_v17 = vld [vmem:[%s8652_s3 + $0x468] sm:$0xff]  ;;  %v209_v29 = vld [vmem:[%s8652_s3 + $0x4e0] sm:$0xff] }
  0x29   :  { %v5400_v21 = vcombine.high %v190_v16, %v194_v17  ;;  %v5399_v27 = vcombine.low %v190_v16, %v194_v17  ;;  %v213_v34 = vld [vmem:[%s8652_s3 + $0x500] sm:$0xff]  ;;  %v5414_v36 = vcombine.high %v205_v26, %v209_v29  ;;  %v6950_v17 = vld [vmem:[%s8653_s0 + $0x8] ss:$0 sps:$4 sm:$0xff]  }
  0x2a   :  { %1277 = vmatpush1.bf16.msra.mxu0 %v5333_v22  ;;  %1359 = vmatpush1.bf16.msra.mxu1 %v5335_v23  ;;  %v201_v22 = vld [vmem:[%s8652_s3 + $0x4a0] sm:$0xff]  ;;  %v198_v23 = vld [vmem:[%s8652_s3 + $0x488] sm:$0xff] }
  0x2b   :  { %1278 = vmatprep.subr.bf16.mxu0 %v5342_v24  ;;  %1360 = vmatprep.subr.bf16.mxu1 %v5344_v25  ;;  %v202_v24 = vld [vmem:[%s8652_s3 + $0x4a8] sm:$0xff]  ;;  %v5397_v25 = vcombine.low %v189_v13, %v193_v14  ;;  %v5406_v28 = vcombine.high %v197_v54, %v201_v22  ;;  %v217_v37 = vld [vmem:[%s8652_s3 + $0x520] sm:$0xff]  ;;  %v63_v13 = vld [vmem:[%s8652_s3 + $0x50] sm:$0xff] }
  0x2c   :  { %v5407_v35 = vcombine.low %v198_v23, %v202_v24  ;;  %v221_v42 = vld [vmem:[%s8652_s3 + $0x540] sm:$0xff]  ;;  %v5422_v44 = vcombine.high %v213_v34, %v217_v37  ;;  %v67_v14 = vld [vmem:[%s8652_s3 + $0x70] sm:$0xff] }
  0x2d   :  { %v225_v45 = vld [vmem:[%s8652_s3 + $0x560] sm:$0xff] }
  0x2e   :  { %1279 = vmatpush1.bf16.msra.mxu0 %v5341_v30  ;;  %1361 = vmatpush1.bf16.msra.mxu1 %v5343_v31  ;;  %v5408_v30 = vcombine.high %v198_v23, %v202_v24  ;;  %v206_v31 = vld [vmem:[%s8652_s3 + $0x4c8] sm:$0xff]  ;;  %v229_v50 = vld [vmem:[%s8652_s3 + $0x580] sm:$0xff]  ;;  %v5430_v52 = vcombine.high %v221_v42, %v225_v45  ;;  %v75_v23 = vld [vmem:[%s8652_s3 + $0xb0] sm:$0xff] }
  0x2f   :  { %1280 = vmatprep.subr.bf16.mxu0 %v5350_v32  ;;  %1362 = vmatprep.subr.bf16.mxu1 %v5352_v33  ;;  %v210_v32 = vld [vmem:[%s8652_s3 + $0x4e8] sm:$0xff]  ;;  %v5405_v33 = vcombine.low %v197_v54, %v201_v22  ;;  %v233_v53 = vld [vmem:[%s8652_s3 + $0x5a0] sm:$0xff]  ;;  %v5265_v54 = vcombine.low %v55_v5, %v59_v8  ;;  %v71_v22 = vld [vmem:[%s8652_s3 + $0x90] sm:$0xff] }
  0x30   :  { %v5415_v43 = vcombine.low %v206_v31, %v210_v32  ;;  %v237_v60 = vld [vmem:[%s8652_s3 + $0x5c0] sm:$0xff]  ;;  %v5438_v62 = vcombine.high %v229_v50, %v233_v53 }
  0x31   :  { %v241_v63 = vld [vmem:[%s8652_s3 + $0x5e0] sm:$0xff] }
  0x32   :  { %1281 = vmatpush1.bf16.msra.mxu0 %v5349_v38  ;;  %1363 = vmatpush1.bf16.msra.mxu1 %v5351_v39  ;;  %v5416_v38 = vcombine.high %v206_v31, %v210_v32  ;;  %v214_v39 = vld [vmem:[%s8652_s3 + $0x508] sm:$0xff]  ;;  %v5446_v7 = vcombine.high %v237_v60, %v241_v63  ;;  %v83_v31 = vld [vmem:[%s8652_s3 + $0xf0] sm:$0xff] }
  0x33   :  { %1282 = vmatprep.subr.bf16.mxu0 %v5358_v40  ;;  %1364 = vmatprep.subr.bf16.mxu1 %v5360_v41  ;;  %v218_v40 = vld [vmem:[%s8652_s3 + $0x528] sm:$0xff]  ;;  %v5413_v41 = vcombine.low %v205_v26, %v209_v29  ;;  %v72_v26 = vld [vmem:[%s8652_s3 + $0x98] sm:$0xff]  ;;  %v5273_v29 = vcombine.low %v63_v13, %v67_v14 }
  0x34   :  { %v5423_v51 = vcombine.low %v214_v39, %v218_v40 }
  0x36   :  { %1283 = vmatpush1.bf16.msra.mxu0 %v5357_v46  ;;  %1365 = vmatpush1.bf16.msra.mxu1 %v5359_v47  ;;  %v5424_v46 = vcombine.high %v214_v39, %v218_v40  ;;  %v222_v47 = vld [vmem:[%s8652_s3 + $0x548] sm:$0xff]  ;;  %v91_v39 = vld [vmem:[%s8652_s3 + $0x130] sm:$0xff] }
  0x37   :  { %1284 = vmatprep.subr.bf16.mxu0 %v5366_v48  ;;  %1366 = vmatprep.subr.bf16.mxu1 %v5368_v49  ;;  %v226_v48 = vld [vmem:[%s8652_s3 + $0x568] sm:$0xff]  ;;  %v5421_v49 = vcombine.low %v213_v34, %v217_v37  ;;  %v80_v34 = vld [vmem:[%s8652_s3 + $0xd8] sm:$0xff]  ;;  %v5281_v37 = vcombine.low %v71_v22, %v75_v23 }
  0x38   :  { %v5431_v61 = vcombine.low %v222_v47, %v226_v48 }
  0x3a   :  { %1285 = vmatpush1.bf16.msra.mxu0 %v5365_v55  ;;  %1367 = vmatpush1.bf16.msra.mxu1 %v5367_v56  ;;  %v5432_v55 = vcombine.high %v222_v47, %v226_v48  ;;  %v230_v56 = vld [vmem:[%s8652_s3 + $0x588] sm:$0xff] }
  0x3b   :  { %1286 = vmatprep.subr.bf16.mxu0 %v5374_v57  ;;  %1368 = vmatprep.subr.bf16.mxu1 %v5376_v59  ;;  %v234_v57 = vld [vmem:[%s8652_s3 + $0x5a8] sm:$0xff]  ;;  %v5429_v59 = vcombine.low %v221_v42, %v225_v45  ;;  %v88_v42 = vld [vmem:[%s8652_s3 + $0x118] sm:$0xff]  ;;  %v95_v45 = vld [vmem:[%s8652_s3 + $0x150] sm:$0xff] }
  0x3c   :  { %v5439_v6 = vcombine.low %v230_v56, %v234_v57 }
  0x3e   :  { %1287 = vmatpush1.bf16.msra.mxu0 %v5373_v0  ;;  %1369 = vmatpush1.bf16.msra.mxu1 %v5375_v1  ;;  %v5440_v0 = vcombine.high %v230_v56, %v234_v57  ;;  %v238_v1 = vld [vmem:[%s8652_s3 + $0x5c8] sm:$0xff] }
  0x3f   :  { %1288 = vmatprep.subr.bf16.mxu0 %v5382_v2  ;;  %1370 = vmatprep.subr.bf16.mxu1 %v5384_v4  ;;  %v242_v2 = vld [vmem:[%s8652_s3 + $0x5e8] sm:$0xff]  ;;  %v5437_v4 = vcombine.low %v229_v50, %v233_v53  ;;  %v100_v50 = vld [vmem:[%s8652_s3 + $0x178] sm:$0xff]  ;;  %v103_v53 = vld [vmem:[%s8652_s3 + $0x190] sm:$0xff] }
  0x40   :  { %v5447_v16 = vcombine.low %v238_v1, %v242_v2 }
  0x42   :  { %1289 = vmatpush1.bf16.msra.mxu0 %v5381_v9  ;;  %1371 = vmatpush1.bf16.msra.mxu1 %v5383_v10  ;;  %v5448_v9 = vcombine.high %v238_v1, %v242_v2  ;;  %v56_v10 = vld [vmem:[%s8652_s3 + $0x18] sm:$0xff] }
  0x43   :  { %1299 = vmatprep.subr.bf16.mxu0 %v5390_v11  ;;  %1381 = vmatprep.subr.bf16.mxu1 %v5392_v12  ;;  %v60_v11 = vld [vmem:[%s8652_s3 + $0x38] sm:$0xff]  ;;  %v5445_v12 = vcombine.low %v237_v60, %v241_v63  ;;  %v111_v63 = vld [vmem:[%s8652_s3 + $0x1d0] sm:$0xff] }
  0x44   :  { %v5267_v24 = vcombine.low %v56_v10, %v60_v11  ;;  %v108_v60 = vld [vmem:[%s8652_s3 + $0x1b8] sm:$0xff] }
  0x45   :  { %1291 = vmatmul.mubr.bf16.vlgmr.msra.gmra.mrb[0].mxu0 %v6845_v15  ;;  %1373 = vmatmul.mubr.bf16.vlgmr.msra.gmra.mrb[0].mxu1 %v6845_v15 }
  0x46   :  { %1300 = vmatpush1.bf16.msra.mxu0 %v5389_v18  ;;  %1382 = vmatpush1.bf16.msra.mxu1 %v5391_v19  ;;  %v5266_v18 = vcombine.high %v55_v5, %v59_v8  ;;  %v64_v19 = vld [vmem:[%s8652_s3 + $0x58] sm:$0xff] }
  0x47   :  { %1301 = vmatprep.subr.bf16.mxu0 %v5398_v20  ;;  %1383 = vmatprep.subr.bf16.mxu1 %v5400_v21  ;;  %v68_v20 = vld [vmem:[%s8652_s3 + $0x78] sm:$0xff]  ;;  %v5268_v21 = vcombine.high %v56_v10, %v60_v11  ;;  %v119_v11 = vld [vmem:[%s8652_s3 + $0x210] sm:$0xff] }
  0x48   :  { %1331 = vmatprep.mubr.bf16.mxu0 %v6540_v3  ;;  %1413 = vmatprep.mubr.bf16.mxu1 %v6540_v3  ;;  %v5275_v32 = vcombine.low %v64_v19, %v68_v20  ;;  %v116_v5 = vld [vmem:[%s8652_s3 + $0x1f8] sm:$0xff] }
  0x4a   :  { %1302 = vmatpush1.bf16.msra.mxu0 %v5397_v25  ;;  %1384 = vmatpush1.bf16.msra.mxu1 %v5399_v27  ;;  %v5274_v25 = vcombine.high %v63_v13, %v67_v14  ;;  %v76_v27 = vld [vmem:[%s8652_s3 + $0xb8] sm:$0xff] }
  0x4b   :  { %1303 = vmatprep.subr.bf16.mxu0 %v5406_v28  ;;  %1385 = vmatprep.subr.bf16.mxu1 %v5408_v30  ;;  %v5276_v28 = vcombine.high %v64_v19, %v68_v20  ;;  %v79_v30 = vld [vmem:[%s8652_s3 + $0xd0] sm:$0xff]  ;;  %v5283_v40 = vcombine.low %v72_v26, %v76_v27  ;;  %v120_v13 = vld [vmem:[%s8652_s3 + $0x218] sm:$0xff] }
  0x4c   :  { %v124_v14 = vld [vmem:[%s8652_s3 + $0x238] sm:$0xff] }
  0x4d   :  { %v5332_v20 = vcombine.high %v120_v13, %v124_v14 }
  0x4e   :  { %1304 = vmatpush1.bf16.msra.mxu0 %v5405_v33  ;;  %1386 = vmatpush1.bf16.msra.mxu1 %v5407_v35  ;;  %v5282_v33 = vcombine.high %v71_v22, %v75_v23  ;;  %v84_v35 = vld [vmem:[%s8652_s3 + $0xf8] sm:$0xff] }
  0x4f   :  { %1305 = vmatprep.subr.bf16.mxu0 %v5414_v36  ;;  %1387 = vmatprep.subr.bf16.mxu1 %v5416_v38  ;;  %v5284_v36 = vcombine.high %v72_v26, %v76_v27  ;;  %v87_v38 = vld [vmem:[%s8652_s3 + $0x110] sm:$0xff]  ;;  %v5291_v47 = vcombine.low %v80_v34, %v84_v35  ;;  %v128_v22 = vld [vmem:[%s8652_s3 + $0x258] sm:$0xff] }
  0x50   :  { %v5298_v48 = vcombine.high %v87_v38, %v91_v39  ;;  %v132_v23 = vld [vmem:[%s8652_s3 + $0x278] sm:$0xff] }
  0x51   :  { %v5340_v27 = vcombine.high %v128_v22, %v132_v23 }
  0x52   :  { %1306 = vmatpush1.bf16.msra.mxu0 %v5413_v41  ;;  %1388 = vmatpush1.bf16.msra.mxu1 %v5415_v43  ;;  %v5290_v41 = vcombine.high %v79_v30, %v83_v31  ;;  %v5292_v43 = vcombine.high %v80_v34, %v84_v35 }
  0x53   :  { %1307 = vmatprep.subr.bf16.mxu0 %v5422_v44  ;;  %1389 = vmatprep.subr.bf16.mxu1 %v5424_v46  ;;  %v5289_v44 = vcombine.low %v79_v30, %v83_v31  ;;  %v99_v46 = vld [vmem:[%s8652_s3 + $0x170] sm:$0xff]  ;;  %v136_v30 = vld [vmem:[%s8652_s3 + $0x298] sm:$0xff] }
  0x54   :  { %v5306_v57 = vcombine.high %v95_v45, %v99_v46  ;;  %v140_v31 = vld [vmem:[%s8652_s3 + $0x2b8] sm:$0xff] }
  0x55   :  { %v5348_v35 = vcombine.high %v136_v30, %v140_v31 }
  0x56   :  { %1308 = vmatpush1.bf16.msra.mxu0 %v5421_v49  ;;  %1390 = vmatpush1.bf16.msra.mxu1 %v5423_v51  ;;  %v96_v49 = vld [vmem:[%s8652_s3 + $0x158] sm:$0xff] }
  0x57   :  { %1309 = vmatprep.subr.bf16.mxu0 %v5430_v52  ;;  %1391 = vmatprep.subr.bf16.mxu1 %v5432_v55  ;;  %v5297_v52 = vcombine.low %v87_v38, %v91_v39  ;;  %v107_v55 = vld [vmem:[%s8652_s3 + $0x1b0] sm:$0xff]  ;;  %v5307_v1 = vcombine.low %v96_v49, %v100_v50  ;;  %v144_v38 = vld [vmem:[%s8652_s3 + $0x2d8] sm:$0xff] }
  0x58   :  { %v5314_v2 = vcombine.high %v103_v53, %v107_v55  ;;  %v148_v39 = vld [vmem:[%s8652_s3 + $0x2f8] sm:$0xff] }
  0x5a   :  { %1310 = vmatpush1.bf16.msra.mxu0 %v5429_v59  ;;  %1392 = vmatpush1.bf16.msra.mxu1 %v5431_v61  ;;  %v104_v59 = vld [vmem:[%s8652_s3 + $0x198] sm:$0xff]  ;;  %v5308_v61 = vcombine.high %v96_v49, %v100_v50 }
  0x5b   :  { %1311 = vmatprep.subr.bf16.mxu0 %v5438_v62  ;;  %1393 = vmatprep.subr.bf16.mxu1 %v5440_v0  ;;  %v5305_v62 = vcombine.low %v95_v45, %v99_v46  ;;  %v115_v0 = vld [vmem:[%s8652_s3 + $0x1f0] sm:$0xff]  ;;  %v5315_v8 = vcombine.low %v104_v59, %v108_v60  ;;  %v152_v45 = vld [vmem:[%s8652_s3 + $0x318] sm:$0xff] }
  0x5c   :  { %v156_v46 = vld [vmem:[%s8652_s3 + $0x338] sm:$0xff] }
  0x5d   :  { %v5364_v50 = vcombine.high %v152_v45, %v156_v46 }
  0x5e   :  { %1312 = vmatpush1.bf16.msra.mxu0 %v5437_v4  ;;  %1394 = vmatpush1.bf16.msra.mxu1 %v5439_v6  ;;  %v112_v4 = vld [vmem:[%s8652_s3 + $0x1d8] sm:$0xff]  ;;  %v5316_v6 = vcombine.high %v104_v59, %v108_v60 }
  0x5f   :  { %1313 = vmatprep.subr.bf16.mxu0 %v5446_v7  ;;  %1395 = vmatprep.subr.bf16.mxu1 %v5448_v9  ;;  %v5313_v7 = vcombine.low %v103_v53, %v107_v55  ;;  %v5322_v9 = vcombine.high %v111_v63, %v115_v0  ;;  %v5324_v10 = vcombine.high %v112_v4, %v116_v5  ;;  %v160_v53 = vld [vmem:[%s8652_s3 + $0x358] sm:$0xff] }
  0x60   :  { %v164_v55 = vld [vmem:[%s8652_s3 + $0x378] sm:$0xff] }
  0x61   :  { %v5372_v60 = vcombine.high %v160_v53, %v164_v55 }
  0x62   :  { %1314 = vmatpush1.bf16.msra.mxu0 %v5445_v12  ;;  %1396 = vmatpush1.bf16.msra.mxu1 %v5447_v16  ;;  %v123_v12 = vld [vmem:[%s8652_s3 + $0x230] sm:$0xff]  ;;  %v5321_v16 = vcombine.low %v111_v63, %v115_v0  ;;  %v168_v63 = vld [vmem:[%s8652_s3 + $0x398] sm:$0xff] }
  0x63   :  { %1422 = vmatprep.subr.bf16.mxu0 %v5266_v18  ;;  %1504 = vmatprep.subr.bf16.mxu1 %v5268_v21  ;;  %v5323_v18 = vcombine.low %v112_v4, %v116_v5  ;;  %v5330_v19 = vcombine.high %v119_v11, %v123_v12  ;;  %v127_v21 = vld [vmem:[%s8652_s3 + $0x250] sm:$0xff]  ;;  %v172_v0 = vld [vmem:[%s8652_s3 + $0x3b8] sm:$0xff] }
  0x64   :  { %v5380_v5 = vcombine.high %v168_v63, %v172_v0 }
  0x65   :  { %1332 = vmatmul.mubr.bf16.vlgmr.msra.gmra.mrb[0].mxu0 %v6950_v17  ;;  %1414 = vmatmul.mubr.bf16.vlgmr.msra.gmra.mrb[0].mxu1 %v6950_v17 }
  0x66   :  { %1423 = vmatpush1.bf16.msra.mxu0 %v5265_v54  ;;  %1505 = vmatpush1.bf16.msra.mxu1 %v5267_v24  ;;  %v131_v54 = vld [vmem:[%s8652_s3 + $0x270] sm:$0xff]  ;;  %v5329_v24 = vcombine.low %v119_v11, %v123_v12  ;;  %v5379_v11 = vcombine.low %v168_v63, %v172_v0 }
  0x67   :  { %1424 = vmatprep.subr.bf16.mxu0 %v5274_v25  ;;  %1506 = vmatprep.subr.bf16.mxu1 %v5276_v28  ;;  %v5331_v25 = vcombine.low %v120_v13, %v124_v14  ;;  %v5338_v26 = vcombine.high %v127_v21, %v131_v54  ;;  %v135_v28 = vld [vmem:[%s8652_s3 + $0x290] sm:$0xff] }
  0x68   :  { %1454 = vmatprep.mubr.bf16.mxu0 %v6719_v58  ;;  %1536 = vmatprep.mubr.bf16.mxu1 %v6719_v58  ;;  %v92_v58 = vld [vmem:[%s8652_s3 + $0x138] sm:$0xff]  ;;  %v183_v14 = vld [vmem:[%s8652_s3 + $0x410] sm:$0xff] }
  0x69   :  { %v5300_v51 = vcombine.high %v88_v42, %v92_v58  ;;  %v5299_v56 = vcombine.low %v88_v42, %v92_v58  ;;  %v5356_v58 = vcombine.high %v144_v38, %v148_v39  ;;  %v231_v63 = vld [vmem:[%s8652_s3 + $0x590] sm:$0xff] }
  0x6a   :  { %1425 = vmatpush1.bf16.msra.mxu0 %v5273_v29  ;;  %1507 = vmatpush1.bf16.msra.mxu1 %v5275_v32  ;;  %v139_v29 = vld [vmem:[%s8652_s3 + $0x2b0] sm:$0xff]  ;;  %v5337_v32 = vcombine.low %v127_v21, %v131_v54 }
  0x6b   :  { %1426 = vmatprep.subr.bf16.mxu0 %v5282_v33  ;;  %1508 = vmatprep.subr.bf16.mxu1 %v5284_v36  ;;  %v5339_v33 = vcombine.low %v128_v22, %v132_v23  ;;  %v5346_v34 = vcombine.high %v135_v28, %v139_v29  ;;  %v143_v36 = vld [vmem:[%s8652_s3 + $0x2d0] sm:$0xff] }
  0x6c   :  { %v191_v23 = vld [vmem:[%s8652_s3 + $0x450] sm:$0xff] }
  0x6d   :  { %v235_v0 = vld [vmem:[%s8652_s3 + $0x5b0] sm:$0xff] }
  0x6e   :  { %1427 = vmatpush1.bf16.msra.mxu0 %v5281_v37  ;;  %1509 = vmatpush1.bf16.msra.mxu1 %v5283_v40  ;;  %v147_v37 = vld [vmem:[%s8652_s3 + $0x2f0] sm:$0xff]  ;;  %v5345_v40 = vcombine.low %v135_v28, %v139_v29 }
  0x6f   :  { %1428 = vmatprep.subr.bf16.mxu0 %v5290_v41  ;;  %1510 = vmatprep.subr.bf16.mxu1 %v5292_v43  ;;  %v5347_v41 = vcombine.low %v136_v30, %v140_v31  ;;  %v5354_v42 = vcombine.high %v143_v36, %v147_v37  ;;  %v151_v43 = vld [vmem:[%s8652_s3 + $0x310] sm:$0xff] }
  0x70   :  { %v199_v31 = vld [vmem:[%s8652_s3 + $0x490] sm:$0xff] }
  0x72   :  { %1429 = vmatpush1.bf16.msra.mxu0 %v5289_v44  ;;  %1511 = vmatpush1.bf16.msra.mxu1 %v5291_v47  ;;  %v155_v44 = vld [vmem:[%s8652_s3 + $0x330] sm:$0xff]  ;;  %v5353_v47 = vcombine.low %v143_v36, %v147_v37 }
  0x73   :  { %1430 = vmatprep.subr.bf16.mxu0 %v5298_v48  ;;  %1512 = vmatprep.subr.bf16.mxu1 %v5300_v51  ;;  %v5355_v48 = vcombine.low %v144_v38, %v148_v39  ;;  %v5362_v49 = vcombine.high %v151_v43, %v155_v44  ;;  %v159_v51 = vld [vmem:[%s8652_s3 + $0x350] sm:$0xff] }
  0x74   :  { %v207_v39 = vld [vmem:[%s8652_s3 + $0x4d0] sm:$0xff] }
  0x76   :  { %1431 = vmatpush1.bf16.msra.mxu0 %v5297_v52  ;;  %1513 = vmatpush1.bf16.msra.mxu1 %v5299_v56  ;;  %v163_v52 = vld [vmem:[%s8652_s3 + $0x370] sm:$0xff]  ;;  %v5361_v56 = vcombine.low %v151_v43, %v155_v44 }
  0x77   :  { %1432 = vmatprep.subr.bf16.mxu0 %v5306_v57  ;;  %1514 = vmatprep.subr.bf16.mxu1 %v5308_v61  ;;  %v5363_v57 = vcombine.low %v152_v45, %v156_v46  ;;  %v5370_v59 = vcombine.high %v159_v51, %v163_v52  ;;  %v167_v61 = vld [vmem:[%s8652_s3 + $0x390] sm:$0xff] }
  0x78   :  { %v215_v45 = vld [vmem:[%s8652_s3 + $0x510] sm:$0xff] }
  0x79   :  { %v219_v46 = vld [vmem:[%s8652_s3 + $0x530] sm:$0xff] }
  0x7a   :  { %1433 = vmatpush1.bf16.msra.mxu0 %v5305_v62  ;;  %1515 = vmatpush1.bf16.msra.mxu1 %v5307_v1  ;;  %v171_v62 = vld [vmem:[%s8652_s3 + $0x3b0] sm:$0xff]  ;;  %v5369_v1 = vcombine.low %v159_v51, %v163_v52  ;;  %v5426_v51 = vcombine.high %v215_v45, %v219_v46 }
  0x7b   :  { %1434 = vmatprep.subr.bf16.mxu0 %v5314_v2  ;;  %1516 = vmatprep.subr.bf16.mxu1 %v5316_v6  ;;  %v5371_v2 = vcombine.low %v160_v53, %v164_v55  ;;  %v5378_v4 = vcombine.high %v167_v61, %v171_v62  ;;  %v175_v6 = vld [vmem:[%s8652_s3 + $0x3d0] sm:$0xff] }
  0x7c   :  { %v223_v53 = vld [vmem:[%s8652_s3 + $0x550] sm:$0xff] }
  0x7d   :  { %v227_v55 = vld [vmem:[%s8652_s3 + $0x570] sm:$0xff] }
  0x7e   :  { %1435 = vmatpush1.bf16.msra.mxu0 %v5313_v7  ;;  %1517 = vmatpush1.bf16.msra.mxu1 %v5315_v8  ;;  %v179_v7 = vld [vmem:[%s8652_s3 + $0x3f0] sm:$0xff]  ;;  %v176_v8 = vld [vmem:[%s8652_s3 + $0x3d8] sm:$0xff] }
  0x7f   :  { %1436 = vmatprep.subr.bf16.mxu0 %v5322_v9  ;;  %1518 = vmatprep.subr.bf16.mxu1 %v5324_v10  ;;  %v180_v9 = vld [vmem:[%s8652_s3 + $0x3f8] sm:$0xff]  ;;  %v5377_v10 = vcombine.low %v167_v61, %v171_v62  ;;  %v5386_v12 = vcombine.high %v175_v6, %v179_v7  ;;  %v5434_v61 = vcombine.high %v223_v53, %v227_v55 }
  0x80   :  { %v5388_v13 = vcombine.high %v176_v8, %v180_v9  ;;  %v5387_v21 = vcombine.low %v176_v8, %v180_v9  ;;  %v239_v8 = vld [vmem:[%s8652_s3 + $0x5d0] sm:$0xff] }
  0x81   :  { %v243_v9 = vld [vmem:[%s8652_s3 + $0x5f0] sm:$0xff] }
  0x82   :  { %1437 = vmatpush1.bf16.msra.mxu0 %v5321_v16  ;;  %1519 = vmatpush1.bf16.msra.mxu1 %v5323_v18  ;;  %v187_v16 = vld [vmem:[%s8652_s3 + $0x430] sm:$0xff]  ;;  %v184_v18 = vld [vmem:[%s8652_s3 + $0x418] sm:$0xff] }
  0x83   :  { %1438 = vmatprep.subr.bf16.mxu0 %v5330_v19  ;;  %1520 = vmatprep.subr.bf16.mxu1 %v5332_v20  ;;  %v188_v19 = vld [vmem:[%s8652_s3 + $0x438] sm:$0xff]  ;;  %v5385_v20 = vcombine.low %v175_v6, %v179_v7  ;;  %v5394_v54 = vcombine.high %v183_v14, %v187_v16  ;;  %v5442_v6 = vcombine.high %v231_v63, %v235_v0 }
  0x84   :  { %v5396_v22 = vcombine.high %v184_v18, %v188_v19  ;;  %v5395_v28 = vcombine.low %v184_v18, %v188_v19  ;;  %v5449_v18 = vcombine.low %v239_v8, %v243_v9 }
  0x86   :  { %1439 = vmatpush1.bf16.msra.mxu0 %v5329_v24  ;;  %1521 = vmatpush1.bf16.msra.mxu1 %v5331_v25  ;;  %v195_v24 = vld [vmem:[%s8652_s3 + $0x470] sm:$0xff]  ;;  %v192_v25 = vld [vmem:[%s8652_s3 + $0x458] sm:$0xff] }
  0x87   :  { %1440 = vmatprep.subr.bf16.mxu0 %v5338_v26  ;;  %1522 = vmatprep.subr.bf16.mxu1 %v5340_v27  ;;  %v196_v26 = vld [vmem:[%s8652_s3 + $0x478] sm:$0xff]  ;;  %v5393_v27 = vcombine.low %v183_v14, %v187_v16  ;;  %v5402_v29 = vcombine.high %v191_v23, %v195_v24  ;;  %v5450_v14 = vcombine.high %v239_v8, %v243_v9 }
  0x88   :  { %v5404_v30 = vcombine.high %v192_v25, %v196_v26  ;;  %v5403_v36 = vcombine.low %v192_v25, %v196_v26  ;;  %v6066_v25 = vld [vmem:[%s8654_s5 + $0x8] sm:$0xff]  }
  0x89   :  { %v6067_v26 = vld [vmem:[%s8654_s5 + $0x88] sm:$0xff]  }
  0x8a   :  { %1441 = vmatpush1.bf16.msra.mxu0 %v5337_v32  ;;  %1523 = vmatpush1.bf16.msra.mxu1 %v5339_v33  ;;  %v203_v32 = vld [vmem:[%s8652_s3 + $0x4b0] sm:$0xff]  ;;  %v200_v33 = vld [vmem:[%s8652_s3 + $0x498] sm:$0xff] }
  0x8b   :  { %1442 = vmatprep.subr.bf16.mxu0 %v5346_v34  ;;  %1524 = vmatprep.subr.bf16.mxu1 %v5348_v35  ;;  %v204_v34 = vld [vmem:[%s8652_s3 + $0x4b8] sm:$0xff]  ;;  %v5401_v35 = vcombine.low %v191_v23, %v195_v24  ;;  %v5410_v37 = vcombine.high %v199_v31, %v203_v32  ;;  %v6064_v23 = vld [vmem:[%s8654_s5 + $0x48] sm:$0xff]  }
  0x8c   :  { %v5412_v38 = vcombine.high %v200_v33, %v204_v34  ;;  %v6065_v24 = vld [vmem:[%s8654_s5 + $0xc8] sm:$0xff]  }
  0x8e   :  { %1443 = vmatpush1.bf16.msra.mxu0 %v5345_v40  ;;  %1525 = vmatpush1.bf16.msra.mxu1 %v5347_v41  ;;  %v211_v40 = vld [vmem:[%s8652_s3 + $0x4f0] sm:$0xff]  ;;  %v212_v41 = vld [vmem:[%s8652_s3 + $0x4f8] sm:$0xff] }
  0x8f   :  { %1444 = vmatprep.subr.bf16.mxu0 %v5354_v42  ;;  %1526 = vmatprep.subr.bf16.mxu1 %v5356_v58  ;;  %v5409_v42 = vcombine.low %v199_v31, %v203_v32  ;;  %v5411_v58 = vcombine.low %v200_v33, %v204_v34  ;;  %v5418_v43 = vcombine.high %v207_v39, %v211_v40  ;;  %v6073_v31 = vld [vmem:[%s8654_s5 + $0xd8] sm:$0xff]   ;;  %v6076_v34 = vld [vmem:[%s8654_s5 + $0x60] sm:$0xff]  }
  0x90   :  { %v6074_v32 = vld [vmem:[%s8654_s5 + $0x18] sm:$0xff]  }
  0x91   :  { %v6075_v33 = vld [vmem:[%s8654_s5 + $0x98] sm:$0xff]  }
  0x92   :  { %1445 = vmatpush1.bf16.msra.mxu0 %v5353_v47  ;;  %1527 = vmatpush1.bf16.msra.mxu1 %v5355_v48  ;;  %v216_v47 = vld [vmem:[%s8652_s3 + $0x518] sm:$0xff] }
  0x93   :  { %1446 = vmatprep.subr.bf16.mxu0 %v5362_v49  ;;  %1528 = vmatprep.subr.bf16.mxu1 %v5364_v50  ;;  %v220_v48 = vld [vmem:[%s8652_s3 + $0x538] sm:$0xff]  ;;  %v5417_v49 = vcombine.low %v207_v39, %v211_v40  ;;  %v6081_v39 = vld [vmem:[%s8654_s5 + $0xe8] sm:$0xff]  }
  0x94   :  { %v5428_v52 = vcombine.high %v216_v47, %v220_v48  ;;  %v6082_v40 = vld [vmem:[%s8654_s5 + $0x28] sm:$0xff]  }
  0x96   :  { %1447 = vmatpush1.bf16.msra.mxu0 %v5361_v56  ;;  %1529 = vmatpush1.bf16.msra.mxu1 %v5363_v57  ;;  %v224_v56 = vld [vmem:[%s8652_s3 + $0x558] sm:$0xff] }
  0x97   :  { %1448 = vmatprep.subr.bf16.mxu0 %v5370_v59  ;;  %1530 = vmatprep.subr.bf16.mxu1 %v5372_v60  ;;  %v228_v57 = vld [vmem:[%s8652_s3 + $0x578] sm:$0xff]  ;;  %v5425_v59 = vcombine.low %v215_v45, %v219_v46  ;;  %v5427_v60 = vcombine.low %v216_v47, %v220_v48  ;;  %v6092_v48 = vld [vmem:[%s8654_s5 + $0x140] sm:$0xff]  }
  0x98   :  { %v5436_v62 = vcombine.high %v224_v56, %v228_v57  ;;  %v6089_v45 = vld [vmem:[%s8654_s5 + $0xf8] sm:$0xff]  }
  0x99   :  { %v6090_v46 = vld [vmem:[%s8654_s5 + $0x38] sm:$0xff]  }
  0x9a   :  { %1449 = vmatpush1.bf16.msra.mxu0 %v5369_v1  ;;  %1531 = vmatpush1.bf16.msra.mxu1 %v5371_v2  ;;  %v232_v1 = vld [vmem:[%s8652_s3 + $0x598] sm:$0xff] }
  0x9b   :  { %1450 = vmatprep.subr.bf16.mxu0 %v5378_v4  ;;  %1532 = vmatprep.subr.bf16.mxu1 %v5380_v5  ;;  %v236_v2 = vld [vmem:[%s8652_s3 + $0x5b8] sm:$0xff]  ;;  %v5433_v4 = vcombine.low %v223_v53, %v227_v55  ;;  %v5435_v5 = vcombine.low %v224_v56, %v228_v57  ;;  %v7342_v53 = vld [vmem:[%s8655_s4] sm:$0xff] }
  0x9c   :  { %v5444_v7 = vcombine.high %v232_v1, %v236_v2  ;;  %v6091_v47 = vld [vmem:[%s8654_s5 + $0xb8] sm:$0xff]  }
  0x9e   :  { %1451 = vmatpush1.bf16.msra.mxu0 %v5377_v10  ;;  %1533 = vmatpush1.bf16.msra.mxu1 %v5379_v11  ;;  %v240_v10 = vld [vmem:[%s8652_s3 + $0x5d8] sm:$0xff] }
  0x9f   :  { %1452 = vmatprep.subr.bf16.mxu0 %v5386_v12  ;;  %1534 = vmatprep.subr.bf16.mxu1 %v5388_v13  ;;  %v244_v11 = vld [vmem:[%s8652_s3 + $0x5f8] sm:$0xff]  ;;  %v5441_v12 = vcombine.low %v231_v63, %v235_v0  ;;  %v5443_v13 = vcombine.low %v232_v1, %v236_v2 }
  0xa0   :  { %v5452_v16 = vcombine.high %v240_v10, %v244_v11  ;;  %v5451_v19 = vcombine.low %v240_v10, %v244_v11 }
  0xa2   :  { %1453 = vmatpush1.bf16.msra.mxu0 %v5385_v20  ;;  %1535 = vmatpush1.bf16.msra.mxu1 %v5387_v21  ;;  %v6060_v20 = vld [vmem:[%s8654_s5 + $0x40] sm:$0xff]  }
  0xa3   :  { %1463 = vmatprep.subr.bf16.mxu0 %v5394_v54  ;;  %1545 = vmatprep.subr.bf16.mxu1 %v5396_v22  ;;  %v6061_v21 = vld [vmem:[%s8654_s5 + $0xc0] sm:$0xff]  }
  0xa4   :  { %v6062_v54 = vld [vmem:[%s8654_s5] sm:$0xff]  }
  0xa5   :  { %1455 = vmatmul.mubr.bf16.vlgmr.msra.gmra.mrb[4].mxu0 %v6845_v15  ;;  %1537 = vmatmul.mubr.bf16.vlgmr.msra.gmra.mrb[4].mxu1 %v6845_v15  ;;  %v208_v15 = vld [vmem:[%s8652_s3 + $0x4d8] sm:$0xff]  ;;  %v6063_v22 = vld [vmem:[%s8654_s5 + $0x80] sm:$0xff]  }
  0xa6   :  { %1464 = vmatpush1.bf16.msra.mxu0 %v5393_v27  ;;  %1546 = vmatpush1.bf16.msra.mxu1 %v5395_v28  ;;  %v5420_v44 = vcombine.high %v208_v15, %v212_v41  ;;  %v5419_v50 = vcombine.low %v208_v15, %v212_v41  ;;  %v6068_v27 = vld [vmem:[%s8654_s5 + $0x50] sm:$0xff]   ;;  %v6083_v15 = vld [vmem:[%s8654_s5 + $0xa8] sm:$0xff]  }
  0xa7   :  { %1465 = vmatprep.subr.bf16.mxu0 %v5402_v29  ;;  %1547 = vmatprep.subr.bf16.mxu1 %v5404_v30  ;;  %v6070_v28 = vld [vmem:[%s8654_s5 + $0x10] sm:$0xff]   ;;  %v6072_v30 = vld [vmem:[%s8654_s5 + $0x58] sm:$0xff]  }
  0xa8   :  { %1495 = vmatprep.mubr.bf16.mxu0 %v6540_v3  ;;  %1577 = vmatprep.mubr.bf16.mxu1 %v6540_v3  ;;  %v6071_v29 = vld [vmem:[%s8654_s5 + $0x90] sm:$0xff]  }
  0xa9   :  { %v6084_v41 = vld [vmem:[%s8654_s5 + $0x70] sm:$0xff]  }
  0xaa   :  { %1466 = vmatpush1.bf16.msra.mxu0 %v5401_v35  ;;  %1548 = vmatpush1.bf16.msra.mxu1 %v5403_v36  ;;  %v6077_v35 = vld [vmem:[%s8654_s5 + $0xe0] sm:$0xff]  }
  0xab   :  { %1467 = vmatprep.subr.bf16.mxu0 %v5410_v37  ;;  %1549 = vmatprep.subr.bf16.mxu1 %v5412_v38  ;;  %v6078_v36 = vld [vmem:[%s8654_s5 + $0x20] sm:$0xff]   ;;  %v6080_v38 = vld [vmem:[%s8654_s5 + $0x68] sm:$0xff]  }
  0xac   :  { %v6079_v37 = vld [vmem:[%s8654_s5 + $0xa0] sm:$0xff]  }
  0xae   :  { %1468 = vmatpush1.bf16.msra.mxu0 %v5409_v42  ;;  %1550 = vmatpush1.bf16.msra.mxu1 %v5411_v58  ;;  %v6085_v42 = vld [vmem:[%s8654_s5 + $0xf0] sm:$0xff]  }
  0xaf   :  { %1469 = vmatprep.subr.bf16.mxu0 %v5418_v43  ;;  %1551 = vmatprep.subr.bf16.mxu1 %v5420_v44  ;;  %v6086_v58 = vld [vmem:[%s8654_s5 + $0x30] sm:$0xff]   ;;  %v6088_v44 = vld [vmem:[%s8654_s5 + $0x78] sm:$0xff]  }
  0xb0   :  { %v6087_v43 = vld [vmem:[%s8654_s5 + $0xb0] sm:$0xff]  }
  0xb2   :  { %1470 = vmatpush1.bf16.msra.mxu0 %v5417_v49  ;;  %1552 = vmatpush1.bf16.msra.mxu1 %v5419_v50  ;;  %v6093_v49 = vld [vmem:[%s8654_s5 + $0x1c0] sm:$0xff]   ;;  %v247_v50 = vlaneseq }
  0xb3   :  { %1471 = vmatprep.subr.bf16.mxu0 %v5426_v51  ;;  %1553 = vmatprep.subr.bf16.mxu1 %v5428_v52 }
  0xb4   :  { %v7334_v51 = vshrl.u32 %v247_v50, 7 }
  0xb6   :  { %1472 = vmatpush1.bf16.msra.mxu0 %v5425_v59  ;;  %1554 = vmatpush1.bf16.msra.mxu1 %v5427_v60  ;;  %v7337_v52 = vsub.s32 0, %v7334_v51  ;;  %v7345_v55 = vsub.s32 2, %v7334_v51  ;;  %v7348_v56 = vsub.s32 1, %v7334_v51  ;;  %v7351_v57 = vsub.s32 3, %v7334_v51 }
  0xb7   :  { %1473 = vmatprep.subr.bf16.mxu0 %v5434_v61  ;;  %1555 = vmatprep.subr.bf16.mxu1 %v5436_v62  ;;  %v7458_v50 = vsub.s32 5, %v7334_v51 }
  0xb8   :  { %v250_v59 = vrot.slane %v7342_v53, %v7337_v52  ;;  %v258_v60 = vrot.slane %v7342_v53, %v7345_v55  ;;  %v254_v61 = vrot.slane %v7342_v53, %v7348_v56  ;;  %v262_v62 = vrot.slane %v7342_v53, %v7351_v57 }
  0xba   :  { %1474 = vmatpush1.bf16.msra.mxu0 %v5433_v4  ;;  %1556 = vmatpush1.bf16.msra.mxu1 %v5435_v5 }
  0xbb   :  { %1475 = vmatprep.subr.bf16.mxu0 %v5442_v6  ;;  %1557 = vmatprep.subr.bf16.mxu1 %v5444_v7 }
  0xbe   :  { %1476 = vmatpush1.bf16.msra.mxu0 %v5441_v12  ;;  %1558 = vmatpush1.bf16.msra.mxu1 %v5443_v13 }
  0xbf   :  { %1477 = vmatprep.subr.bf16.mxu0 %v5450_v14  ;;  %1559 = vmatprep.subr.bf16.mxu1 %v5452_v16 }
  0xc2   :  { %1478 = vmatpush1.bf16.msra.mxu0 %v5449_v18  ;;  %1560 = vmatpush1.bf16.msra.mxu1 %v5451_v19  ;;  %v6094_v19 = vld [vmem:[%s8654_s5 + $0x100] sm:$0xff]  }
  0xc3   :  { %5871 = vmatprep.subr.bf16.mxu0 %v6060_v20  ;;  %5893 = vmatprep.subr.bf16.mxu1 %v6061_v21 }
  0xc5   :  { %1496 = vmatmul.mubr.bf16.vlgmr.msra.gmra.mrb[4].mxu0 %v6950_v17  ;;  %1578 = vmatmul.mubr.bf16.vlgmr.msra.gmra.mrb[4].mxu1 %v6950_v17  ;;  %v6069_v17 = vld [vmem:[%s8654_s5 + $0xd0] sm:$0xff]  }
  0xc6   :  { %5872 = vmatpush3.bf16.msra.mxu0 %v6062_v54  ;;  %5894 = vmatpush3.bf16.msra.mxu1 %v6063_v22  ;;  %v6095_v54 = vld [vmem:[%s8654_s5 + $0x180] sm:$0xff]   ;;  %v6096_v22 = vld [vmem:[%s8654_s5 + $0x148] sm:$0xff]  }
  0xc7   :  { %5873 = vmatprep.subr.bf16.mxu0 %v6064_v23  ;;  %5895 = vmatprep.subr.bf16.mxu1 %v6065_v24  ;;  %v6097_v24 = vld [vmem:[%s8654_s5 + $0x1c8] sm:$0xff]  }
  0xca   :  { %5874 = vmatpush3.bf16.msra.mxu0 %v6066_v25  ;;  %5896 = vmatpush3.bf16.msra.mxu1 %v6067_v26  ;;  %v6098_v25 = vld [vmem:[%s8654_s5 + $0x108] sm:$0xff]  }
  0xcb   :  { %5875 = vmatprep.subr.bf16.mxu0 %v6068_v27  ;;  %5897 = vmatprep.subr.bf16.mxu1 %v6069_v17  ;;  %v6099_v26 = vld [vmem:[%s8654_s5 + $0x188] sm:$0xff]   ;;  %v6100_v27 = vld [vmem:[%s8654_s5 + $0x150] sm:$0xff]  }
  0xcc   :  { %v6101_v17 = vld [vmem:[%s8654_s5 + $0x1d0] sm:$0xff]  }
  0xce   :  { %5876 = vmatpush3.bf16.msra.mxu0 %v6070_v28  ;;  %5898 = vmatpush3.bf16.msra.mxu1 %v6071_v29  ;;  %v6102_v28 = vld [vmem:[%s8654_s5 + $0x110] sm:$0xff]  }
  0xcf   :  { %5877 = vmatprep.subr.bf16.mxu0 %v6072_v30  ;;  %5899 = vmatprep.subr.bf16.mxu1 %v6073_v31  ;;  %v6103_v29 = vld [vmem:[%s8654_s5 + $0x190] sm:$0xff]   ;;  %v6104_v30 = vld [vmem:[%s8654_s5 + $0x158] sm:$0xff]  }
  0xd0   :  { %v6105_v31 = vld [vmem:[%s8654_s5 + $0x1d8] sm:$0xff]  }
  0xd2   :  { %5878 = vmatpush3.bf16.msra.mxu0 %v6074_v32  ;;  %5900 = vmatpush3.bf16.msra.mxu1 %v6075_v33  ;;  %v6106_v32 = vld [vmem:[%s8654_s5 + $0x118] sm:$0xff]  }
  0xd3   :  { %5879 = vmatprep.subr.bf16.mxu0 %v6076_v34  ;;  %5901 = vmatprep.subr.bf16.mxu1 %v6077_v35  ;;  %v6107_v33 = vld [vmem:[%s8654_s5 + $0x198] sm:$0xff]   ;;  %v6108_v34 = vld [vmem:[%s8654_s5 + $0x160] sm:$0xff]  }
  0xd4   :  { %v6109_v35 = vld [vmem:[%s8654_s5 + $0x1e0] sm:$0xff]  }
  0xd6   :  { %5880 = vmatpush3.bf16.msra.mxu0 %v6078_v36  ;;  %5902 = vmatpush3.bf16.msra.mxu1 %v6079_v37  ;;  %v6110_v36 = vld [vmem:[%s8654_s5 + $0x120] sm:$0xff]  }
  0xd7   :  { %5881 = vmatprep.subr.bf16.mxu0 %v6080_v38  ;;  %5903 = vmatprep.subr.bf16.mxu1 %v6081_v39  ;;  %v6111_v37 = vld [vmem:[%s8654_s5 + $0x1a0] sm:$0xff]   ;;  %v6112_v38 = vld [vmem:[%s8654_s5 + $0x168] sm:$0xff]  }
  0xd8   :  { %v6113_v39 = vld [vmem:[%s8654_s5 + $0x1e8] sm:$0xff]  }
  0xda   :  { %5882 = vmatpush3.bf16.msra.mxu0 %v6082_v40  ;;  %5904 = vmatpush3.bf16.msra.mxu1 %v6083_v15  ;;  %v6114_v40 = vld [vmem:[%s8654_s5 + $0x128] sm:$0xff]  }
  0xdb   :  { %5883 = vmatprep.subr.bf16.mxu0 %v6084_v41  ;;  %5905 = vmatprep.subr.bf16.mxu1 %v6085_v42  ;;  %v6115_v15 = vld [vmem:[%s8654_s5 + $0x1a8] sm:$0xff]   ;;  %v6116_v41 = vld [vmem:[%s8654_s5 + $0x170] sm:$0xff]  }
  0xdc   :  { %v6117_v42 = vld [vmem:[%s8654_s5 + $0x1f0] sm:$0xff]  }
  0xde   :  { %5884 = vmatpush3.bf16.msra.mxu0 %v6086_v58  ;;  %5906 = vmatpush3.bf16.msra.mxu1 %v6087_v43  ;;  %v6118_v58 = vld [vmem:[%s8654_s5 + $0x130] sm:$0xff]  }
  0xdf   :  { %5885 = vmatprep.subr.bf16.mxu0 %v6088_v44  ;;  %5907 = vmatprep.subr.bf16.mxu1 %v6089_v45  ;;  %v6119_v43 = vld [vmem:[%s8654_s5 + $0x1b0] sm:$0xff]   ;;  %v6120_v44 = vld [vmem:[%s8654_s5 + $0x178] sm:$0xff]  }
  0xe0   :  { %v6121_v45 = vld [vmem:[%s8654_s5 + $0x1f8] sm:$0xff]  }
  0xe2   :  { %5886 = vmatpush3.bf16.msra.mxu0 %v6090_v46  ;;  %5908 = vmatpush3.bf16.msra.mxu1 %v6091_v47  ;;  %v6122_v46 = vld [vmem:[%s8654_s5 + $0x138] sm:$0xff]  }
  0xe3   :  { %5915 = vmatprep.subr.bf16.mxu0 %v6092_v48  ;;  %5937 = vmatprep.subr.bf16.mxu1 %v6093_v49  ;;  %v6123_v47 = vld [vmem:[%s8654_s5 + $0x1b8] sm:$0xff]   ;;  %v7452_v48 = vsub.s32 4, %v7334_v51  ;;  %v7455_v49 = vsub.s32 6, %v7334_v51 }
 0x138   :  { %v1333_v63 = vpop.f32.mrb[0].mxu0  ;;  %v1415_v1 = vpop.f32.mrb[0].mxu1 }
 0x139   :  { %v6003_v0 = vadd.f32 %v1333_v63, %v250_v59  ;;  %v1335_v2 = vpop.f32.mrb[1].mxu0  ;;  %v6005_v4 = vadd.f32 %v1415_v1, %v258_v60  ;;  %v1417_v6 = vpop.f32.mrb[1].mxu1  ;;  %v7461_v59 = vsub.s32 7, %v7334_v51  ;;  %v266_v60 = vrot.slane %v7342_v53, %v7452_v48 }
 0x13a   :  { %v6004_v5 = vadd.f32 %v1335_v2, %v254_v61  ;;  %v1337_v7 = vpop.f32.mrb[2].mxu0  ;;  %v6006_v9 = vadd.f32 %v1417_v6, %v262_v62  ;;  %v1419_v10 = vpop.f32.mrb[2].mxu1  ;;  %v274_v61 = vrot.slane %v7342_v53, %v7455_v49  ;;  %v270_v62 = vrot.slane %v7342_v53, %v7458_v50 }
 0x13b   :  { %v1586_v8 = vmax.f32 %v6003_v0, 0.0  ;;  %v1338_v11 = vpop.f32.mrb[3].mxu0  ;;  %v1588_v12 = vmax.f32 %v6005_v4, 0.0  ;;  %v1420_v14 = vpop.f32.mrb[3].mxu1  ;;  %v278_v63 = vrot.slane %v7342_v53, %v7461_v59  ;;  %v2286_v53 = vld [vmem:[%s8656_s7 + $0x20] sm:$0xff] }
 0x13c   :  { %v1587_v13 = vmax.f32 %v6004_v5, 0.0  ;;  %v1589_v16 = vmax.f32 %v6006_v9, 0.0 }
 0x13d   :  { %v1594_v20 = vpack.c.bf16 %v1586_v8, %v1586_v8  ;;  %v1596_v23 = vpack.c.bf16 %v1588_v12, %v1588_v12  ;;  %v2282_v12 = vld [vmem:[%s8656_s7] sm:$0xff] }
 0x13e   :  { %v1595_v18 = vpack.c.bf16 %v1587_v13, %v1587_v13  ;;  %v1597_v21 = vpack.c.bf16 %v1589_v16, %v1589_v16  ;;  %v2283_v13 = vld [vmem:[%s8656_s7 + $0x8] sm:$0xff] }
 0x140   :  { %2153 = vmatprep.mubr.bf16.mxu0 %v1595_v18  ;;  %2193 = vmatprep.mubr.bf16.mxu1 %v1597_v21  ;;  %v2290_v21 = vld [vmem:[%s8656_s7 + $0x40] sm:$0xff] }
 0x141   :  { %2154 = vmatmul.mubr.bf16.vlgmr.msra.gmra.mrb[8].mxu0 %v1594_v20  ;;  %2194 = vmatmul.mubr.bf16.vlgmr.msra.gmra.mrb[8].mxu1 %v1596_v23  ;;  %v2287_v20 = vld [vmem:[%s8656_s7 + $0x28] sm:$0xff] }
 0x142   :  { %5916 = vmatpush3.bf16.msra.mxu0 %v6094_v19  ;;  %5938 = vmatpush3.bf16.msra.mxu1 %v6095_v54  ;;  %v5519_v19 = vcombine.high %v2282_v12, %v2286_v53  ;;  %v2294_v54 = vld [vmem:[%s8656_s7 + $0x60] sm:$0xff]  ;;  %v5521_v23 = vcombine.high %v2283_v13, %v2287_v20 }
 0x143   :  { %5917 = vmatprep.subr.bf16.mxu0 %v6096_v22  ;;  %5939 = vmatprep.subr.bf16.mxu1 %v6097_v24  ;;  %v2291_v24 = vld [vmem:[%s8656_s7 + $0x48] sm:$0xff] }
 0x146   :  { %5918 = vmatpush3.bf16.msra.mxu0 %v6098_v25  ;;  %5940 = vmatpush3.bf16.msra.mxu1 %v6099_v26  ;;  %v2295_v25 = vld [vmem:[%s8656_s7 + $0x68] sm:$0xff] }
 0x147   :  { %5919 = vmatprep.subr.bf16.mxu0 %v6100_v27  ;;  %5941 = vmatprep.subr.bf16.mxu1 %v6101_v17  ;;  %v5518_v27 = vcombine.low %v2282_v12, %v2286_v53  ;;  %v2330_v53 = vld [vmem:[%s8656_s7 + $0x180] sm:$0xff] }
 0x14a   :  { %5920 = vmatpush3.bf16.msra.mxu0 %v6102_v28  ;;  %5942 = vmatpush3.bf16.msra.mxu1 %v6103_v29  ;;  %v5520_v29 = vcombine.low %v2283_v13, %v2287_v20  ;;  %v2334_v13 = vld [vmem:[%s8656_s7 + $0x1a0] sm:$0xff] }
 0x14b   :  { %5921 = vmatprep.subr.bf16.mxu0 %v6104_v30  ;;  %5943 = vmatprep.subr.bf16.mxu1 %v6105_v31  ;;  %v5527_v30 = vcombine.high %v2290_v21, %v2294_v54 }
 0x14e   :  { %5922 = vmatpush3.bf16.msra.mxu0 %v6106_v32  ;;  %5944 = vmatpush3.bf16.msra.mxu1 %v6107_v33  ;;  %v5529_v32 = vcombine.high %v2291_v24, %v2295_v25  ;;  %v2298_v33 = vld [vmem:[%s8656_s7 + $0x80] sm:$0xff] }
 0x14f   :  { %5923 = vmatprep.subr.bf16.mxu0 %v6108_v34  ;;  %5945 = vmatprep.subr.bf16.mxu1 %v6109_v35  ;;  %v2302_v34 = vld [vmem:[%s8656_s7 + $0xa0] sm:$0xff]  ;;  %v2299_v35 = vld [vmem:[%s8656_s7 + $0x88] sm:$0xff] }
 0x152   :  { %5924 = vmatpush3.bf16.msra.mxu0 %v6110_v36  ;;  %5946 = vmatpush3.bf16.msra.mxu1 %v6111_v37  ;;  %v2303_v36 = vld [vmem:[%s8656_s7 + $0xa8] sm:$0xff]  ;;  %v5526_v37 = vcombine.low %v2290_v21, %v2294_v54  ;;  %v2338_v54 = vld [vmem:[%s8656_s7 + $0x1c0] sm:$0xff] }
 0x153   :  { %5925 = vmatprep.subr.bf16.mxu0 %v6112_v38  ;;  %5947 = vmatprep.subr.bf16.mxu1 %v6113_v39  ;;  %v5528_v38 = vcombine.low %v2291_v24, %v2295_v25  ;;  %v5535_v39 = vcombine.high %v2298_v33, %v2302_v34  ;;  %v2343_v25 = vld [vmem:[%s8656_s7 + $0x1e8] sm:$0xff] }
 0x156   :  { %5926 = vmatpush3.bf16.msra.mxu0 %v6114_v40  ;;  %5948 = vmatpush3.bf16.msra.mxu1 %v6115_v15  ;;  %v5537_v40 = vcombine.high %v2299_v35, %v2303_v36  ;;  %v2306_v15 = vld [vmem:[%s8656_s7 + $0xc0] sm:$0xff] }
 0x157   :  { %5927 = vmatprep.subr.bf16.mxu0 %v6116_v41  ;;  %5949 = vmatprep.subr.bf16.mxu1 %v6117_v42  ;;  %v2310_v41 = vld [vmem:[%s8656_s7 + $0xe0] sm:$0xff]  ;;  %v2307_v42 = vld [vmem:[%s8656_s7 + $0xc8] sm:$0xff] }
 0x15a   :  { %5928 = vmatpush3.bf16.msra.mxu0 %v6118_v58  ;;  %5950 = vmatpush3.bf16.msra.mxu1 %v6119_v43  ;;  %v2311_v58 = vld [vmem:[%s8656_s7 + $0xe8] sm:$0xff]  ;;  %v5534_v43 = vcombine.low %v2298_v33, %v2302_v34  ;;  %v2289_v33 = vld [vmem:[%s8656_s7 + $0x38] sm:$0xff] }
 0x15b   :  { %5929 = vmatprep.subr.bf16.mxu0 %v6120_v44  ;;  %5951 = vmatprep.subr.bf16.mxu1 %v6121_v45  ;;  %v5536_v44 = vcombine.low %v2299_v35, %v2303_v36  ;;  %v5543_v45 = vcombine.high %v2306_v15, %v2310_v41 }
 0x15e   :  { %5930 = vmatpush3.bf16.msra.mxu0 %v6122_v46  ;;  %5952 = vmatpush3.bf16.msra.mxu1 %v6123_v47  ;;  %v5545_v46 = vcombine.high %v2307_v42, %v2311_v58  ;;  %v2314_v47 = vld [vmem:[%s8656_s7 + $0x100] sm:$0xff] }
 0x15f   :  { %2722 = vmatprep.subr.bf16.mxu0 %v5519_v19  ;;  %2763 = vmatprep.subr.bf16.mxu1 %v5521_v23  ;;  %v5566_v19 = vcombine.low %v2330_v53, %v2334_v13  ;;  %v2339_v23 = vld [vmem:[%s8656_s7 + $0x1c8] sm:$0xff] }
 0x198   :  { %v1497_v0 = vpop.f32.mrb[4].mxu0  ;;  %v1579_v2 = vpop.f32.mrb[4].mxu1 }
 0x199   :  { %v6007_v1 = vadd.f32 %v1497_v0, %v266_v60  ;;  %v1499_v4 = vpop.f32.mrb[5].mxu0  ;;  %v6009_v5 = vadd.f32 %v1579_v2, %v274_v61  ;;  %v1581_v51 = vpop.f32.mrb[5].mxu1  ;;  %v2318_v60 = vld [vmem:[%s8656_s7 + $0x120] sm:$0xff]  ;;  %v2315_v61 = vld [vmem:[%s8656_s7 + $0x108] sm:$0xff]  ;;  %v5544_v0 = vcombine.low %v2307_v42, %v2311_v58 }
 0x19a   :  { %v6008_v6 = vadd.f32 %v1499_v4, %v270_v62  ;;  %v1501_v7 = vpop.f32.mrb[6].mxu0  ;;  %v6010_v9 = vadd.f32 %v1581_v51, %v278_v63  ;;  %v1583_v10 = vpop.f32.mrb[6].mxu1  ;;  %v2319_v62 = vld [vmem:[%s8656_s7 + $0x128] sm:$0xff]  ;;  %v5542_v63 = vcombine.low %v2306_v15, %v2310_v41  ;;  %v2322_v4 = vld [vmem:[%s8656_s7 + $0x140] sm:$0xff] }
 0x19b   :  { %v1590_v8 = vmax.f32 %v6007_v1, 0.0  ;;  %v1502_v11 = vpop.f32.mrb[7].mxu0  ;;  %v1592_v14 = vmax.f32 %v6009_v5, 0.0  ;;  %v1584_v18 = vpop.f32.mrb[7].mxu1  ;;  %v5551_v1 = vcombine.high %v2314_v47, %v2318_v60  ;;  %v5553_v2 = vcombine.high %v2315_v61, %v2319_v62  ;;  %v2326_v5 = vld [vmem:[%s8656_s7 + $0x160] sm:$0xff]  ;;  %v2327_v51 = vld [vmem:[%s8656_s7 + $0x168] sm:$0xff] }
 0x19c   :  { %v1591_v16 = vmax.f32 %v6008_v6, 0.0  ;;  %v1593_v22 = vmax.f32 %v6010_v9, 0.0  ;;  %v2323_v6 = vld [vmem:[%s8656_s7 + $0x148] sm:$0xff]  ;;  %v5550_v7 = vcombine.low %v2314_v47, %v2318_v60  ;;  %v5559_v9 = vcombine.high %v2322_v4, %v2326_v5  ;;  %v2346_v47 = vld [vmem:[%s8658_s1] sm:$0xff] }
 0x19d   :  { %v1598_v17 = vpack.c.bf16 %v1590_v8, %v1590_v8  ;;  %v1600_v31 = vpack.c.bf16 %v1592_v14, %v1592_v14  ;;  %v5552_v8 = vcombine.low %v2315_v61, %v2319_v62  ;;  %v5561_v10 = vcombine.high %v2323_v6, %v2327_v51  ;;  %v2331_v14 = vld [vmem:[%s8656_s7 + $0x188] sm:$0xff]  ;;  %2350 = vperm.xlu0 %6056, %v2346_v47   ;;  %v2886_v60 = vld [vmem:[%s8659_s2] sm:$0xff]  ;;  %v2337_v47 = vld [vmem:[%s8656_s7 + $0x1b8] sm:$0xff] }
 0x19e   :  { %v1599_v26 = vpack.c.bf16 %v1591_v16, %v1591_v16  ;;  %v1601_v28 = vpack.c.bf16 %v1593_v22, %v1593_v22  ;;  %v5558_v11 = vcombine.low %v2322_v4, %v2326_v5  ;;  %v5560_v12 = vcombine.low %v2323_v6, %v2327_v51  ;;  %v2335_v18 = vld [vmem:[%s8656_s7 + $0x1a8] sm:$0xff]  ;;  %v2342_v22 = vld [vmem:[%s8656_s7 + $0x1e0] sm:$0xff]  ;;  %v2292_v51 = vld [vmem:[%s8656_s7 + $0x50] sm:$0xff] }
 0x19f   :  { %v5567_v16 = vcombine.high %v2330_v53, %v2334_v13  ;;  %v5568_v20 = vcombine.low %v2331_v14, %v2335_v18  ;;  %v5569_v21 = vcombine.high %v2331_v14, %v2335_v18  ;;  %v5575_v24 = vcombine.high %v2338_v54, %v2342_v22  ;;  %v2300_v53 = vld [vmem:[%s8656_s7 + $0x90] sm:$0xff]  ;;  %v2301_v14 = vld [vmem:[%s8656_s7 + $0x98] sm:$0xff] }
 0x1a0   :  { %2233 = vmatprep.mubr.bf16.mxu0 %v1599_v26  ;;  %2273 = vmatprep.mubr.bf16.mxu1 %v1601_v28  ;;  %v5574_v26 = vcombine.low %v2338_v54, %v2342_v22  ;;  %v2284_v28 = vld [vmem:[%s8656_s7 + $0x10] sm:$0xff] }
 0x1a1   :  { %2234 = vmatmul.mubr.bf16.vlgmr.msra.gmra.mrb[12].mxu0 %v1598_v17  ;;  %2274 = vmatmul.mubr.bf16.vlgmr.msra.gmra.mrb[12].mxu1 %v1600_v31  ;;  %v5577_v17 = vcombine.high %v2339_v23, %v2343_v25  ;;  %v2304_v13 = vld [vmem:[%s8656_s7 + $0xb0] sm:$0xff] }
 0x1a2   :  { %2723 = vmatpush1.bf16.msra.mxu0 %v5518_v27  ;;  %2764 = vmatpush1.bf16.msra.mxu1 %v5520_v29  ;;  %v5576_v27 = vcombine.low %v2339_v23, %v2343_v25  ;;  %v2288_v29 = vld [vmem:[%s8656_s7 + $0x30] sm:$0xff]  ;;  %v2313_v25 = vld [vmem:[%s8656_s7 + $0xf8] sm:$0xff] }
 0x1a3   :  { %2724 = vmatprep.subr.bf16.mxu0 %v5527_v30  ;;  %2765 = vmatprep.subr.bf16.mxu1 %v5529_v32  ;;  %v2285_v30 = vld [vmem:[%s8656_s7 + $0x18] sm:$0xff]  ;;  %v5522_v31 = vcombine.low %v2284_v28, %v2288_v29  ;;  %v5523_v32 = vcombine.high %v2284_v28, %v2288_v29  ;;  %v2308_v22 = vld [vmem:[%s8656_s7 + $0xd0] sm:$0xff] }
 0x1a4   :  { %2754 = vmatprep.mubr.bf16.mxu0 %v6540_v3  ;;  %2795 = vmatprep.mubr.bf16.mxu1 %v6540_v3  ;;  %v5524_v34 = vcombine.low %v2285_v30, %v2289_v33  ;;  %v5525_v35 = vcombine.high %v2285_v30, %v2289_v33  ;;  %v2312_v23 = vld [vmem:[%s8656_s7 + $0xf0] sm:$0xff] }
 0x1a5   :  { %2890 = vperm.xlu0 %6056, %v2886_v60   ;;  %v2316_v29 = vld [vmem:[%s8656_s7 + $0x110] sm:$0xff] }
 0x1a6   :  { %2725 = vmatpush1.bf16.msra.mxu0 %v5526_v37  ;;  %2766 = vmatpush1.bf16.msra.mxu1 %v5528_v38  ;;  %v5453_v38 = vld [vmem:[%s8657_s6] ss:$0 sm:$0xff]  ;;  %v2320_v30 = vld [vmem:[%s8656_s7 + $0x130] sm:$0xff] }
 0x1a7   :  { %2726 = vmatprep.subr.bf16.mxu0 %v5535_v39  ;;  %2767 = vmatprep.subr.bf16.mxu1 %v5537_v40 }
 0x1aa   :  { %2727 = vmatpush1.bf16.msra.mxu0 %v5534_v43  ;;  %2768 = vmatpush1.bf16.msra.mxu1 %v5536_v44 }
 0x1ab   :  { %2728 = vmatprep.subr.bf16.mxu0 %v5543_v45  ;;  %2769 = vmatprep.subr.bf16.mxu1 %v5545_v46 }
 0x1ae   :  { %2729 = vmatpush1.bf16.msra.mxu0 %v5542_v63  ;;  %2770 = vmatpush1.bf16.msra.mxu1 %v5544_v0 }
 0x1af   :  { %2730 = vmatprep.subr.bf16.mxu0 %v5551_v1  ;;  %2771 = vmatprep.subr.bf16.mxu1 %v5553_v2 }
 0x1b2   :  { %2731 = vmatpush1.bf16.msra.mxu0 %v5550_v7  ;;  %2772 = vmatpush1.bf16.msra.mxu1 %v5552_v8  ;;  %v2296_v7 = vld [vmem:[%s8656_s7 + $0x70] sm:$0xff]  ;;  %v2293_v8 = vld [vmem:[%s8656_s7 + $0x58] sm:$0xff] }
 0x1b3   :  { %2732 = vmatprep.subr.bf16.mxu0 %v5559_v9  ;;  %2773 = vmatprep.subr.bf16.mxu1 %v5561_v10  ;;  %v2297_v9 = vld [vmem:[%s8656_s7 + $0x78] sm:$0xff] }
 0x1b4   :  { %v5532_v54 = vcombine.low %v2293_v8, %v2297_v9 }
 0x1b6   :  { %2733 = vmatpush1.bf16.msra.mxu0 %v5558_v11  ;;  %2774 = vmatpush1.bf16.msra.mxu1 %v5560_v12 }
 0x1b7   :  { %2734 = vmatprep.subr.bf16.mxu0 %v5567_v16  ;;  %2775 = vmatprep.subr.bf16.mxu1 %v5569_v21  ;;  %v2305_v16 = vld [vmem:[%s8656_s7 + $0xb8] sm:$0xff]  ;;  %v5530_v21 = vcombine.low %v2292_v51, %v2296_v7 }
 0x1b8   :  { %v5540_v28 = vcombine.low %v2301_v14, %v2305_v16 }
 0x1ba   :  { %2735 = vmatpush1.bf16.msra.mxu0 %v5566_v19  ;;  %2776 = vmatpush1.bf16.msra.mxu1 %v5568_v20  ;;  %v5531_v19 = vcombine.high %v2292_v51, %v2296_v7  ;;  %v5533_v20 = vcombine.high %v2293_v8, %v2297_v9 }
 0x1bb   :  { %2736 = vmatprep.subr.bf16.mxu0 %v5575_v24  ;;  %2777 = vmatprep.subr.bf16.mxu1 %v5577_v17  ;;  %v2309_v24 = vld [vmem:[%s8656_s7 + $0xd8] sm:$0xff]  ;;  %v5538_v17 = vcombine.low %v2300_v53, %v2304_v13 }
 0x1bc   :  { %v5549_v33 = vcombine.high %v2309_v24, %v2313_v25 }
 0x1be   :  { %2737 = vmatpush1.bf16.msra.mxu0 %v5574_v26  ;;  %2778 = vmatpush1.bf16.msra.mxu1 %v5576_v27  ;;  %v5539_v26 = vcombine.high %v2300_v53, %v2304_v13  ;;  %v5541_v27 = vcombine.high %v2301_v14, %v2305_v16  ;;  %v6127_v53 = vld [vmem:[%s8660_s11 + $0x8] ss:$16 sps:$4 sm:$0xff]   ;;  %v6132_v13 = vld [vmem:[%s8660_s11 + $0x24] ss:$16 sps:$4 sm:$0xff]   ;;  %v6135_v14 = vld [vmem:[%s8660_s11 + $0x2c] ss:$16 sps:$4 sm:$0xff]  }
 0x1bf   :  { %2804 = vmatprep.subr.bf16.mxu0 %v5523_v32  ;;  %2845 = vmatprep.subr.bf16.mxu1 %v5525_v35  ;;  %v5547_v32 = vcombine.high %v2308_v22, %v2312_v23  ;;  %v5548_v35 = vcombine.low %v2309_v24, %v2313_v25  ;;  %v6130_v16 = vld [vmem:[%s8660_s11 + $0x20] ss:$16 sps:$4 sm:$0xff]   ;;  %v6145_v25 = vld [vmem:[%s8660_s11 + $0x68] ss:$16 sps:$4 sm:$0xff]  }
 0x1c0   :  { %v6142_v24 = vld [vmem:[%s8660_s11 + $0x60] ss:$16 sps:$4 sm:$0xff]  }
 0x214   :  { %v5887_v36 = vpop.f32.mrb[8].mxu0  ;;  %v5909_v37 = vpop.f32.mrb[8].mxu1 }
 0x215   :  { %v5888_v39 = vpop.f32.mrb[9].mxu0  ;;  %v5910_v15 = vpop.f32.mrb[9].mxu1 }
 0x216   :  { %v5889_v40 = vadd.f32 %v5888_v39, %v5887_v36  ;;  %v5890_v41 = vpop.f32.mrb[10].mxu0  ;;  %v5911_v42 = vadd.f32 %v5910_v15, %v5909_v37  ;;  %v5912_v58 = vpop.f32.mrb[10].mxu1  ;;  %v5555_v36 = vcombine.high %v2316_v29, %v2320_v30  ;;  %v2328_v39 = vld [vmem:[%s8656_s7 + $0x170] sm:$0xff]  ;;  %v2329_v15 = vld [vmem:[%s8656_s7 + $0x178] sm:$0xff] }
 0x217   :  { %v5891_v43 = vpop.f32.mrb[11].mxu0  ;;  %v5913_v45 = vpop.f32.mrb[11].mxu1  ;;  %v5554_v41 = vcombine.low %v2316_v29, %v2320_v30  ;;  %v6156_v29 = vld [vmem:[%s8660_s11 + $0xa4] ss:$16 sps:$4 sm:$0xff]   ;;  %v6159_v30 = vld [vmem:[%s8660_s11 + $0xac] ss:$16 sps:$4 sm:$0xff]  }
 0x218   :  { %v2156_v44 = vadd.f32 %v5889_v40, %v5453_v38  ;;  %v2324_v38 = vld [vmem:[%s8656_s7 + $0x150] sm:$0xff]  ;;  %v2325_v40 = vld [vmem:[%s8656_s7 + $0x158] sm:$0xff] }
 0x219   :  { %v5563_v58 = vcombine.high %v2324_v38, %v2328_v39  ;;  %v5565_v43 = vcombine.high %v2325_v40, %v2329_v15  ;;  %v2336_v45 = vld [vmem:[%s8656_s7 + $0x1b0] sm:$0xff]  ;;  %v5562_v60 = vcombine.low %v2324_v38, %v2328_v39  ;;  %v6169_v39 = vld [vmem:[%s8660_s11 + $0xe8] ss:$16 sps:$4 sm:$0xff]  }
 0x21a   :  { %v2196_v46 = vadd.f32 %v5911_v42, %v2156_v44  ;;  %v2332_v44 = vld [vmem:[%s8656_s7 + $0x190] sm:$0xff] }
 0x21b   :  { %v6166_v38 = vld [vmem:[%s8660_s11 + $0xe0] ss:$16 sps:$4 sm:$0xff]  }
 0x274   :  { %v5931_v61 = vpop.f32.mrb[12].mxu0  ;;  %v5953_v62 = vpop.f32.mrb[12].mxu1 }
 0x275   :  { %v5932_v63 = vpop.f32.mrb[13].mxu0  ;;  %v5954_v1 = vpop.f32.mrb[13].mxu1 }
 0x276   :  { %v5933_v0 = vadd.f32 %v5932_v63, %v5931_v61  ;;  %v5934_v2 = vpop.f32.mrb[14].mxu0  ;;  %v5955_v4 = vadd.f32 %v5954_v1, %v5953_v62  ;;  %v5956_v5 = vpop.f32.mrb[14].mxu1  ;;  %v5564_v61 = vcombine.low %v2325_v40, %v2329_v15  ;;  %v5571_v62 = vcombine.high %v2332_v44, %v2336_v45  ;;  %v2344_v1 = vld [vmem:[%s8656_s7 + $0x1f0] sm:$0xff]  ;;  %v6177_v15 = vld [vmem:[%s8660_s11 + $0x10c] ss:$16 sps:$4 sm:$0xff]  }
 0x277   :  { %v5935_v6 = vpop.f32.mrb[15].mxu0  ;;  %v5957_v11 = vpop.f32.mrb[15].mxu1  ;;  %v2341_v2 = vld [vmem:[%s8656_s7 + $0x1d8] sm:$0xff]  ;;  %v5570_v5 = vcombine.low %v2332_v44, %v2336_v45  ;;  %v6174_v40 = vld [vmem:[%s8660_s11 + $0x104] ss:$16 sps:$4 sm:$0xff]  }
 0x278   :  { %v2236_v10 = vadd.f32 %v5933_v0, %v2196_v46  ;;  %v2333_v46 = vld [vmem:[%s8656_s7 + $0x198] sm:$0xff]  ;;  %v2340_v0 = vld [vmem:[%s8656_s7 + $0x1d0] sm:$0xff] }
 0x279   :  { %v5573_v63 = vcombine.high %v2333_v46, %v2337_v47  ;;  %v5572_v6 = vcombine.low %v2333_v46, %v2337_v47  ;;  %v5579_v51 = vcombine.high %v2340_v0, %v2344_v1  ;;  %v5578_v8 = vcombine.low %v2340_v0, %v2344_v1  ;;  %v6129_v11 = vld [vmem:[%s8660_s11 + $0xc] ss:$16 sps:$4 sm:$0xff]   ;;  %v6178_v44 = vld [vmem:[%s8660_s11 + $0x120] ss:$16 sps:$4 sm:$0xff]   ;;  %v6181_v45 = vld [vmem:[%s8660_s11 + $0x128] ss:$16 sps:$4 sm:$0xff]  }
 0x27a   :  { %v2276_v12 = vadd.f32 %v5955_v4, %v2236_v10  ;;  %v2345_v4 = vld [vmem:[%s8656_s7 + $0x1f8] sm:$0xff]  ;;  %v6126_v10 = vld [vmem:[%s8660_s11 + $0x4] ss:$16 sps:$4 sm:$0xff]   ;;  %v6190_v0 = vld [vmem:[%s8660_s11 + $0x160] ss:$16 sps:$4 sm:$0xff]  }
 0x27b   :  { %v5581_v7 = vcombine.high %v2341_v2, %v2345_v4  ;;  %v5580_v9 = vcombine.low %v2341_v2, %v2345_v4  ;;  %v6186_v46 = vld [vmem:[%s8660_s11 + $0x144] ss:$16 sps:$4 sm:$0xff]   ;;  %v6189_v47 = vld [vmem:[%s8660_s11 + $0x14c] ss:$16 sps:$4 sm:$0xff]   ;;  %v6193_v1 = vld [vmem:[%s8660_s11 + $0x168] ss:$16 sps:$4 sm:$0xff]   ;;  %v7826_v2 = vpop.permute.xlu0 %2350 }
 0x27c   :  { %v7614_v18 = vpack.c.bf16 %v2276_v12, %v2276_v12  ;;  %v6124_v12 = vld [vmem:[%s8660_s11] ss:$16 sps:$4 sm:$0xff]   ;;  %v6198_v4 = vld [vmem:[%s8660_s11 + $0x184] ss:$16 sps:$4 sm:$0xff]  }
 0x27e   :  { %2755 = vmatmul.mubr.bf16.vlgmr.msra.gmra.mrb[16].mxu0 %v7614_v18  ;;  %2796 = vmatmul.mubr.bf16.vlgmr.msra.gmra.mrb[16].mxu1 %v7614_v18 }
 0x27f   :  { %2805 = vmatpush1.bf16.msra.mxu0 %v5522_v31  ;;  %2846 = vmatpush1.bf16.msra.mxu1 %v5524_v34  ;;  %v2317_v31 = vld [vmem:[%s8656_s7 + $0x118] sm:$0xff]  ;;  %v5546_v34 = vcombine.low %v2308_v22, %v2312_v23  ;;  %v6144_v22 = vld [vmem:[%s8660_s11 + $0x64] ss:$16 sps:$4 sm:$0xff]  }
 0x280   :  { %2806 = vmatprep.subr.bf16.mxu0 %v5531_v19  ;;  %2847 = vmatprep.subr.bf16.mxu1 %v5533_v20  ;;  %v6133_v19 = vld [vmem:[%s8660_s11 + $0x28] ss:$16 sps:$4 sm:$0xff]   ;;  %v6138_v20 = vld [vmem:[%s8660_s11 + $0x44] ss:$16 sps:$4 sm:$0xff]   ;;  %v6147_v23 = vld [vmem:[%s8660_s11 + $0x6c] ss:$16 sps:$4 sm:$0xff]  }
 0x281   :  { %2836 = vmatprep.mubr.bf16.mxu0 %v6540_v3  ;;  %2877 = vmatprep.mubr.bf16.mxu1 %v6540_v3  ;;  %v2321_v3 = vld [vmem:[%s8656_s7 + $0x138] sm:$0xff] }
 0x282   :  { %v5557_v37 = vcombine.high %v2317_v31, %v2321_v3  ;;  %v5556_v42 = vcombine.low %v2317_v31, %v2321_v3  ;;  %v6154_v31 = vld [vmem:[%s8660_s11 + $0xa0] ss:$16 sps:$4 sm:$0xff]   ;;  %v6157_v3 = vld [vmem:[%s8660_s11 + $0xa8] ss:$16 sps:$4 sm:$0xff]  }
 0x283   :  { %2807 = vmatpush1.bf16.msra.mxu0 %v5530_v21  ;;  %2848 = vmatpush1.bf16.msra.mxu1 %v5532_v54  ;;  %v6136_v21 = vld [vmem:[%s8660_s11 + $0x40] ss:$16 sps:$4 sm:$0xff]   ;;  %v6139_v54 = vld [vmem:[%s8660_s11 + $0x48] ss:$16 sps:$4 sm:$0xff]  }
 0x284   :  { %2808 = vmatprep.subr.bf16.mxu0 %v5539_v26  ;;  %2849 = vmatprep.subr.bf16.mxu1 %v5541_v27  ;;  %v6150_v26 = vld [vmem:[%s8660_s11 + $0x84] ss:$16 sps:$4 sm:$0xff]   ;;  %v6153_v27 = vld [vmem:[%s8660_s11 + $0x8c] ss:$16 sps:$4 sm:$0xff]  }
 0x287   :  { %2809 = vmatpush1.bf16.msra.mxu0 %v5538_v17  ;;  %2850 = vmatpush1.bf16.msra.mxu1 %v5540_v28  ;;  %v6148_v17 = vld [vmem:[%s8660_s11 + $0x80] ss:$16 sps:$4 sm:$0xff]   ;;  %v6151_v28 = vld [vmem:[%s8660_s11 + $0x88] ss:$16 sps:$4 sm:$0xff]  }
 0x288   :  { %2810 = vmatprep.subr.bf16.mxu0 %v5547_v32  ;;  %2851 = vmatprep.subr.bf16.mxu1 %v5549_v33  ;;  %v6162_v32 = vld [vmem:[%s8660_s11 + $0xc4] ss:$16 sps:$4 sm:$0xff]   ;;  %v6165_v33 = vld [vmem:[%s8660_s11 + $0xcc] ss:$16 sps:$4 sm:$0xff]  }
 0x28b   :  { %2811 = vmatpush1.bf16.msra.mxu0 %v5546_v34  ;;  %2852 = vmatpush1.bf16.msra.mxu1 %v5548_v35  ;;  %v6160_v34 = vld [vmem:[%s8660_s11 + $0xc0] ss:$16 sps:$4 sm:$0xff]   ;;  %v6163_v35 = vld [vmem:[%s8660_s11 + $0xc8] ss:$16 sps:$4 sm:$0xff]  }
 0x28c   :  { %2812 = vmatprep.subr.bf16.mxu0 %v5555_v36  ;;  %2853 = vmatprep.subr.bf16.mxu1 %v5557_v37  ;;  %v6168_v36 = vld [vmem:[%s8660_s11 + $0xe4] ss:$16 sps:$4 sm:$0xff]   ;;  %v6171_v37 = vld [vmem:[%s8660_s11 + $0xec] ss:$16 sps:$4 sm:$0xff]  }
 0x28f   :  { %2813 = vmatpush1.bf16.msra.mxu0 %v5554_v41  ;;  %2854 = vmatpush1.bf16.msra.mxu1 %v5556_v42  ;;  %v6172_v41 = vld [vmem:[%s8660_s11 + $0x100] ss:$16 sps:$4 sm:$0xff]   ;;  %v6175_v42 = vld [vmem:[%s8660_s11 + $0x108] ss:$16 sps:$4 sm:$0xff]  }
 0x290   :  { %2814 = vmatprep.subr.bf16.mxu0 %v5563_v58  ;;  %2855 = vmatprep.subr.bf16.mxu1 %v5565_v43  ;;  %v6180_v58 = vld [vmem:[%s8660_s11 + $0x124] ss:$16 sps:$4 sm:$0xff]   ;;  %v6183_v43 = vld [vmem:[%s8660_s11 + $0x12c] ss:$16 sps:$4 sm:$0xff]  }
 0x293   :  { %2815 = vmatpush1.bf16.msra.mxu0 %v5562_v60  ;;  %2856 = vmatpush1.bf16.msra.mxu1 %v5564_v61  ;;  %v6184_v60 = vld [vmem:[%s8660_s11 + $0x140] ss:$16 sps:$4 sm:$0xff]   ;;  %v6187_v61 = vld [vmem:[%s8660_s11 + $0x148] ss:$16 sps:$4 sm:$0xff]  }
 0x294   :  { %2816 = vmatprep.subr.bf16.mxu0 %v5571_v62  ;;  %2857 = vmatprep.subr.bf16.mxu1 %v5573_v63  ;;  %v6192_v62 = vld [vmem:[%s8660_s11 + $0x164] ss:$16 sps:$4 sm:$0xff]   ;;  %v6195_v63 = vld [vmem:[%s8660_s11 + $0x16c] ss:$16 sps:$4 sm:$0xff]  }
 0x297   :  { %2817 = vmatpush1.bf16.msra.mxu0 %v5570_v5  ;;  %2858 = vmatpush1.bf16.msra.mxu1 %v5572_v6  ;;  %v6201_v5 = vld [vmem:[%s8660_s11 + $0x18c] ss:$16 sps:$4 sm:$0xff]   ;;  %v6196_v6 = vld [vmem:[%s8660_s11 + $0x180] ss:$16 sps:$4 sm:$0xff]  }
 0x298   :  { %2818 = vmatprep.subr.bf16.mxu0 %v5579_v51  ;;  %2859 = vmatprep.subr.bf16.mxu1 %v5581_v7  ;;  %v6199_v51 = vld [vmem:[%s8660_s11 + $0x188] ss:$16 sps:$4 sm:$0xff]   ;;  %v2891_v7 = vpop.permute.xlu0 %2890 }
 0x29b   :  { %2819 = vmatpush1.bf16.msra.mxu0 %v5578_v8  ;;  %2860 = vmatpush1.bf16.msra.mxu1 %v5580_v9  ;;  %v2887_v8 = vld [vmem:[%s8661_s9] sm:$0xff] }
 0x29c   :  { %4574 = vmatprep.subr.bf16.mxu0 %v6126_v10  ;;  %4738 = vmatprep.subr.bf16.mxu1 %v6129_v11  ;;  %v2905_v9 = vrot.slane %v2887_v8, %v7345_v55  ;;  %v6204_v11 = vld [vmem:[%s8660_s11 + $0x1a4] ss:$16 sps:$4 sm:$0xff]  }
 0x29e   :  { %2837 = vmatmul.mubr.bf16.vlgmr.msra.gmra.mrb[20].mxu0 %v7614_v18  ;;  %2878 = vmatmul.mubr.bf16.vlgmr.msra.gmra.mrb[20].mxu1 %v7614_v18  ;;  %v6141_v18 = vld [vmem:[%s8660_s11 + $0x4c] ss:$16 sps:$4 sm:$0xff]   ;;  %v7844_v10 = vmul.f32 %v2905_v9, %v2891_v7 }
 0x29f   :  { %4575 = vmatpush1.bf16.msra.mxu0 %v6124_v12  ;;  %4739 = vmatpush1.bf16.msra.mxu1 %v6127_v53  ;;  %v6207_v12 = vld [vmem:[%s8660_s11 + $0x1ac] ss:$16 sps:$4 sm:$0xff]   ;;  %v6202_v53 = vld [vmem:[%s8660_s11 + $0x1a0] ss:$16 sps:$4 sm:$0xff]  }
 0x2a0   :  { %4576 = vmatprep.subr.bf16.mxu0 %v6132_v13  ;;  %4740 = vmatprep.subr.bf16.mxu1 %v6135_v14  ;;  %v6205_v13 = vld [vmem:[%s8660_s11 + $0x1a8] ss:$16 sps:$4 sm:$0xff]   ;;  %v2913_v14 = vrot.slane %v2887_v8, %v7452_v48 }
 0x2a3   :  { %4577 = vmatpush1.bf16.msra.mxu0 %v6130_v16  ;;  %4741 = vmatpush1.bf16.msra.mxu1 %v6133_v19  ;;  %v2921_v16 = vrot.slane %v2887_v8, %v7455_v49  ;;  %v2917_v19 = vrot.slane %v2887_v8, %v7458_v50 }
 0x2a4   :  { %4578 = vmatprep.subr.bf16.mxu0 %v6138_v20  ;;  %4742 = vmatprep.subr.bf16.mxu1 %v6141_v18  ;;  %v6210_v20 = vld [vmem:[%s8660_s11 + $0x1c4] ss:$16 sps:$4 sm:$0xff]   ;;  %v6213_v18 = vld [vmem:[%s8660_s11 + $0x1cc] ss:$16 sps:$4 sm:$0xff]  }
 0x2a7   :  { %4579 = vmatpush1.bf16.msra.mxu0 %v6136_v21  ;;  %4743 = vmatpush1.bf16.msra.mxu1 %v6139_v54  ;;  %v7867_v21 = vmul.f32 %v2913_v14, %v2891_v7  ;;  %v7869_v54 = vmul.f32 %v2921_v16, %v2891_v7 }
 0x2a8   :  { %4580 = vmatprep.subr.bf16.mxu0 %v6144_v22  ;;  %4744 = vmatprep.subr.bf16.mxu1 %v6147_v23  ;;  %v6208_v22 = vld [vmem:[%s8660_s11 + $0x1c0] ss:$16 sps:$4 sm:$0xff]   ;;  %v6211_v23 = vld [vmem:[%s8660_s11 + $0x1c8] ss:$16 sps:$4 sm:$0xff]  }
 0x2ab   :  { %4581 = vmatpush1.bf16.msra.mxu0 %v6142_v24  ;;  %4745 = vmatpush1.bf16.msra.mxu1 %v6145_v25  ;;  %v7877_v24 = vmul.f32 %v2917_v19, %v2891_v7  ;;  %v2925_v25 = vrot.slane %v2887_v8, %v7461_v59 }
 0x2ac   :  { %4582 = vmatprep.subr.bf16.mxu0 %v6150_v26  ;;  %4746 = vmatprep.subr.bf16.mxu1 %v6153_v27  ;;  %v6216_v26 = vld [vmem:[%s8660_s11 + $0x1e4] ss:$16 sps:$4 sm:$0xff]   ;;  %v6219_v27 = vld [vmem:[%s8660_s11 + $0x1ec] ss:$16 sps:$4 sm:$0xff]  }
 0x2af   :  { %4583 = vmatpush1.bf16.msra.mxu0 %v6148_v17  ;;  %4747 = vmatpush1.bf16.msra.mxu1 %v6151_v28  ;;  %v6214_v17 = vld [vmem:[%s8660_s11 + $0x1e0] ss:$16 sps:$4 sm:$0xff]   ;;  %v6217_v28 = vld [vmem:[%s8660_s11 + $0x1e8] ss:$16 sps:$4 sm:$0xff]  }
 0x2b0   :  { %4584 = vmatprep.subr.bf16.mxu0 %v6156_v29  ;;  %4748 = vmatprep.subr.bf16.mxu1 %v6159_v30  ;;  %v7892_v29 = vmul.f32 %v2925_v25, %v2891_v7  ;;  %v6222_v30 = vld [vmem:[%s8660_s11 + $0x204] ss:$16 sps:$4 sm:$0xff]  }
 0x2b3   :  { %4585 = vmatpush1.bf16.msra.mxu0 %v6154_v31  ;;  %4749 = vmatpush1.bf16.msra.mxu1 %v6157_v3  ;;  %v6225_v31 = vld [vmem:[%s8660_s11 + $0x20c] ss:$16 sps:$4 sm:$0xff]   ;;  %v7903_v3 = vld [vmem:[%s8662_s8] sm:$0xff] }
 0x2b4   :  { %4586 = vmatprep.subr.bf16.mxu0 %v6162_v32  ;;  %4750 = vmatprep.subr.bf16.mxu1 %v6165_v33  ;;  %v2357_v32 = vrot.slane %v7903_v3, %v7337_v52  ;;  %v2365_v33 = vrot.slane %v7903_v3, %v7345_v55 }
 0x2b7   :  { %4587 = vmatpush1.bf16.msra.mxu0 %v6160_v34  ;;  %4751 = vmatpush1.bf16.msra.mxu1 %v6163_v35  ;;  %v2897_v34 = vrot.slane %v2887_v8, %v7337_v52  ;;  %v2361_v35 = vrot.slane %v7903_v3, %v7348_v56 }
 0x2b8   :  { %4588 = vmatprep.subr.bf16.mxu0 %v6168_v36  ;;  %4752 = vmatprep.subr.bf16.mxu1 %v6171_v37  ;;  %v2901_v36 = vrot.slane %v2887_v8, %v7348_v56  ;;  %v2369_v37 = vrot.slane %v7903_v3, %v7351_v57 }
 0x2bb   :  { %4589 = vmatpush1.bf16.msra.mxu0 %v6166_v38  ;;  %4753 = vmatpush1.bf16.msra.mxu1 %v6169_v39  ;;  %v2909_v38 = vrot.slane %v2887_v8, %v7351_v57  ;;  %v2394_v39 = vmul.f32 %v2357_v32, %v7826_v2  ;;  %v6229_v32 = vld [vmem:[%s8660_s11 + $0x228] ss:$16 sps:$4 sm:$0xff]  }
 0x2bc   :  { %4590 = vmatprep.subr.bf16.mxu0 %v6174_v40  ;;  %4754 = vmatprep.subr.bf16.mxu1 %v6177_v15  ;;  %v2396_v40 = vmul.f32 %v2365_v33, %v7826_v2  ;;  %v7921_v15 = vld [vmem:[%s8663_s10] sm:$0xff] }
 0x2bd   :  { %v6234_v33 = vld [vmem:[%s8660_s11 + $0x244] ss:$16 sps:$4 sm:$0xff]  }
 0x2bf   :  { %4591 = vmatpush1.bf16.msra.mxu0 %v6172_v41  ;;  %4755 = vmatpush1.bf16.msra.mxu1 %v6175_v42  ;;  %v2934_v41 = vmul.f32 %v2897_v34, %v2891_v7  ;;  %v6237_v34 = vld [vmem:[%s8660_s11 + $0x24c] ss:$16 sps:$4 sm:$0xff]  }
 0x2c0   :  { %4592 = vmatprep.subr.bf16.mxu0 %v6180_v58  ;;  %4756 = vmatprep.subr.bf16.mxu1 %v6183_v43  ;;  %v2395_v43 = vmul.f32 %v2361_v35, %v7826_v2  ;;  %v6232_v35 = vld [vmem:[%s8660_s11 + $0x240] ss:$16 sps:$4 sm:$0xff]  }
 0x2c3   :  { %4593 = vmatpush1.bf16.msra.mxu0 %v6178_v44  ;;  %4757 = vmatpush1.bf16.msra.mxu1 %v6181_v45  ;;  %v2935_v44 = vmul.f32 %v2901_v36, %v2891_v7  ;;  %v2397_v45 = vmul.f32 %v2369_v37, %v7826_v2  ;;  %v6235_v36 = vld [vmem:[%s8660_s11 + $0x248] ss:$16 sps:$4 sm:$0xff]   ;;  %v6240_v37 = vld [vmem:[%s8660_s11 + $0x264] ss:$16 sps:$4 sm:$0xff]  }
 0x2c4   :  { %4594 = vmatprep.subr.bf16.mxu0 %v6186_v46  ;;  %4758 = vmatprep.subr.bf16.mxu1 %v6189_v47  ;;  %v2937_v46 = vmul.f32 %v2909_v38, %v2891_v7  ;;  %v6243_v38 = vld [vmem:[%s8660_s11 + $0x26c] ss:$16 sps:$4 sm:$0xff]  }
 0x2c7   :  { %4595 = vmatpush1.bf16.msra.mxu0 %v6184_v60  ;;  %4759 = vmatpush1.bf16.msra.mxu1 %v6187_v61  ;;  %v2955_v60 = vrot.slane %v7921_v15, %v7337_v52 }
 0x2c8   :  { %4596 = vmatprep.subr.bf16.mxu0 %v6192_v62  ;;  %4760 = vmatprep.subr.bf16.mxu1 %v6195_v63  ;;  %v2963_v62 = vrot.slane %v7921_v15, %v7345_v55 }
 0x2cb   :  { %4597 = vmatpush1.bf16.msra.mxu0 %v6190_v0  ;;  %4761 = vmatpush1.bf16.msra.mxu1 %v6193_v1 }
 0x2cc   :  { %4598 = vmatprep.subr.bf16.mxu0 %v6198_v4  ;;  %4762 = vmatprep.subr.bf16.mxu1 %v6201_v5  ;;  %v2959_v4 = vrot.slane %v7921_v15, %v7348_v56 }
 0x2cf   :  { %4599 = vmatpush1.bf16.msra.mxu0 %v6196_v6  ;;  %4763 = vmatpush1.bf16.msra.mxu1 %v6199_v51  ;;  %v2967_v6 = vrot.slane %v7921_v15, %v7351_v57 }
 0x2d0   :  { %4600 = vmatprep.subr.bf16.mxu0 %v6204_v11  ;;  %4764 = vmatprep.subr.bf16.mxu1 %v6207_v12 }
 0x2d3   :  { %4601 = vmatpush1.bf16.msra.mxu0 %v6202_v53  ;;  %4765 = vmatpush1.bf16.msra.mxu1 %v6205_v13 }
 0x2d4   :  { %4602 = vmatprep.subr.bf16.mxu0 %v6210_v20  ;;  %4766 = vmatprep.subr.bf16.mxu1 %v6213_v18 }
 0x2d7   :  { %4603 = vmatpush1.bf16.msra.mxu0 %v6208_v22  ;;  %4767 = vmatpush1.bf16.msra.mxu1 %v6211_v23 }
 0x2d8   :  { %4604 = vmatprep.subr.bf16.mxu0 %v6216_v26  ;;  %4768 = vmatprep.subr.bf16.mxu1 %v6219_v27  ;;  %v6220_v26 = vld [vmem:[%s8660_s11 + $0x200] ss:$16 sps:$4 sm:$0xff]  }
 0x2db   :  { %4605 = vmatpush1.bf16.msra.mxu0 %v6214_v17  ;;  %4769 = vmatpush1.bf16.msra.mxu1 %v6217_v28  ;;  %v6228_v17 = vld [vmem:[%s8660_s11 + $0x224] ss:$16 sps:$4 sm:$0xff]   ;;  %v6231_v28 = vld [vmem:[%s8660_s11 + $0x22c] ss:$16 sps:$4 sm:$0xff]  }
 0x2dc   :  { %4615 = vmatprep.subr.bf16.mxu0 %v6222_v30  ;;  %4779 = vmatprep.subr.bf16.mxu1 %v6225_v31  ;;  %v6226_v31 = vld [vmem:[%s8660_s11 + $0x220] ss:$16 sps:$4 sm:$0xff]  }
 0x351   :  { %v2756_v42 = vpop.f32.mrb[16].mxu0  ;;  %v2797_v58 = vpop.f32.mrb[16].mxu1 }
 0x352   :  { %v2757_v47 = vadd.f32 %v2756_v42, %v2394_v39  ;;  %v2798_v61 = vadd.f32 %v2797_v58, %v2396_v40  ;;  %v2758_v63 = vpop.f32.mrb[17].mxu0  ;;  %v2799_v0 = vpop.f32.mrb[17].mxu1  ;;  %v6238_v39 = vld [vmem:[%s8660_s11 + $0x260] ss:$16 sps:$4 sm:$0xff]   ;;  %v6241_v40 = vld [vmem:[%s8660_s11 + $0x268] ss:$16 sps:$4 sm:$0xff]  }
 0x353   :  { %v2759_v1 = vadd.f32 %v2758_v63, %v2395_v43  ;;  %v2800_v5 = vadd.f32 %v2799_v0, %v2397_v45  ;;  %v2760_v51 = vpop.f32.mrb[18].mxu0  ;;  %v2801_v7 = vpop.f32.mrb[18].mxu1  ;;  %v6249_v42 = vld [vmem:[%s8660_s11 + $0x28c] ss:$16 sps:$4 sm:$0xff]   ;;  %v6244_v58 = vld [vmem:[%s8660_s11 + $0x280] ss:$16 sps:$4 sm:$0xff]   ;;  %v2381_v45 = vrot.slane %v7903_v3, %v7455_v49 }
 0x354   :  { %v2942_v8 = vadd.f32 %v2934_v41, %v2757_v47  ;;  %v2944_v9 = vadd.f32 %v7844_v10, %v2798_v61  ;;  %v2761_v11 = vpop.f32.mrb[19].mxu0  ;;  %v2802_v12 = vpop.f32.mrb[19].mxu1  ;;  %v6223_v10 = vld [vmem:[%s8660_s11 + $0x208] ss:$16 sps:$4 sm:$0xff]   ;;  %v6246_v41 = vld [vmem:[%s8660_s11 + $0x284] ss:$16 sps:$4 sm:$0xff]   ;;  %v2385_v61 = vrot.slane %v7903_v3, %v7461_v59 }
 0x355   :  { %v2943_v53 = vadd.f32 %v2935_v44, %v2759_v1  ;;  %v2945_v13 = vadd.f32 %v2937_v46, %v2800_v5  ;;  %v6247_v43 = vld [vmem:[%s8660_s11 + $0x288] ss:$16 sps:$4 sm:$0xff]   ;;  %v2373_v44 = vrot.slane %v7903_v3, %v7452_v48  ;;  %v6252_v46 = vld [vmem:[%s8660_s11 + $0x2a4] ss:$16 sps:$4 sm:$0xff]   ;;  %v6255_v47 = vld [vmem:[%s8660_s11 + $0x2ac] ss:$16 sps:$4 sm:$0xff]   ;;  %v2400_v1 = vmul.f32 %v2381_v45, %v7826_v2 }
 0x356   :  { %v2992_v14 = vadd.f32 %v2955_v60, %v2942_v8  ;;  %v7934_v16 = vadd.f32 %v2963_v62, %v2944_v9  ;;  %v2377_v60 = vrot.slane %v7903_v3, %v7458_v50  ;;  %v6250_v62 = vld [vmem:[%s8660_s11 + $0x2a0] ss:$16 sps:$4 sm:$0xff]   ;;  %v6253_v63 = vld [vmem:[%s8660_s11 + $0x2a8] ss:$16 sps:$4 sm:$0xff]   ;;  %v6258_v3 = vld [vmem:[%s8660_s11 + $0x2c4] ss:$16 sps:$4 sm:$0xff]   ;;  %v2401_v8 = vmul.f32 %v2385_v61, %v7826_v2 }
 0x357   :  { %v2993_v19 = vadd.f32 %v2959_v4, %v2943_v53  ;;  %v2995_v20 = vadd.f32 %v2967_v6, %v2945_v13  ;;  %v2398_v0 = vmul.f32 %v2373_v44, %v7826_v2  ;;  %v6261_v4 = vld [vmem:[%s8660_s11 + $0x2cc] ss:$16 sps:$4 sm:$0xff]   ;;  %v2971_v6 = vrot.slane %v7921_v15, %v7452_v48  ;;  %v6289_v44 = vld [vmem:[%s8660_s11 + $0x368] ss:$16 sps:$4 sm:$0xff]   ;;  %v6294_v45 = vld [vmem:[%s8660_s11 + $0x384] ss:$16 sps:$4 sm:$0xff]  }
 0x358   :  { %v3000_v18 = vmax.f32 %v2992_v14, 0.0  ;;  %v2399_v7 = vmul.f32 %v2377_v60, %v7826_v2  ;;  %v2979_v12 = vrot.slane %v7921_v15, %v7455_v49  ;;  %v2975_v13 = vrot.slane %v7921_v15, %v7458_v50  ;;  %v6256_v2 = vld [vmem:[%s8660_s11 + $0x2c0] ss:$16 sps:$4 sm:$0xff]   ;;  %v6259_v49 = vld [vmem:[%s8660_s11 + $0x2c8] ss:$16 sps:$4 sm:$0xff]  }
 0x359   :  { %v3001_v22 = vmax.f32 %v2993_v19, 0.0  ;;  %v3003_v23 = vmax.f32 %v2995_v20, 0.0  ;;  %v2983_v48 = vrot.slane %v7921_v15, %v7461_v59  ;;  %v6264_v59 = vld [vmem:[%s8660_s11 + $0x2e4] ss:$16 sps:$4 sm:$0xff]   ;;  %v6267_v15 = vld [vmem:[%s8660_s11 + $0x2ec] ss:$16 sps:$4 sm:$0xff]  }
 0x35a   :  { %v3008_v27 = vpack.c.bf16 %v3000_v18, %v3000_v18  ;;  %v6295_v60 = vld [vmem:[%s8660_s11 + $0x388] ss:$16 sps:$4 sm:$0xff]   ;;  %v6300_v61 = vld [vmem:[%s8660_s11 + $0x3a4] ss:$16 sps:$4 sm:$0xff]  }
 0x35b   :  { %v3009_v25 = vpack.c.bf16 %v3001_v22, %v3001_v22  ;;  %v3011_v30 = vpack.c.bf16 %v3003_v23, %v3003_v23 }
 0x35d   :  { %4606 = vmatprep.mubr.bf16.mxu0 %v3009_v25  ;;  %4770 = vmatprep.mubr.bf16.mxu1 %v3009_v25 }
 0x35e   :  { %4607 = vmatmul.mubr.bf16.vlgmr.msra.gmra.mrb[24].mxu0 %v3008_v27  ;;  %4771 = vmatmul.mubr.bf16.vlgmr.msra.gmra.mrb[24].mxu1 %v3008_v27 }
 0x35f   :  { %4616 = vmatpush1.bf16.msra.mxu0 %v6220_v26  ;;  %4780 = vmatpush1.bf16.msra.mxu1 %v6223_v10 }
 0x360   :  { %4647 = vmatprep.mubr.bf16.mxu0 %v3011_v30  ;;  %4811 = vmatprep.mubr.bf16.mxu1 %v3011_v30  ;;  %v6262_v30 = vld [vmem:[%s8660_s11 + $0x2e0] ss:$16 sps:$4 sm:$0xff]  }
 0x361   :  { %4617 = vmatprep.subr.bf16.mxu0 %v6228_v17  ;;  %4781 = vmatprep.subr.bf16.mxu1 %v6231_v28 }
 0x363   :  { %4618 = vmatpush1.bf16.msra.mxu0 %v6226_v31  ;;  %4782 = vmatpush1.bf16.msra.mxu1 %v6229_v32  ;;  %v6273_v31 = vld [vmem:[%s8660_s11 + $0x30c] ss:$16 sps:$4 sm:$0xff]   ;;  %v6268_v32 = vld [vmem:[%s8660_s11 + $0x300] ss:$16 sps:$4 sm:$0xff]  }
 0x364   :  { %4619 = vmatprep.subr.bf16.mxu0 %v6234_v33  ;;  %4783 = vmatprep.subr.bf16.mxu1 %v6237_v34  ;;  %v6271_v33 = vld [vmem:[%s8660_s11 + $0x308] ss:$16 sps:$4 sm:$0xff]   ;;  %v6276_v34 = vld [vmem:[%s8660_s11 + $0x324] ss:$16 sps:$4 sm:$0xff]  }
 0x367   :  { %4620 = vmatpush1.bf16.msra.mxu0 %v6232_v35  ;;  %4784 = vmatpush1.bf16.msra.mxu1 %v6235_v36  ;;  %v6279_v35 = vld [vmem:[%s8660_s11 + $0x32c] ss:$16 sps:$4 sm:$0xff]   ;;  %v6274_v36 = vld [vmem:[%s8660_s11 + $0x320] ss:$16 sps:$4 sm:$0xff]  }
 0x368   :  { %4621 = vmatprep.subr.bf16.mxu0 %v6240_v37  ;;  %4785 = vmatprep.subr.bf16.mxu1 %v6243_v38  ;;  %v6277_v37 = vld [vmem:[%s8660_s11 + $0x328] ss:$16 sps:$4 sm:$0xff]   ;;  %v6282_v38 = vld [vmem:[%s8660_s11 + $0x344] ss:$16 sps:$4 sm:$0xff]  }
 0x36b   :  { %4622 = vmatpush1.bf16.msra.mxu0 %v6238_v39  ;;  %4786 = vmatpush1.bf16.msra.mxu1 %v6241_v40  ;;  %v6285_v39 = vld [vmem:[%s8660_s11 + $0x34c] ss:$16 sps:$4 sm:$0xff]   ;;  %v6280_v40 = vld [vmem:[%s8660_s11 + $0x340] ss:$16 sps:$4 sm:$0xff]  }
 0x36c   :  { %4623 = vmatprep.subr.bf16.mxu0 %v6246_v41  ;;  %4787 = vmatprep.subr.bf16.mxu1 %v6249_v42  ;;  %v6283_v41 = vld [vmem:[%s8660_s11 + $0x348] ss:$16 sps:$4 sm:$0xff]   ;;  %v6288_v42 = vld [vmem:[%s8660_s11 + $0x364] ss:$16 sps:$4 sm:$0xff]  }
 0x36f   :  { %4624 = vmatpush1.bf16.msra.mxu0 %v6244_v58  ;;  %4788 = vmatpush1.bf16.msra.mxu1 %v6247_v43  ;;  %v6291_v58 = vld [vmem:[%s8660_s11 + $0x36c] ss:$16 sps:$4 sm:$0xff]   ;;  %v6286_v43 = vld [vmem:[%s8660_s11 + $0x360] ss:$16 sps:$4 sm:$0xff]  }
 0x370   :  { %4625 = vmatprep.subr.bf16.mxu0 %v6252_v46  ;;  %4789 = vmatprep.subr.bf16.mxu1 %v6255_v47  ;;  %v6297_v46 = vld [vmem:[%s8660_s11 + $0x38c] ss:$16 sps:$4 sm:$0xff]   ;;  %v6292_v47 = vld [vmem:[%s8660_s11 + $0x380] ss:$16 sps:$4 sm:$0xff]  }
 0x371   :  { %v2838_v5 = vpop.f32.mrb[20].mxu0  ;;  %v2879_v51 = vpop.f32.mrb[20].mxu1 }
 0x372   :  { %v2839_v9 = vadd.f32 %v2838_v5, %v2398_v0  ;;  %v2880_v11 = vadd.f32 %v2879_v51, %v2400_v1  ;;  %v2840_v53 = vpop.f32.mrb[21].mxu0  ;;  %v2881_v14 = vpop.f32.mrb[21].mxu1  ;;  %v6301_v0 = vld [vmem:[%s8660_s11 + $0x3a8] ss:$16 sps:$4 sm:$0xff]   ;;  %v6306_v1 = vld [vmem:[%s8660_s11 + $0x3c4] ss:$16 sps:$4 sm:$0xff]  }
 0x373   :  { %v2841_v19 = vadd.f32 %v2840_v53, %v2399_v7  ;;  %v2882_v20 = vadd.f32 %v2881_v14, %v2401_v8  ;;  %v2842_v18 = vpop.f32.mrb[22].mxu0  ;;  %v2883_v22 = vpop.f32.mrb[22].mxu1  ;;  %4626 = vmatpush1.bf16.msra.mxu0 %v6250_v62  ;;  %4790 = vmatpush1.bf16.msra.mxu1 %v6253_v63  ;;  %v6303_v62 = vld [vmem:[%s8660_s11 + $0x3ac] ss:$16 sps:$4 sm:$0xff]   ;;  %v6298_v63 = vld [vmem:[%s8660_s11 + $0x3a0] ss:$16 sps:$4 sm:$0xff]  }
 0x374   :  { %v2946_v50 = vadd.f32 %v7867_v21, %v2839_v9  ;;  %v2948_v23 = vadd.f32 %v7869_v54, %v2880_v11  ;;  %v2843_v25 = vpop.f32.mrb[23].mxu0  ;;  %v2884_v26 = vpop.f32.mrb[23].mxu1  ;;  %4627 = vmatprep.subr.bf16.mxu0 %v6258_v3  ;;  %4791 = vmatprep.subr.bf16.mxu1 %v6261_v4  ;;  %v6309_v3 = vld [vmem:[%s8660_s11 + $0x3cc] ss:$16 sps:$4 sm:$0xff]   ;;  %v6304_v4 = vld [vmem:[%s8660_s11 + $0x3c0] ss:$16 sps:$4 sm:$0xff]  }
 0x375   :  { %v2947_v10 = vadd.f32 %v7877_v24, %v2841_v19  ;;  %v2949_v27 = vadd.f32 %v7892_v29, %v2882_v20  ;;  %v6265_v24 = vld [vmem:[%s8660_s11 + $0x2e8] ss:$16 sps:$4 sm:$0xff]   ;;  %v6270_v29 = vld [vmem:[%s8660_s11 + $0x304] ss:$16 sps:$4 sm:$0xff]   ;;  %v6315_v51 = vld [vmem:[%s8660_s11 + $0x3ec] ss:$16 sps:$4 sm:$0xff]  }
 0x376   :  { %v8044_v17 = vadd.f32 %v2971_v6, %v2946_v50  ;;  %v8046_v21 = vadd.f32 %v2979_v12, %v2948_v23  ;;  %v6307_v5 = vld [vmem:[%s8660_s11 + $0x3c8] ss:$16 sps:$4 sm:$0xff]   ;;  %v6312_v6 = vld [vmem:[%s8660_s11 + $0x3e4] ss:$16 sps:$4 sm:$0xff]   ;;  %v6310_v7 = vld [vmem:[%s8660_s11 + $0x3e0] ss:$16 sps:$4 sm:$0xff]  }
 0x377   :  { %v8048_v54 = vadd.f32 %v2975_v13, %v2947_v10  ;;  %v8050_v28 = vadd.f32 %v2983_v48, %v2949_v27  ;;  %4628 = vmatpush1.bf16.msra.mxu0 %v6256_v2  ;;  %4792 = vmatpush1.bf16.msra.mxu1 %v6259_v49  ;;  %v6313_v8 = vld [vmem:[%s8660_s11 + $0x3e8] ss:$16 sps:$4 sm:$0xff]   ;;  %v3002_v9 = vmax.f32 %v7934_v16, 0.0  ;;  %v6318_v11 = vld [vmem:[%s8660_s11 + $0x404] ss:$16 sps:$4 sm:$0xff]  }
 0x378   :  { %4629 = vmatprep.subr.bf16.mxu0 %v6264_v59  ;;  %4793 = vmatprep.subr.bf16.mxu1 %v6267_v15  ;;  %v6321_v12 = vld [vmem:[%s8660_s11 + $0x40c] ss:$16 sps:$4 sm:$0xff]   ;;  %v6316_v13 = vld [vmem:[%s8660_s11 + $0x400] ss:$16 sps:$4 sm:$0xff]   ;;  %v6319_v16 = vld [vmem:[%s8660_s11 + $0x408] ss:$16 sps:$4 sm:$0xff]  }
 0x379   :  { %v3005_v53 = vmax.f32 %v8048_v54, 0.0  ;;  %v3010_v14 = vpack.c.bf16 %v3002_v9, %v3002_v9  ;;  %v6324_v20 = vld [vmem:[%s8660_s11 + $0x424] ss:$16 sps:$4 sm:$0xff]   ;;  %v6327_v48 = vld [vmem:[%s8660_s11 + $0x42c] ss:$16 sps:$4 sm:$0xff]  }
 0x37a   :  { %v6322_v18 = vld [vmem:[%s8660_s11 + $0x420] ss:$16 sps:$4 sm:$0xff]   ;;  %v6325_v22 = vld [vmem:[%s8660_s11 + $0x428] ss:$16 sps:$4 sm:$0xff]   ;;  %v6330_v2 = vld [vmem:[%s8660_s11 + $0x444] ss:$16 sps:$4 sm:$0xff]  }
 0x37b   :  { %4630 = vmatpush1.bf16.msra.mxu0 %v6262_v30  ;;  %4794 = vmatpush1.bf16.msra.mxu1 %v6265_v24  ;;  %v3013_v19 = vpack.c.bf16 %v3005_v53, %v3005_v53  ;;  %v6333_v49 = vld [vmem:[%s8660_s11 + $0x44c] ss:$16 sps:$4 sm:$0xff]   ;;  %v6328_v50 = vld [vmem:[%s8660_s11 + $0x440] ss:$16 sps:$4 sm:$0xff]   ;;  %v6331_v23 = vld [vmem:[%s8660_s11 + $0x448] ss:$16 sps:$4 sm:$0xff]  }
 0x37c   :  { %4631 = vmatprep.subr.bf16.mxu0 %v6270_v29  ;;  %4795 = vmatprep.subr.bf16.mxu1 %v6273_v31  ;;  %v6336_v25 = vld [vmem:[%s8660_s11 + $0x464] ss:$16 sps:$4 sm:$0xff]   ;;  %v6339_v26 = vld [vmem:[%s8660_s11 + $0x46c] ss:$16 sps:$4 sm:$0xff]   ;;  %v6334_v59 = vld [vmem:[%s8660_s11 + $0x460] ss:$16 sps:$4 sm:$0xff]  }
 0x37d   :  { %v6337_v15 = vld [vmem:[%s8660_s11 + $0x468] ss:$16 sps:$4 sm:$0xff]   ;;  %v6342_v10 = vld [vmem:[%s8660_s11 + $0x484] ss:$16 sps:$4 sm:$0xff]   ;;  %v6345_v27 = vld [vmem:[%s8660_s11 + $0x48c] ss:$16 sps:$4 sm:$0xff]  }
 0x37e   :  { %v6340_v54 = vld [vmem:[%s8660_s11 + $0x480] ss:$16 sps:$4 sm:$0xff]   ;;  %v6343_v30 = vld [vmem:[%s8660_s11 + $0x488] ss:$16 sps:$4 sm:$0xff]   ;;  %v6348_v24 = vld [vmem:[%s8660_s11 + $0x4a4] ss:$16 sps:$4 sm:$0xff]  }
 0x37f   :  { %4632 = vmatpush1.bf16.msra.mxu0 %v6268_v32  ;;  %4796 = vmatpush1.bf16.msra.mxu1 %v6271_v33  ;;  %v6351_v29 = vld [vmem:[%s8660_s11 + $0x4ac] ss:$16 sps:$4 sm:$0xff]   ;;  %v6346_v31 = vld [vmem:[%s8660_s11 + $0x4a0] ss:$16 sps:$4 sm:$0xff]   ;;  %v6349_v32 = vld [vmem:[%s8660_s11 + $0x4a8] ss:$16 sps:$4 sm:$0xff]  }
 0x380   :  { %4633 = vmatprep.subr.bf16.mxu0 %v6276_v34  ;;  %4797 = vmatprep.subr.bf16.mxu1 %v6279_v35  ;;  %v6354_v33 = vld [vmem:[%s8660_s11 + $0x4c4] ss:$16 sps:$4 sm:$0xff]   ;;  %v6357_v34 = vld [vmem:[%s8660_s11 + $0x4cc] ss:$16 sps:$4 sm:$0xff]   ;;  %v6352_v35 = vld [vmem:[%s8660_s11 + $0x4c0] ss:$16 sps:$4 sm:$0xff]  }
 0x381   :  { %v6399_v9 = vld [vmem:[%s8660_s11 + $0x5ac] ss:$16 sps:$4 sm:$0xff]   ;;  %v6402_v53 = vld [vmem:[%s8660_s11 + $0x5c4] ss:$16 sps:$4 sm:$0xff]  }
 0x383   :  { %4634 = vmatpush1.bf16.msra.mxu0 %v6274_v36  ;;  %4798 = vmatpush1.bf16.msra.mxu1 %v6277_v37  ;;  %v6355_v36 = vld [vmem:[%s8660_s11 + $0x4c8] ss:$16 sps:$4 sm:$0xff]   ;;  %v6360_v37 = vld [vmem:[%s8660_s11 + $0x4e4] ss:$16 sps:$4 sm:$0xff]  }
 0x384   :  { %4635 = vmatprep.subr.bf16.mxu0 %v6282_v38  ;;  %4799 = vmatprep.subr.bf16.mxu1 %v6285_v39  ;;  %v6358_v38 = vld [vmem:[%s8660_s11 + $0x4e0] ss:$16 sps:$4 sm:$0xff]   ;;  %v6363_v39 = vld [vmem:[%s8660_s11 + $0x4ec] ss:$16 sps:$4 sm:$0xff]  }
 0x387   :  { %4636 = vmatpush1.bf16.msra.mxu0 %v6280_v40  ;;  %4800 = vmatpush1.bf16.msra.mxu1 %v6283_v41  ;;  %v6361_v40 = vld [vmem:[%s8660_s11 + $0x4e8] ss:$16 sps:$4 sm:$0xff]   ;;  %v6366_v41 = vld [vmem:[%s8660_s11 + $0x504] ss:$16 sps:$4 sm:$0xff]  }
 0x388   :  { %4637 = vmatprep.subr.bf16.mxu0 %v6288_v42  ;;  %4801 = vmatprep.subr.bf16.mxu1 %v6291_v58  ;;  %v6369_v42 = vld [vmem:[%s8660_s11 + $0x50c] ss:$16 sps:$4 sm:$0xff]   ;;  %v6364_v58 = vld [vmem:[%s8660_s11 + $0x500] ss:$16 sps:$4 sm:$0xff]  }
 0x38b   :  { %4638 = vmatpush1.bf16.msra.mxu0 %v6286_v43  ;;  %4802 = vmatpush1.bf16.msra.mxu1 %v6289_v44  ;;  %v6367_v43 = vld [vmem:[%s8660_s11 + $0x508] ss:$16 sps:$4 sm:$0xff]   ;;  %v6372_v44 = vld [vmem:[%s8660_s11 + $0x524] ss:$16 sps:$4 sm:$0xff]  }
 0x38c   :  { %4639 = vmatprep.subr.bf16.mxu0 %v6294_v45  ;;  %4803 = vmatprep.subr.bf16.mxu1 %v6297_v46  ;;  %v6375_v45 = vld [vmem:[%s8660_s11 + $0x52c] ss:$16 sps:$4 sm:$0xff]   ;;  %v6370_v46 = vld [vmem:[%s8660_s11 + $0x520] ss:$16 sps:$4 sm:$0xff]  }
 0x38f   :  { %4640 = vmatpush1.bf16.msra.mxu0 %v6292_v47  ;;  %4804 = vmatpush1.bf16.msra.mxu1 %v6295_v60  ;;  %v6373_v47 = vld [vmem:[%s8660_s11 + $0x528] ss:$16 sps:$4 sm:$0xff]   ;;  %v6378_v60 = vld [vmem:[%s8660_s11 + $0x544] ss:$16 sps:$4 sm:$0xff]  }
 0x390   :  { %4641 = vmatprep.subr.bf16.mxu0 %v6300_v61  ;;  %4805 = vmatprep.subr.bf16.mxu1 %v6303_v62  ;;  %v6381_v61 = vld [vmem:[%s8660_s11 + $0x54c] ss:$16 sps:$4 sm:$0xff]   ;;  %v6376_v62 = vld [vmem:[%s8660_s11 + $0x540] ss:$16 sps:$4 sm:$0xff]  }
 0x393   :  { %4642 = vmatpush1.bf16.msra.mxu0 %v6298_v63  ;;  %4806 = vmatpush1.bf16.msra.mxu1 %v6301_v0  ;;  %v6379_v63 = vld [vmem:[%s8660_s11 + $0x548] ss:$16 sps:$4 sm:$0xff]   ;;  %v6384_v0 = vld [vmem:[%s8660_s11 + $0x564] ss:$16 sps:$4 sm:$0xff]  }
 0x394   :  { %4643 = vmatprep.subr.bf16.mxu0 %v6306_v1  ;;  %4807 = vmatprep.subr.bf16.mxu1 %v6309_v3  ;;  %v6387_v1 = vld [vmem:[%s8660_s11 + $0x56c] ss:$16 sps:$4 sm:$0xff]   ;;  %v6382_v3 = vld [vmem:[%s8660_s11 + $0x560] ss:$16 sps:$4 sm:$0xff]  }
 0x397   :  { %4644 = vmatpush1.bf16.msra.mxu0 %v6304_v4  ;;  %4808 = vmatpush1.bf16.msra.mxu1 %v6307_v5  ;;  %v6385_v4 = vld [vmem:[%s8660_s11 + $0x568] ss:$16 sps:$4 sm:$0xff]   ;;  %v6390_v5 = vld [vmem:[%s8660_s11 + $0x584] ss:$16 sps:$4 sm:$0xff]  }
 0x398   :  { %4645 = vmatprep.subr.bf16.mxu0 %v6312_v6  ;;  %4809 = vmatprep.subr.bf16.mxu1 %v6315_v51  ;;  %v6393_v6 = vld [vmem:[%s8660_s11 + $0x58c] ss:$16 sps:$4 sm:$0xff]   ;;  %v6388_v51 = vld [vmem:[%s8660_s11 + $0x580] ss:$16 sps:$4 sm:$0xff]  }
 0x39b   :  { %4646 = vmatpush1.bf16.msra.mxu0 %v6310_v7  ;;  %4810 = vmatpush1.bf16.msra.mxu1 %v6313_v8  ;;  %v6391_v7 = vld [vmem:[%s8660_s11 + $0x588] ss:$16 sps:$4 sm:$0xff]   ;;  %v6396_v8 = vld [vmem:[%s8660_s11 + $0x5a4] ss:$16 sps:$4 sm:$0xff]  }
 0x39c   :  { %4656 = vmatprep.subr.bf16.mxu0 %v6318_v11  ;;  %4820 = vmatprep.subr.bf16.mxu1 %v6321_v12  ;;  %v6394_v11 = vld [vmem:[%s8660_s11 + $0x5a0] ss:$16 sps:$4 sm:$0xff]   ;;  %v6397_v12 = vld [vmem:[%s8660_s11 + $0x5a8] ss:$16 sps:$4 sm:$0xff]  }
 0x39e   :  { %4648 = vmatmul.mubr.bf16.vlgmr.msra.gmra.mrb[24].mxu0 %v3010_v14  ;;  %4812 = vmatmul.mubr.bf16.vlgmr.msra.gmra.mrb[24].mxu1 %v3010_v14  ;;  %v6400_v14 = vld [vmem:[%s8660_s11 + $0x5c0] ss:$16 sps:$4 sm:$0xff]  }
 0x39f   :  { %4657 = vmatpush1.bf16.msra.mxu0 %v6316_v13  ;;  %4688 = vmatprep.mubr.bf16.mxu0 %v3013_v19  ;;  %v6405_v13 = vld [vmem:[%s8660_s11 + $0x5cc] ss:$16 sps:$4 sm:$0xff]  }
 0x3a0   :  { %4821 = vmatpush1.bf16.msra.mxu1 %v6319_v16  ;;  %4852 = vmatprep.mubr.bf16.mxu1 %v3013_v19  ;;  %v6403_v16 = vld [vmem:[%s8660_s11 + $0x5c8] ss:$16 sps:$4 sm:$0xff]   ;;  %v6408_v19 = vld [vmem:[%s8660_s11 + $0x5e4] ss:$16 sps:$4 sm:$0xff]  }
 0x3a1   :  { %4658 = vmatprep.subr.bf16.mxu0 %v6324_v20  ;;  %4822 = vmatprep.subr.bf16.mxu1 %v6327_v48  ;;  %v6411_v20 = vld [vmem:[%s8660_s11 + $0x5ec] ss:$16 sps:$4 sm:$0xff]   ;;  %v6406_v48 = vld [vmem:[%s8660_s11 + $0x5e0] ss:$16 sps:$4 sm:$0xff]  }
 0x3a3   :  { %4659 = vmatpush1.bf16.msra.mxu0 %v6322_v18  ;;  %v3004_v18 = vmax.f32 %v8044_v17, 0.0  ;;  %v6412_v17 = vld [vmem:[%s8660_s11 + $0x600] ss:$16 sps:$4 sm:$0xff]  }
 0x3a4   :  { %4823 = vmatpush1.bf16.msra.mxu1 %v6325_v22  ;;  %4660 = vmatprep.subr.bf16.mxu0 %v6330_v2  ;;  %v6409_v22 = vld [vmem:[%s8660_s11 + $0x5e8] ss:$16 sps:$4 sm:$0xff]   ;;  %v6414_v2 = vld [vmem:[%s8660_s11 + $0x604] ss:$16 sps:$4 sm:$0xff]  }
 0x3a5   :  { %4824 = vmatprep.subr.bf16.mxu1 %v6333_v49  ;;  %v6417_v49 = vld [vmem:[%s8660_s11 + $0x60c] ss:$16 sps:$4 sm:$0xff]  }
 0x3a7   :  { %4661 = vmatpush1.bf16.msra.mxu0 %v6328_v50  ;;  %v3007_v50 = vmax.f32 %v8050_v28, 0.0  ;;  %v6423_v28 = vld [vmem:[%s8660_s11 + $0x62c] ss:$16 sps:$4 sm:$0xff]  }
 0x3a8   :  { %4825 = vmatpush1.bf16.msra.mxu1 %v6331_v23  ;;  %4662 = vmatprep.subr.bf16.mxu0 %v6336_v25  ;;  %v3012_v23 = vpack.c.bf16 %v3004_v18, %v3004_v18  ;;  %v6415_v25 = vld [vmem:[%s8660_s11 + $0x608] ss:$16 sps:$4 sm:$0xff]   ;;  %v6490_v18 = vld [vmem:[%s8660_s11 + $0x7a0] ss:$16 sps:$4 sm:$0xff]  }
 0x3a9   :  { %4826 = vmatprep.subr.bf16.mxu1 %v6339_v26  ;;  %v6420_v26 = vld [vmem:[%s8660_s11 + $0x624] ss:$16 sps:$4 sm:$0xff]  }
 0x3ab   :  { %4663 = vmatpush1.bf16.msra.mxu0 %v6334_v59  ;;  %v3015_v59 = vpack.c.bf16 %v3007_v50, %v3007_v50  ;;  %v6496_v50 = vld [vmem:[%s8660_s11 + $0x7c0] ss:$16 sps:$4 sm:$0xff]  }
 0x3ac   :  { %4827 = vmatpush1.bf16.msra.mxu1 %v6337_v15  ;;  %4664 = vmatprep.subr.bf16.mxu0 %v6342_v10  ;;  %v6418_v15 = vld [vmem:[%s8660_s11 + $0x620] ss:$16 sps:$4 sm:$0xff]   ;;  %v6421_v10 = vld [vmem:[%s8660_s11 + $0x628] ss:$16 sps:$4 sm:$0xff]  }
 0x3ad   :  { %4828 = vmatprep.subr.bf16.mxu1 %v6345_v27  ;;  %v6426_v27 = vld [vmem:[%s8660_s11 + $0x644] ss:$16 sps:$4 sm:$0xff]  }
 0x3af   :  { %4665 = vmatpush1.bf16.msra.mxu0 %v6340_v54  ;;  %v6429_v54 = vld [vmem:[%s8660_s11 + $0x64c] ss:$16 sps:$4 sm:$0xff]  }
 0x3b0   :  { %4829 = vmatpush1.bf16.msra.mxu1 %v6343_v30  ;;  %4666 = vmatprep.subr.bf16.mxu0 %v6348_v24  ;;  %v6424_v30 = vld [vmem:[%s8660_s11 + $0x640] ss:$16 sps:$4 sm:$0xff]   ;;  %v6427_v24 = vld [vmem:[%s8660_s11 + $0x648] ss:$16 sps:$4 sm:$0xff]  }
 0x3b1   :  { %4830 = vmatprep.subr.bf16.mxu1 %v6351_v29  ;;  %v6432_v29 = vld [vmem:[%s8660_s11 + $0x664] ss:$16 sps:$4 sm:$0xff]  }
 0x3b3   :  { %4667 = vmatpush1.bf16.msra.mxu0 %v6346_v31  ;;  %v6435_v31 = vld [vmem:[%s8660_s11 + $0x66c] ss:$16 sps:$4 sm:$0xff]  }
 0x3b4   :  { %4831 = vmatpush1.bf16.msra.mxu1 %v6349_v32  ;;  %4668 = vmatprep.subr.bf16.mxu0 %v6354_v33  ;;  %v6430_v32 = vld [vmem:[%s8660_s11 + $0x660] ss:$16 sps:$4 sm:$0xff]   ;;  %v6433_v33 = vld [vmem:[%s8660_s11 + $0x668] ss:$16 sps:$4 sm:$0xff]  }
 0x3b5   :  { %4832 = vmatprep.subr.bf16.mxu1 %v6357_v34  ;;  %v6438_v34 = vld [vmem:[%s8660_s11 + $0x684] ss:$16 sps:$4 sm:$0xff]  }
 0x3b7   :  { %4669 = vmatpush1.bf16.msra.mxu0 %v6352_v35  ;;  %v6441_v35 = vld [vmem:[%s8660_s11 + $0x68c] ss:$16 sps:$4 sm:$0xff]  }
 0x3b8   :  { %4833 = vmatpush1.bf16.msra.mxu1 %v6355_v36  ;;  %4670 = vmatprep.subr.bf16.mxu0 %v6360_v37  ;;  %v6436_v36 = vld [vmem:[%s8660_s11 + $0x680] ss:$16 sps:$4 sm:$0xff]   ;;  %v6439_v37 = vld [vmem:[%s8660_s11 + $0x688] ss:$16 sps:$4 sm:$0xff]  }
 0x3b9   :  { %4834 = vmatprep.subr.bf16.mxu1 %v6363_v39  ;;  %v6447_v39 = vld [vmem:[%s8660_s11 + $0x6ac] ss:$16 sps:$4 sm:$0xff]  }
 0x3bb   :  { %4671 = vmatpush1.bf16.msra.mxu0 %v6358_v38  ;;  %v6444_v38 = vld [vmem:[%s8660_s11 + $0x6a4] ss:$16 sps:$4 sm:$0xff]  }
 0x3bc   :  { %4835 = vmatpush1.bf16.msra.mxu1 %v6361_v40  ;;  %4672 = vmatprep.subr.bf16.mxu0 %v6366_v41  ;;  %v6442_v40 = vld [vmem:[%s8660_s11 + $0x6a0] ss:$16 sps:$4 sm:$0xff]   ;;  %v6445_v41 = vld [vmem:[%s8660_s11 + $0x6a8] ss:$16 sps:$4 sm:$0xff]  }
 0x3bd   :  { %4836 = vmatprep.subr.bf16.mxu1 %v6369_v42  ;;  %v6450_v42 = vld [vmem:[%s8660_s11 + $0x6c4] ss:$16 sps:$4 sm:$0xff]  }
 0x3bf   :  { %4673 = vmatpush1.bf16.msra.mxu0 %v6364_v58  ;;  %v6453_v58 = vld [vmem:[%s8660_s11 + $0x6cc] ss:$16 sps:$4 sm:$0xff]  }
 0x3c0   :  { %4837 = vmatpush1.bf16.msra.mxu1 %v6367_v43  ;;  %4674 = vmatprep.subr.bf16.mxu0 %v6372_v44  ;;  %v6448_v43 = vld [vmem:[%s8660_s11 + $0x6c0] ss:$16 sps:$4 sm:$0xff]   ;;  %v6451_v44 = vld [vmem:[%s8660_s11 + $0x6c8] ss:$16 sps:$4 sm:$0xff]  }
 0x3c1   :  { %4838 = vmatprep.subr.bf16.mxu1 %v6375_v45  ;;  %v6456_v45 = vld [vmem:[%s8660_s11 + $0x6e4] ss:$16 sps:$4 sm:$0xff]  }
 0x3c3   :  { %4675 = vmatpush1.bf16.msra.mxu0 %v6370_v46  ;;  %v6459_v46 = vld [vmem:[%s8660_s11 + $0x6ec] ss:$16 sps:$4 sm:$0xff]  }
 0x3c4   :  { %4839 = vmatpush1.bf16.msra.mxu1 %v6373_v47  ;;  %4676 = vmatprep.subr.bf16.mxu0 %v6378_v60  ;;  %v6454_v47 = vld [vmem:[%s8660_s11 + $0x6e0] ss:$16 sps:$4 sm:$0xff]   ;;  %v6457_v60 = vld [vmem:[%s8660_s11 + $0x6e8] ss:$16 sps:$4 sm:$0xff]  }
 0x3c5   :  { %4840 = vmatprep.subr.bf16.mxu1 %v6381_v61  ;;  %v6462_v61 = vld [vmem:[%s8660_s11 + $0x704] ss:$16 sps:$4 sm:$0xff]  }
 0x3c7   :  { %4677 = vmatpush1.bf16.msra.mxu0 %v6376_v62  ;;  %v6465_v62 = vld [vmem:[%s8660_s11 + $0x70c] ss:$16 sps:$4 sm:$0xff]  }
 0x3c8   :  { %4841 = vmatpush1.bf16.msra.mxu1 %v6379_v63  ;;  %4678 = vmatprep.subr.bf16.mxu0 %v6384_v0  ;;  %v6460_v63 = vld [vmem:[%s8660_s11 + $0x700] ss:$16 sps:$4 sm:$0xff]   ;;  %v6463_v0 = vld [vmem:[%s8660_s11 + $0x708] ss:$16 sps:$4 sm:$0xff]  }
 0x3c9   :  { %4842 = vmatprep.subr.bf16.mxu1 %v6387_v1  ;;  %v6468_v1 = vld [vmem:[%s8660_s11 + $0x724] ss:$16 sps:$4 sm:$0xff]  }
 0x3cb   :  { %4679 = vmatpush1.bf16.msra.mxu0 %v6382_v3  ;;  %v6471_v3 = vld [vmem:[%s8660_s11 + $0x72c] ss:$16 sps:$4 sm:$0xff]  }
 0x3cc   :  { %4843 = vmatpush1.bf16.msra.mxu1 %v6385_v4  ;;  %4680 = vmatprep.subr.bf16.mxu0 %v6390_v5  ;;  %v6466_v4 = vld [vmem:[%s8660_s11 + $0x720] ss:$16 sps:$4 sm:$0xff]   ;;  %v6469_v5 = vld [vmem:[%s8660_s11 + $0x728] ss:$16 sps:$4 sm:$0xff]  }
 0x3cd   :  { %4844 = vmatprep.subr.bf16.mxu1 %v6393_v6  ;;  %v6474_v6 = vld [vmem:[%s8660_s11 + $0x744] ss:$16 sps:$4 sm:$0xff]  }
 0x3cf   :  { %4681 = vmatpush1.bf16.msra.mxu0 %v6388_v51  ;;  %v6477_v51 = vld [vmem:[%s8660_s11 + $0x74c] ss:$16 sps:$4 sm:$0xff]  }
 0x3d0   :  { %4845 = vmatpush1.bf16.msra.mxu1 %v6391_v7  ;;  %4682 = vmatprep.subr.bf16.mxu0 %v6396_v8  ;;  %v6472_v7 = vld [vmem:[%s8660_s11 + $0x740] ss:$16 sps:$4 sm:$0xff]   ;;  %v6475_v8 = vld [vmem:[%s8660_s11 + $0x748] ss:$16 sps:$4 sm:$0xff]  }
 0x3d1   :  { %4846 = vmatprep.subr.bf16.mxu1 %v6399_v9  ;;  %v6480_v9 = vld [vmem:[%s8660_s11 + $0x764] ss:$16 sps:$4 sm:$0xff]  }
 0x3d3   :  { %4683 = vmatpush1.bf16.msra.mxu0 %v6394_v11  ;;  %v6483_v11 = vld [vmem:[%s8660_s11 + $0x76c] ss:$16 sps:$4 sm:$0xff]  }
 0x3d4   :  { %4847 = vmatpush1.bf16.msra.mxu1 %v6397_v12  ;;  %4684 = vmatprep.subr.bf16.mxu0 %v6402_v53  ;;  %v6478_v12 = vld [vmem:[%s8660_s11 + $0x760] ss:$16 sps:$4 sm:$0xff]   ;;  %v6481_v53 = vld [vmem:[%s8660_s11 + $0x768] ss:$16 sps:$4 sm:$0xff]  }
 0x3d5   :  { %4848 = vmatprep.subr.bf16.mxu1 %v6405_v13  ;;  %v6486_v13 = vld [vmem:[%s8660_s11 + $0x784] ss:$16 sps:$4 sm:$0xff]  }
 0x3d7   :  { %4685 = vmatpush1.bf16.msra.mxu0 %v6400_v14  ;;  %v6489_v14 = vld [vmem:[%s8660_s11 + $0x78c] ss:$16 sps:$4 sm:$0xff]  }
 0x3d8   :  { %4849 = vmatpush1.bf16.msra.mxu1 %v6403_v16  ;;  %4686 = vmatprep.subr.bf16.mxu0 %v6408_v19  ;;  %v6484_v16 = vld [vmem:[%s8660_s11 + $0x780] ss:$16 sps:$4 sm:$0xff]   ;;  %v6487_v19 = vld [vmem:[%s8660_s11 + $0x788] ss:$16 sps:$4 sm:$0xff]  }
 0x3d9   :  { %4850 = vmatprep.subr.bf16.mxu1 %v6411_v20  ;;  %v6492_v20 = vld [vmem:[%s8660_s11 + $0x7a4] ss:$16 sps:$4 sm:$0xff]  }
 0x3db   :  { %4687 = vmatpush1.bf16.msra.mxu0 %v6406_v48  ;;  %v6495_v48 = vld [vmem:[%s8660_s11 + $0x7ac] ss:$16 sps:$4 sm:$0xff]  }
 0x3dc   :  { %4851 = vmatpush1.bf16.msra.mxu1 %v6409_v22  ;;  %4697 = vmatprep.subr.bf16.mxu0 %v6414_v2  ;;  %v6493_v22 = vld [vmem:[%s8660_s11 + $0x7a8] ss:$16 sps:$4 sm:$0xff]   ;;  %v6498_v2 = vld [vmem:[%s8660_s11 + $0x7c4] ss:$16 sps:$4 sm:$0xff]  }
 0x3dd   :  { %4861 = vmatprep.subr.bf16.mxu1 %v6417_v49  ;;  %v6501_v49 = vld [vmem:[%s8660_s11 + $0x7cc] ss:$16 sps:$4 sm:$0xff]  }
 0x3de   :  { %4689 = vmatmul.mubr.bf16.vlgmr.msra.gmra.mrb[24].mxu0 %v3012_v23 }
 0x3df   :  { %4853 = vmatmul.mubr.bf16.vlgmr.msra.gmra.mrb[24].mxu1 %v3012_v23  ;;  %4698 = vmatpush1.bf16.msra.mxu0 %v6412_v17  ;;  %v6499_v17 = vld [vmem:[%s8660_s11 + $0x7c8] ss:$16 sps:$4 sm:$0xff]   ;;  %v6504_v23 = vld [vmem:[%s8660_s11 + $0x7e4] ss:$16 sps:$4 sm:$0xff]  }
 0x3e0   :  { %4729 = vmatprep.mubr.bf16.mxu0 %v3015_v59  ;;  %4862 = vmatpush1.bf16.msra.mxu1 %v6415_v25  ;;  %v6507_v25 = vld [vmem:[%s8660_s11 + $0x7ec] ss:$16 sps:$4 sm:$0xff]  }
 0x3e1   :  { %4893 = vmatprep.mubr.bf16.mxu1 %v3015_v59  ;;  %4699 = vmatprep.subr.bf16.mxu0 %v6420_v26  ;;  %v6502_v26 = vld [vmem:[%s8660_s11 + $0x7e0] ss:$16 sps:$4 sm:$0xff]   ;;  %v3006_v59 = vmax.f32 %v8046_v21, 0.0 }
 0x3e2   :  { %4863 = vmatprep.subr.bf16.mxu1 %v6423_v28  ;;  %v6505_v28 = vld [vmem:[%s8660_s11 + $0x7e8] ss:$16 sps:$4 sm:$0xff]   ;;  %v6510_v21 = vld [vmem:[%s8664_s13] sm:$0xff]  }
 0x3e3   :  { %4700 = vmatpush1.bf16.msra.mxu0 %v6418_v15  ;;  %v6508_v15 = vld [vmem:[%s8664_s13 + $0x40] sm:$0xff]  }
 0x3e4   :  { %4864 = vmatpush1.bf16.msra.mxu1 %v6421_v10  ;;  %4701 = vmatprep.subr.bf16.mxu0 %v6426_v27  ;;  %v6509_v10 = vld [vmem:[%s8664_s13 + $0xc0] sm:$0xff]   ;;  %v3014_v27 = vpack.c.bf16 %v3006_v59, %v3006_v59 }
 0x3e5   :  { %4865 = vmatprep.subr.bf16.mxu1 %v6429_v54  ;;  %v6511_v54 = vld [vmem:[%s8664_s13 + $0x80] sm:$0xff]  }
 0x3e7   :  { %4702 = vmatpush1.bf16.msra.mxu0 %v6424_v30  ;;  %v6512_v30 = vld [vmem:[%s8664_s13 + $0x48] sm:$0xff]  }
 0x3e8   :  { %4866 = vmatpush1.bf16.msra.mxu1 %v6427_v24  ;;  %4703 = vmatprep.subr.bf16.mxu0 %v6432_v29  ;;  %v6513_v24 = vld [vmem:[%s8664_s13 + $0xc8] sm:$0xff]  }
 0x3e9   :  { %4867 = vmatprep.subr.bf16.mxu1 %v6435_v31  ;;  %v6514_v29 = vld [vmem:[%s8664_s13 + $0x8] sm:$0xff]  }
 0x3ea   :  { %v6515_v31 = vld [vmem:[%s8664_s13 + $0x88] sm:$0xff]  }
 0x3eb   :  { %4704 = vmatpush1.bf16.msra.mxu0 %v6430_v32  ;;  %v6516_v32 = vld [vmem:[%s8664_s13 + $0x50] sm:$0xff]  }
 0x3ec   :  { %4868 = vmatpush1.bf16.msra.mxu1 %v6433_v33  ;;  %4705 = vmatprep.subr.bf16.mxu0 %v6438_v34  ;;  %v6517_v33 = vld [vmem:[%s8664_s13 + $0xd0] sm:$0xff]  }
 0x3ed   :  { %4869 = vmatprep.subr.bf16.mxu1 %v6441_v35  ;;  %v6518_v34 = vld [vmem:[%s8664_s13 + $0x10] sm:$0xff]  }
 0x3ee   :  { %v6519_v35 = vld [vmem:[%s8664_s13 + $0x90] sm:$0xff]  }
 0x3ef   :  { %4706 = vmatpush1.bf16.msra.mxu0 %v6436_v36  ;;  %v6520_v36 = vld [vmem:[%s8664_s13 + $0x58] sm:$0xff]  }
 0x3f0   :  { %4870 = vmatpush1.bf16.msra.mxu1 %v6439_v37  ;;  %4707 = vmatprep.subr.bf16.mxu0 %v6444_v38  ;;  %v6521_v37 = vld [vmem:[%s8664_s13 + $0xd8] sm:$0xff]  }
 0x3f1   :  { %4871 = vmatprep.subr.bf16.mxu1 %v6447_v39  ;;  %v6522_v38 = vld [vmem:[%s8664_s13 + $0x18] sm:$0xff]  }
 0x3f2   :  { %v6523_v39 = vld [vmem:[%s8664_s13 + $0x98] sm:$0xff]  }
 0x3f3   :  { %4708 = vmatpush1.bf16.msra.mxu0 %v6442_v40  ;;  %v6524_v40 = vld [vmem:[%s8664_s13 + $0x60] sm:$0xff]  }
 0x3f4   :  { %4872 = vmatpush1.bf16.msra.mxu1 %v6445_v41  ;;  %4709 = vmatprep.subr.bf16.mxu0 %v6450_v42  ;;  %v6525_v41 = vld [vmem:[%s8664_s13 + $0xe0] sm:$0xff]  }
 0x3f5   :  { %4873 = vmatprep.subr.bf16.mxu1 %v6453_v58  ;;  %v6526_v42 = vld [vmem:[%s8664_s13 + $0x20] sm:$0xff]  }
 0x3f6   :  { %v6527_v58 = vld [vmem:[%s8664_s13 + $0xa0] sm:$0xff]  }
 0x3f7   :  { %4710 = vmatpush1.bf16.msra.mxu0 %v6448_v43  ;;  %v6528_v43 = vld [vmem:[%s8664_s13 + $0x68] sm:$0xff]  }
 0x3f8   :  { %4874 = vmatpush1.bf16.msra.mxu1 %v6451_v44  ;;  %4711 = vmatprep.subr.bf16.mxu0 %v6456_v45  ;;  %v6529_v44 = vld [vmem:[%s8664_s13 + $0xe8] sm:$0xff]  }
 0x3f9   :  { %4875 = vmatprep.subr.bf16.mxu1 %v6459_v46  ;;  %v6530_v45 = vld [vmem:[%s8664_s13 + $0x28] sm:$0xff]  }
 0x3fa   :  { %v6531_v46 = vld [vmem:[%s8664_s13 + $0xa8] sm:$0xff]  }
 0x3fb   :  { %4712 = vmatpush1.bf16.msra.mxu0 %v6454_v47  ;;  %v6532_v47 = vld [vmem:[%s8664_s13 + $0x70] sm:$0xff]  }
 0x3fc   :  { %4876 = vmatpush1.bf16.msra.mxu1 %v6457_v60  ;;  %4713 = vmatprep.subr.bf16.mxu0 %v6462_v61  ;;  %v6533_v60 = vld [vmem:[%s8664_s13 + $0xf0] sm:$0xff]  }
 0x3fd   :  { %4877 = vmatprep.subr.bf16.mxu1 %v6465_v62  ;;  %v6534_v61 = vld [vmem:[%s8664_s13 + $0x30] sm:$0xff]  }
 0x3fe   :  { %v6535_v62 = vld [vmem:[%s8664_s13 + $0xb0] sm:$0xff]  }
 0x3ff   :  { %4714 = vmatpush1.bf16.msra.mxu0 %v6460_v63  ;;  %v6536_v63 = vld [vmem:[%s8664_s13 + $0x78] sm:$0xff]  }
 0x400   :  { %4878 = vmatpush1.bf16.msra.mxu1 %v6463_v0  ;;  %4715 = vmatprep.subr.bf16.mxu0 %v6468_v1  ;;  %v6537_v0 = vld [vmem:[%s8664_s13 + $0xf8] sm:$0xff]  }
 0x401   :  { %4879 = vmatprep.subr.bf16.mxu1 %v6471_v3  ;;  %v6538_v1 = vld [vmem:[%s8664_s13 + $0x38] sm:$0xff]  }
 0x402   :  { %v6539_v3 = vld [vmem:[%s8664_s13 + $0xb8] sm:$0xff]  }
 0x403   :  { %4716 = vmatpush1.bf16.msra.mxu0 %v6466_v4  ;;  %v3272_v4 = vld [vmem:[%s8665_s12] sm:$0xf] }
 0x404   :  { %4880 = vmatpush1.bf16.msra.mxu1 %v6469_v5  ;;  %4717 = vmatprep.subr.bf16.mxu0 %v6474_v6  ;;  %v3277_v5 = vrot.slane %v3272_v4, %v7337_v52  ;;  %v3285_v6 = vrot.slane %v3272_v4, %v7345_v55 }
 0x405   :  { %4881 = vmatprep.subr.bf16.mxu1 %v6477_v51  ;;  %v3281_v51 = vrot.slane %v3272_v4, %v7348_v56 }
 0x407   :  { %4718 = vmatpush1.bf16.msra.mxu0 %v6472_v7  ;;  %v3289_v7 = vrot.slane %v3272_v4, %v7351_v57 }
 0x408   :  { %4882 = vmatpush1.bf16.msra.mxu1 %v6475_v8  ;;  %4719 = vmatprep.subr.bf16.mxu0 %v6480_v9 }
 0x409   :  { %4883 = vmatprep.subr.bf16.mxu1 %v6483_v11 }
 0x40b   :  { %4720 = vmatpush1.bf16.msra.mxu0 %v6478_v12 }
 0x40c   :  { %4884 = vmatpush1.bf16.msra.mxu1 %v6481_v53  ;;  %4721 = vmatprep.subr.bf16.mxu0 %v6486_v13 }
 0x40d   :  { %4885 = vmatprep.subr.bf16.mxu1 %v6489_v14 }
 0x40f   :  { %4722 = vmatpush1.bf16.msra.mxu0 %v6484_v16 }
 0x410   :  { %4886 = vmatpush1.bf16.msra.mxu1 %v6487_v19  ;;  %4723 = vmatprep.subr.bf16.mxu0 %v6492_v20 }
 0x411   :  { %4887 = vmatprep.subr.bf16.mxu1 %v6495_v48 }
 0x413   :  { %4724 = vmatpush1.bf16.msra.mxu0 %v6490_v18 }
 0x414   :  { %4888 = vmatpush1.bf16.msra.mxu1 %v6493_v22  ;;  %4725 = vmatprep.subr.bf16.mxu0 %v6498_v2 }
 0x415   :  { %4889 = vmatprep.subr.bf16.mxu1 %v6501_v49 }
 0x417   :  { %4726 = vmatpush1.bf16.msra.mxu0 %v6496_v50 }
 0x418   :  { %4890 = vmatpush1.bf16.msra.mxu1 %v6499_v17  ;;  %4727 = vmatprep.subr.bf16.mxu0 %v6504_v23 }
 0x419   :  { %4891 = vmatprep.subr.bf16.mxu1 %v6507_v25  ;;  %v5838_v25 = vld [vmem:[%s8666_s14] ss:$0 sm:$0xff] }
 0x41b   :  { %4728 = vmatpush1.bf16.msra.mxu0 %v6502_v26 }
 0x41c   :  { %4892 = vmatpush1.bf16.msra.mxu1 %v6505_v28  ;;  %5959 = vmatprep.subr.bf16.mxu0 %v6508_v15 }
 0x41d   :  { %5981 = vmatprep.subr.bf16.mxu1 %v6509_v10 }
 0x41e   :  { %4730 = vmatmul.mubr.bf16.vlgmr.msra.gmra.mrb[24].mxu0 %v3014_v27 }
 0x41f   :  { %4894 = vmatmul.mubr.bf16.vlgmr.msra.gmra.mrb[24].mxu1 %v3014_v27  ;;  %5960 = vmatpush3.bf16.msra.mxu0 %v6510_v21 }
 0x420   :  { %5982 = vmatpush3.bf16.msra.mxu1 %v6511_v54  ;;  %5961 = vmatprep.subr.bf16.mxu0 %v6512_v30 }
 0x421   :  { %5983 = vmatprep.subr.bf16.mxu1 %v6513_v24 }
 0x423   :  { %5962 = vmatpush3.bf16.msra.mxu0 %v6514_v29 }
 0x424   :  { %5984 = vmatpush3.bf16.msra.mxu1 %v6515_v31  ;;  %5963 = vmatprep.subr.bf16.mxu0 %v6516_v32 }
 0x425   :  { %5985 = vmatprep.subr.bf16.mxu1 %v6517_v33 }
 0x427   :  { %5964 = vmatpush3.bf16.msra.mxu0 %v6518_v34 }
 0x428   :  { %5986 = vmatpush3.bf16.msra.mxu1 %v6519_v35  ;;  %5965 = vmatprep.subr.bf16.mxu0 %v6520_v36 }
 0x429   :  { %5987 = vmatprep.subr.bf16.mxu1 %v6521_v37 }
 0x42b   :  { %5966 = vmatpush3.bf16.msra.mxu0 %v6522_v38 }
 0x42c   :  { %5988 = vmatpush3.bf16.msra.mxu1 %v6523_v39  ;;  %5967 = vmatprep.subr.bf16.mxu0 %v6524_v40 }
 0x42d   :  { %5989 = vmatprep.subr.bf16.mxu1 %v6525_v41 }
 0x42f   :  { %5968 = vmatpush3.bf16.msra.mxu0 %v6526_v42 }
 0x430   :  { %5990 = vmatpush3.bf16.msra.mxu1 %v6527_v58  ;;  %5969 = vmatprep.subr.bf16.mxu0 %v6528_v43 }
 0x431   :  { %5991 = vmatprep.subr.bf16.mxu1 %v6529_v44 }
 0x433   :  { %5970 = vmatpush3.bf16.msra.mxu0 %v6530_v45 }
 0x434   :  { %5992 = vmatpush3.bf16.msra.mxu1 %v6531_v46  ;;  %5971 = vmatprep.subr.bf16.mxu0 %v6532_v47 }
 0x435   :  { %5993 = vmatprep.subr.bf16.mxu1 %v6533_v60 }
 0x437   :  { %5972 = vmatpush3.bf16.msra.mxu0 %v6534_v61 }
 0x438   :  { %5994 = vmatpush3.bf16.msra.mxu1 %v6535_v62  ;;  %5973 = vmatprep.subr.bf16.mxu0 %v6536_v63 }
 0x439   :  { %5995 = vmatprep.subr.bf16.mxu1 %v6537_v0 }
 0x43b   :  { %5974 = vmatpush3.bf16.msra.mxu0 %v6538_v1 }
 0x43c   :  { %5996 = vmatpush3.bf16.msra.mxu1 %v6539_v3 }
 0x4f1   :  { %v4731_v8 = vpop.f32.mrb[24].mxu0 }
 0x4f2   :  { %v6011_v9 = vadd.f32 %v4731_v8, %v3277_v5  ;;  %v4895_v11 = vpop.f32.mrb[24].mxu1  ;;  %v4733_v12 = vpop.f32.mrb[25].mxu0 }
 0x4f3   :  { %v6013_v53 = vadd.f32 %v4895_v11, %v3285_v6  ;;  %v6012_v13 = vadd.f32 %v4733_v12, %v3281_v51  ;;  %v4897_v14 = vpop.f32.mrb[25].mxu1  ;;  %v4735_v16 = vpop.f32.mrb[26].mxu0 }
 0x4f4   :  { %v4902_v19 = vmax.f32 %v6011_v9, 0.0  ;;  %v6014_v20 = vadd.f32 %v4897_v14, %v3289_v7  ;;  %v4899_v48 = vpop.f32.mrb[26].mxu1  ;;  %v4736_v18 = vpop.f32.mrb[27].mxu0 }
 0x4f5   :  { %v4904_v22 = vmax.f32 %v6013_v53, 0.0  ;;  %v4903_v52 = vmax.f32 %v6012_v13, 0.0  ;;  %v4900_v2 = vpop.f32.mrb[27].mxu1 }
 0x4f6   :  { %v4905_v55 = vmax.f32 %v6014_v20, 0.0  ;;  %v4906_v56 = vpack.c.bf16 %v4902_v19, %v4902_v19 }
 0x4f7   :  { %v4907_v49 = vpack.c.bf16 %v4903_v52, %v4903_v52  ;;  %v4908_v57 = vpack.c.bf16 %v4904_v22, %v4904_v22 }
 0x4f8   :  { %v4909_v50 = vpack.c.bf16 %v4905_v55, %v4905_v55 }
 0x4f9   :  { %5205 = vmatprep.mubr.bf16.mxu0 %v4907_v49 }
 0x4fa   :  { %5245 = vmatprep.mubr.bf16.mxu1 %v4909_v50  ;;  %5206 = vmatmul.mubr.bf16.vlgmr.msra.gmra.mrb[28].mxu0 %v4906_v56 }
 0x4fb   :  { %5246 = vmatmul.mubr.bf16.vlgmr.msra.gmra.mrb[28].mxu1 %v4908_v57 }
 0x5cd   :  { %v5975_v17 = vpop.f32.mrb[28].mxu0 }
 0x5ce   :  { %v5997_v23 = vpop.f32.mrb[28].mxu1  ;;  %v5976_v26 = vpop.f32.mrb[29].mxu0 }
 0x5cf   :  { %v5977_v59 = vadd.f32 %v5976_v26, %v5975_v17  ;;  %v5998_v28 = vpop.f32.mrb[29].mxu1  ;;  %v5978_v15 = vpop.f32.mrb[30].mxu0 }
 0x5d0   :  { %v5999_v10 = vadd.f32 %v5998_v28, %v5997_v23  ;;  %v6000_v21 = vpop.f32.mrb[30].mxu1  ;;  %v5979_v27 = vpop.f32.mrb[31].mxu0 }
 0x5d1   :  { %v5208_v54 = vadd.f32 %v5977_v59, %v5838_v25  ;;  %v6001_v30 = vpop.f32.mrb[31].mxu1 }
 0x5d3   :  { %v5248_v24 = vadd.f32 %v5999_v10, %v5208_v54 }
 0x5d5   :  { %5253 = vst [vmem:[%s8667_s15] sm:$0xff] %v5248_v24 }

</bundles_post_ra>
